<compile_context>
chip_gen: v7x
topology: tpu7x:2x2x1
jax: 0.10.0
libtpu: 0.0.40
codegen_flags: <defaults>
</compile_context>

<pallas_src>
import functools
import math

import jax
import jax.numpy as jnp
from jax import lax
from jax.experimental import pallas as pl
from jax.experimental.pallas import tpu as pltpu


def gmm_block_kernel(x_ref, mask_ref,
                     wqkv_ref, bqkv_ref, wo_ref, bo_ref,
                     gamma_ref, beta_ref,
                     out_ref, *, num_heads, head_size, ln_eps=1e-5):
    x = x_ref[0]                                   # (L, D) f32
    L, D = x.shape
    x_bf = x.astype(jnp.bfloat16)

    # Additive key-padding mask, built ONCE per batch element and shared by
    # the 4 branches and all heads.  (1, L) broadcasts over query rows.
    add_mask = (1.0 - mask_ref[0]) * (-10000.0)    # (1, L) f32

    acc = jnp.zeros((L, D), jnp.float32)

    # 4 attention branches -- static loop; weights stay resident in VMEM.
    for a in range(4):
        wqkv = wqkv_ref[a]                         # (D, 3D) bf16
        bqkv = bqkv_ref[a, 0]                      # (3D,)  f32 (Wq/bq pre-scaled)
        wo = wo_ref[a]                             # (D, D)  bf16
        bo = bo_ref[a, 0]                          # (D,)   f32
        gamma = gamma_ref[a, 0]                    # (D,)   f32
        beta = beta_ref[a, 0]                      # (D,)   f32

        # Fused Q/K/V projection: single lane-dense MXU matmul, f32 accum.
        qkv = jnp.dot(x_bf, wqkv, preferred_element_type=jnp.float32) + bqkv
        # bf16 casts hoisted out of the head loop (one cast per (L, D) slab).
        q = qkv[:, 0 * D:1 * D].astype(jnp.bfloat16)
        k = qkv[:, 1 * D:2 * D].astype(jnp.bfloat16)
        v = qkv[:, 2 * D:3 * D].astype(jnp.bfloat16)

        # Per-head scores / softmax / context.  Context heads are collected
        # and packed back into the lane dim so the output projection below is
        # a single K=D matmul (no per-head K=head_size matmuls).
        ctx_parts = []
        for h in range(num_heads):
            sl = slice(h * head_size, (h + 1) * head_size)
            qh, kh, vh = q[:, sl], k[:, sl], v[:, sl]

            # scores = qh @ kh^T without materializing the transpose.
            s = lax.dot_general(qh, kh, (((1,), (1,)), ((), ())),
                                preferred_element_type=jnp.float32)   # (L, L)
            s = s + add_mask
            s = s - jnp.max(s, axis=-1, keepdims=True)
            e = jnp.exp(s)
            p = e * pl.reciprocal(jnp.sum(e, axis=-1, keepdims=True),
                                  approx=True)
            ctx_parts.append(
                jnp.dot(p.astype(jnp.bfloat16), vh,
                        preferred_element_type=jnp.float32)
                .astype(jnp.bfloat16))                                # (L, hd)

        ctx = jnp.concatenate(ctx_parts, axis=-1)                     # (L, D) bf16

        # BertSelfOutput: dense(+bias) -> (dropout = identity) -> LayerNorm(+x)
        y = jnp.dot(ctx, wo, preferred_element_type=jnp.float32) + bo + x
        mu = jnp.mean(y, axis=-1, keepdims=True)
        var = jnp.mean(jnp.square(y - mu), axis=-1, keepdims=True)
        acc = acc + ((y - mu) * lax.rsqrt(var + ln_eps) * gamma + beta)

    # mean over the 4 attention branches; single full-tile store.
    out_ref[0] = acc * 0.25


def _default_vmem_limit():
    # ~3/4 of physical VMEM, capped: ~96 MiB on v5e/v6e (128 MiB parts),
    # ~48 MiB on v7x (64 MiB per TC).
    try:
        cap = pltpu.get_tpu_info().vmem_capacity_bytes
        return int(min(cap * 3 // 4, 100 * 1024 * 1024))
    except Exception:
        return 64 * 1024 * 1024


def gmm_block(x, mask, params, num_heads):
    """x: (N, L, D) f32; mask: (N, L) f32 key-padding (1 = keep, 0 = mask)."""
    N, L, D = x.shape
    head_size = D // num_heads
    wq, bq, wk, bk, wv, bv, wo, bo, gamma, beta = params

    # One-time parameter packing (outside the kernel):
    #   * fold 1/sqrt(head_size) into Wq and bq,
    #   * fuse Wq|Wk|Wv -> (4, D, 3D), biases -> (4, 1, 3D),
    #   * matmul weights stored bf16; biases / LN params stay f32.
    scale = 1.0 / math.sqrt(head_size)
    wqkv = jnp.concatenate([wq * scale, wk, wv], axis=-1).astype(jnp.bfloat16)
    bqkv = jnp.concatenate([bq * scale, bk, bv], axis=-1).astype(jnp.float32)
    wo_bf = wo.astype(jnp.bfloat16)

    mask3 = mask.reshape(N, 1, L).astype(jnp.float32)   # (N, 1, L) key padding

    kernel = functools.partial(
        gmm_block_kernel, num_heads=num_heads, head_size=head_size)

    # Resident weights: constant index_map -> DMA'd once; Buffered(1) ->
    # single-buffered (no 2x VMEM window for invariant operands).
    resident = lambda shape: pl.BlockSpec(
        shape, lambda b: (0, 0, 0), pipeline_mode=pl.Buffered(1))

    out = pl.pallas_call(
        kernel,
        out_shape=jax.ShapeDtypeStruct((N, L, D), jnp.float32),
        grid_spec=pltpu.PrefetchScalarGridSpec(
            num_scalar_prefetch=0,
            grid=(N,),                                          # batch only
            in_specs=[
                pl.BlockSpec((1, L, D), lambda b: (b, 0, 0)),   # x
                pl.BlockSpec((1, 1, L), lambda b: (b, 0, 0)),   # key mask
                resident((4, D, 3 * D)),                        # Wqkv (bf16)
                resident((4, 1, 3 * D)),                        # bqkv
                resident((4, D, D)),                            # Wo (bf16)
                resident((4, 1, D)),                            # bo
                resident((4, 1, D)),                            # gamma
                resident((4, 1, D)),                            # beta
            ],
            out_specs=pl.BlockSpec((1, L, D), lambda b: (b, 0, 0)),
        ),
        compiler_params=pltpu.CompilerParams(
            dimension_semantics=("parallel",),
            vmem_limit_bytes=_default_vmem_limit()),
    )(x, mask3, wqkv, bqkv, wo_bf, bo, gamma, beta)

    # torch.mean(..., dim=-1).squeeze()  (note: drops the batch dim if N == 1,
    # exactly like the PyTorch module).
    return jnp.squeeze(out)


# ----------------------- plain-JAX f32 reference (for checking) -------------
def _reference(x, mask, params, num_heads):
    wq, bq, wk, bk, wv, bv, wo, bo, gamma, beta = params
    N, L, D = x.shape
    hd = D // num_heads
    add = (1.0 - mask[:, None, None, :]) * -10000.0          # (N,1,1,L)
    outs = []
    for a in range(4):
        q = x @ wq[a] + bq[a, 0]
        k = x @ wk[a] + bk[a, 0]
        v = x @ wv[a] + bv[a, 0]
        q = q.reshape(N, L, num_heads, hd).transpose(0, 2, 1, 3)
        k = k.reshape(N, L, num_heads, hd).transpose(0, 2, 1, 3)
        v = v.reshape(N, L, num_heads, hd).transpose(0, 2, 1, 3)
        s = jnp.einsum('nhqd,nhkd->nhqk', q, k) / math.sqrt(hd) + add
        p = jax.nn.softmax(s, axis=-1)
        ctx = jnp.einsum('nhqk,nhkd->nhqd', p, v)
        ctx = ctx.transpose(0, 2, 1, 3).reshape(N, L, D)
        h = ctx @ wo[a] + bo[a, 0]
        y = h + x
        mu = y.mean(-1, keepdims=True)
        var = ((y - mu) ** 2).mean(-1, keepdims=True)
        outs.append((y - mu) / jnp.sqrt(var + 1e-5) * gamma[a, 0] + beta[a, 0])
    return jnp.squeeze(jnp.mean(jnp.stack(outs, -1), -1))


if __name__ == "__main__":
    N, L, D, H = 2, 8, 32, 4

    key = jax.random.PRNGKey(0)
    keys = jax.random.split(key, 12)
    bound = 1.0 / math.sqrt(D)

    def u(k, shape):
        return jax.random.uniform(k, shape, jnp.float32, -bound, bound)

    # Per-branch (4x) stacked parameters; weights in (in, out) layout,
    # i.e. y = x @ W + b (equivalent to PyTorch's x @ W_pt.T + b).
    wq = u(keys[0], (4, D, D)); bq = u(keys[1], (4, 1, D))
    wk = u(keys[2], (4, D, D)); bk = u(keys[3], (4, 1, D))
    wv = u(keys[4], (4, D, D)); bv = u(keys[5], (4, 1, D))
    wo = u(keys[6], (4, D, D)); bo = u(keys[7], (4, 1, D))
    gamma = jnp.ones((4, 1, D), jnp.float32)      # LayerNorm defaults
    beta = jnp.zeros((4, 1, D), jnp.float32)
    params = (wq, bq, wk, bk, wv, bv, wo, bo, gamma, beta)

    x = jax.random.normal(keys[8], (N, L, D), jnp.float32)
    # Key-padding mask (N, L): mask out the last 2 key positions.
    mask = jnp.ones((N, L), jnp.float32).at[:, -2:].set(0.0)

    out = gmm_block(x, mask, params, H)
    out = jax.block_until_ready(out)

    ref = _reference(x, mask, params, H)
    assert out.shape == ref.shape
    # bf16 MXU operands + approx reciprocal vs pure-f32 reference -> loosened
    # tolerance (values are O(1) after LayerNorm).
    assert jnp.max(jnp.abs(out - ref)) < 8e-2, "mismatch vs reference"

    print("KERNEL_OK")
</pallas_src>

<mosaic_0001>
module attributes {stable_mosaic.version = 11 : i64} {
  func.func @gmm_block_kernel(%arg0: i32, %arg1: memref<1x8x32xf32, #tpu.memory_space<vmem>>, %arg2: memref<1x1x8xf32, #tpu.memory_space<vmem>>, %arg3: memref<4x32x96xbf16, #tpu.memory_space<vmem>>, %arg4: memref<4x1x96xf32, #tpu.memory_space<vmem>>, %arg5: memref<4x32x32xbf16, #tpu.memory_space<vmem>>, %arg6: memref<4x1x32xf32, #tpu.memory_space<vmem>>, %arg7: memref<4x1x32xf32, #tpu.memory_space<vmem>>, %arg8: memref<4x1x32xf32, #tpu.memory_space<vmem>>, %arg9: memref<1x8x32xf32, #tpu.memory_space<vmem>>) attributes {dimension_semantics = [#tpu.dimension_semantics<parallel>], iteration_bounds = array<i64: 2>, scalar_prefetch = 0 : i64, scratch_operands = 0 : i64, tpu.core_type = #tpu.core_type<tc>, window_params = [{transform_indices = @transform_0, window_bounds = array<i64: 1, 8, 32>}, {transform_indices = @transform_1, window_bounds = array<i64: 1, 1, 8>}, {pipeline_mode = #tpu.pipeline_mode<synchronous>, transform_indices = @transform_2, window_bounds = array<i64: 4, 32, 96>}, {pipeline_mode = #tpu.pipeline_mode<synchronous>, transform_indices = @transform_3, window_bounds = array<i64: 4, 1, 96>}, {pipeline_mode = #tpu.pipeline_mode<synchronous>, transform_indices = @transform_4, window_bounds = array<i64: 4, 32, 32>}, {pipeline_mode = #tpu.pipeline_mode<synchronous>, transform_indices = @transform_5, window_bounds = array<i64: 4, 1, 32>}, {pipeline_mode = #tpu.pipeline_mode<synchronous>, transform_indices = @transform_6, window_bounds = array<i64: 4, 1, 32>}, {pipeline_mode = #tpu.pipeline_mode<synchronous>, transform_indices = @transform_7, window_bounds = array<i64: 4, 1, 32>}, {transform_indices = @transform_8, window_bounds = array<i64: 1, 8, 32>}]} {
    %c0 = arith.constant 0 : index
    %c0_0 = arith.constant 0 : index
    %c0_1 = arith.constant 0 : index
    %0 = vector.load %arg1[%c0, %c0_0, %c0_1] : memref<1x8x32xf32, #tpu.memory_space<vmem>>, vector<1x8x32xf32>
    %1 = vector.shape_cast %0 : vector<1x8x32xf32> to vector<8x32xf32>
    %2 = arith.truncf %1 : vector<8x32xf32> to vector<8x32xbf16>
    %c0_2 = arith.constant 0 : index
    %c0_3 = arith.constant 0 : index
    %c0_4 = arith.constant 0 : index
    %3 = vector.load %arg2[%c0_2, %c0_3, %c0_4] : memref<1x1x8xf32, #tpu.memory_space<vmem>>, vector<1x1x8xf32>
    %4 = vector.shape_cast %3 : vector<1x1x8xf32> to vector<1x8xf32>
    %cst = arith.constant 1.000000e+00 : f32
    %5 = vector.broadcast %cst : f32 to vector<1x8xf32>
    %6 = arith.subf %5, %4 : vector<1x8xf32>
    %cst_5 = arith.constant -1.000000e+04 : f32
    %7 = vector.broadcast %cst_5 : f32 to vector<1x8xf32>
    %8 = arith.mulf %6, %7 : vector<1x8xf32>
    %cst_6 = arith.constant 0.000000e+00 : f32
    %9 = vector.broadcast %cst_6 : f32 to vector<8x32xf32>
    %c0_7 = arith.constant 0 : index
    %c0_8 = arith.constant 0 : index
    %c0_9 = arith.constant 0 : index
    %10 = vector.load %arg3[%c0_7, %c0_8, %c0_9] : memref<4x32x96xbf16, #tpu.memory_space<vmem>>, vector<1x32x96xbf16>
    %11 = vector.shape_cast %10 : vector<1x32x96xbf16> to vector<32x96xbf16>
    %c0_10 = arith.constant 0 : index
    %c0_11 = arith.constant 0 : index
    %c0_12 = arith.constant 0 : index
    %12 = vector.load %arg4[%c0_10, %c0_11, %c0_12] : memref<4x1x96xf32, #tpu.memory_space<vmem>>, vector<1x1x96xf32>
    %13 = vector.shape_cast %12 : vector<1x1x96xf32> to vector<96xf32>
    %c0_13 = arith.constant 0 : index
    %c0_14 = arith.constant 0 : index
    %c0_15 = arith.constant 0 : index
    %14 = vector.load %arg5[%c0_13, %c0_14, %c0_15] : memref<4x32x32xbf16, #tpu.memory_space<vmem>>, vector<1x32x32xbf16>
    %15 = vector.shape_cast %14 : vector<1x32x32xbf16> to vector<32x32xbf16>
    %c0_16 = arith.constant 0 : index
    %c0_17 = arith.constant 0 : index
    %c0_18 = arith.constant 0 : index
    %16 = vector.load %arg6[%c0_16, %c0_17, %c0_18] : memref<4x1x32xf32, #tpu.memory_space<vmem>>, vector<1x1x32xf32>
    %17 = vector.shape_cast %16 : vector<1x1x32xf32> to vector<32xf32>
    %c0_19 = arith.constant 0 : index
    %c0_20 = arith.constant 0 : index
    %c0_21 = arith.constant 0 : index
    %18 = vector.load %arg7[%c0_19, %c0_20, %c0_21] : memref<4x1x32xf32, #tpu.memory_space<vmem>>, vector<1x1x32xf32>
    %19 = vector.shape_cast %18 : vector<1x1x32xf32> to vector<32xf32>
    %c0_22 = arith.constant 0 : index
    %c0_23 = arith.constant 0 : index
    %c0_24 = arith.constant 0 : index
    %20 = vector.load %arg8[%c0_22, %c0_23, %c0_24] : memref<4x1x32xf32, #tpu.memory_space<vmem>>, vector<1x1x32xf32>
    %21 = vector.shape_cast %20 : vector<1x1x32xf32> to vector<32xf32>
    %cst_25 = arith.constant dense<0.000000e+00> : vector<8x96xf32>
    %22 = tpu.matmul %2, %11, %cst_25 {dimension_numbers = #tpu.dot_dimension_numbers<[1], [0], [0], [1], [0, 0, 1, 1], [], []>} : vector<8x32xbf16>, vector<32x96xbf16>, vector<8x96xf32> -> vector<8x96xf32>
    %23 = vector.shape_cast %13 : vector<96xf32> to vector<1x96xf32>
    %24 = vector.broadcast %23 : vector<1x96xf32> to vector<8x96xf32>
    %25 = arith.addf %22, %24 : vector<8x96xf32>
    %26 = vector.extract_strided_slice %25 {offsets = [0, 0], sizes = [8, 32], strides = [1, 1]} : vector<8x96xf32> to vector<8x32xf32>
    %27 = arith.truncf %26 : vector<8x32xf32> to vector<8x32xbf16>
    %28 = vector.extract_strided_slice %25 {offsets = [0, 32], sizes = [8, 32], strides = [1, 1]} : vector<8x96xf32> to vector<8x32xf32>
    %29 = arith.truncf %28 : vector<8x32xf32> to vector<8x32xbf16>
    %30 = vector.extract_strided_slice %25 {offsets = [0, 64], sizes = [8, 32], strides = [1, 1]} : vector<8x96xf32> to vector<8x32xf32>
    %31 = arith.truncf %30 : vector<8x32xf32> to vector<8x32xbf16>
    %32 = vector.extract_strided_slice %27 {offsets = [0, 0], sizes = [8, 8], strides = [1, 1]} : vector<8x32xbf16> to vector<8x8xbf16>
    %33 = vector.extract_strided_slice %29 {offsets = [0, 0], sizes = [8, 8], strides = [1, 1]} : vector<8x32xbf16> to vector<8x8xbf16>
    %34 = vector.extract_strided_slice %31 {offsets = [0, 0], sizes = [8, 8], strides = [1, 1]} : vector<8x32xbf16> to vector<8x8xbf16>
    %cst_26 = arith.constant dense<0.000000e+00> : vector<8x8xf32>
    %35 = tpu.matmul %32, %33, %cst_26 {dimension_numbers = #tpu.dot_dimension_numbers<[1], [1], [0], [0], [0, 0, 1, 0], [], []>} : vector<8x8xbf16>, vector<8x8xbf16>, vector<8x8xf32> -> vector<8x8xf32>
    %36 = vector.broadcast %8 : vector<1x8xf32> to vector<8x8xf32>
    %37 = arith.addf %35, %36 : vector<8x8xf32>
    %cst_27 = arith.constant dense<0xFF800000> : vector<8xf32>
    %38 = vector.multi_reduction <maximumf>, %37, %cst_27 [1] : vector<8x8xf32> to vector<8xf32>
    %39 = vector.shape_cast %38 : vector<8xf32> to vector<8x1xf32>
    %40 = vector.broadcast %39 : vector<8x1xf32> to vector<8x8xf32>
    %41 = arith.subf %37, %40 : vector<8x8xf32>
    %42 = math.exp %41 : vector<8x8xf32>
    %cst_28 = arith.constant dense<0.000000e+00> : vector<8xf32>
    %43 = vector.multi_reduction <add>, %42, %cst_28 [1] : vector<8x8xf32> to vector<8xf32>
    %44 = vector.shape_cast %43 : vector<8xf32> to vector<8x1xf32>
    %45 = tpu.reciprocal %44 {approx = true} : vector<8x1xf32> -> vector<8x1xf32>
    %46 = vector.broadcast %45 : vector<8x1xf32> to vector<8x8xf32>
    %47 = arith.mulf %42, %46 : vector<8x8xf32>
    %48 = arith.truncf %47 : vector<8x8xf32> to vector<8x8xbf16>
    %cst_29 = arith.constant dense<0.000000e+00> : vector<8x8xf32>
    %49 = tpu.matmul %48, %34, %cst_29 {dimension_numbers = #tpu.dot_dimension_numbers<[1], [0], [0], [1], [0, 0, 1, 1], [], []>} : vector<8x8xbf16>, vector<8x8xbf16>, vector<8x8xf32> -> vector<8x8xf32>
    %50 = arith.truncf %49 : vector<8x8xf32> to vector<8x8xbf16>
    %51 = vector.extract_strided_slice %27 {offsets = [0, 8], sizes = [8, 8], strides = [1, 1]} : vector<8x32xbf16> to vector<8x8xbf16>
    %52 = vector.extract_strided_slice %29 {offsets = [0, 8], sizes = [8, 8], strides = [1, 1]} : vector<8x32xbf16> to vector<8x8xbf16>
    %53 = vector.extract_strided_slice %31 {offsets = [0, 8], sizes = [8, 8], strides = [1, 1]} : vector<8x32xbf16> to vector<8x8xbf16>
    %cst_30 = arith.constant dense<0.000000e+00> : vector<8x8xf32>
    %54 = tpu.matmul %51, %52, %cst_30 {dimension_numbers = #tpu.dot_dimension_numbers<[1], [1], [0], [0], [0, 0, 1, 0], [], []>} : vector<8x8xbf16>, vector<8x8xbf16>, vector<8x8xf32> -> vector<8x8xf32>
    %55 = vector.broadcast %8 : vector<1x8xf32> to vector<8x8xf32>
    %56 = arith.addf %54, %55 : vector<8x8xf32>
    %cst_31 = arith.constant dense<0xFF800000> : vector<8xf32>
    %57 = vector.multi_reduction <maximumf>, %56, %cst_31 [1] : vector<8x8xf32> to vector<8xf32>
    %58 = vector.shape_cast %57 : vector<8xf32> to vector<8x1xf32>
    %59 = vector.broadcast %58 : vector<8x1xf32> to vector<8x8xf32>
    %60 = arith.subf %56, %59 : vector<8x8xf32>
    %61 = math.exp %60 : vector<8x8xf32>
    %cst_32 = arith.constant dense<0.000000e+00> : vector<8xf32>
    %62 = vector.multi_reduction <add>, %61, %cst_32 [1] : vector<8x8xf32> to vector<8xf32>
    %63 = vector.shape_cast %62 : vector<8xf32> to vector<8x1xf32>
    %64 = tpu.reciprocal %63 {approx = true} : vector<8x1xf32> -> vector<8x1xf32>
    %65 = vector.broadcast %64 : vector<8x1xf32> to vector<8x8xf32>
    %66 = arith.mulf %61, %65 : vector<8x8xf32>
    %67 = arith.truncf %66 : vector<8x8xf32> to vector<8x8xbf16>
    %cst_33 = arith.constant dense<0.000000e+00> : vector<8x8xf32>
    %68 = tpu.matmul %67, %53, %cst_33 {dimension_numbers = #tpu.dot_dimension_numbers<[1], [0], [0], [1], [0, 0, 1, 1], [], []>} : vector<8x8xbf16>, vector<8x8xbf16>, vector<8x8xf32> -> vector<8x8xf32>
    %69 = arith.truncf %68 : vector<8x8xf32> to vector<8x8xbf16>
    %70 = vector.extract_strided_slice %27 {offsets = [0, 16], sizes = [8, 8], strides = [1, 1]} : vector<8x32xbf16> to vector<8x8xbf16>
    %71 = vector.extract_strided_slice %29 {offsets = [0, 16], sizes = [8, 8], strides = [1, 1]} : vector<8x32xbf16> to vector<8x8xbf16>
    %72 = vector.extract_strided_slice %31 {offsets = [0, 16], sizes = [8, 8], strides = [1, 1]} : vector<8x32xbf16> to vector<8x8xbf16>
    %cst_34 = arith.constant dense<0.000000e+00> : vector<8x8xf32>
    %73 = tpu.matmul %70, %71, %cst_34 {dimension_numbers = #tpu.dot_dimension_numbers<[1], [1], [0], [0], [0, 0, 1, 0], [], []>} : vector<8x8xbf16>, vector<8x8xbf16>, vector<8x8xf32> -> vector<8x8xf32>
    %74 = vector.broadcast %8 : vector<1x8xf32> to vector<8x8xf32>
    %75 = arith.addf %73, %74 : vector<8x8xf32>
    %cst_35 = arith.constant dense<0xFF800000> : vector<8xf32>
    %76 = vector.multi_reduction <maximumf>, %75, %cst_35 [1] : vector<8x8xf32> to vector<8xf32>
    %77 = vector.shape_cast %76 : vector<8xf32> to vector<8x1xf32>
    %78 = vector.broadcast %77 : vector<8x1xf32> to vector<8x8xf32>
    %79 = arith.subf %75, %78 : vector<8x8xf32>
    %80 = math.exp %79 : vector<8x8xf32>
    %cst_36 = arith.constant dense<0.000000e+00> : vector<8xf32>
    %81 = vector.multi_reduction <add>, %80, %cst_36 [1] : vector<8x8xf32> to vector<8xf32>
    %82 = vector.shape_cast %81 : vector<8xf32> to vector<8x1xf32>
    %83 = tpu.reciprocal %82 {approx = true} : vector<8x1xf32> -> vector<8x1xf32>
    %84 = vector.broadcast %83 : vector<8x1xf32> to vector<8x8xf32>
    %85 = arith.mulf %80, %84 : vector<8x8xf32>
    %86 = arith.truncf %85 : vector<8x8xf32> to vector<8x8xbf16>
    %cst_37 = arith.constant dense<0.000000e+00> : vector<8x8xf32>
    %87 = tpu.matmul %86, %72, %cst_37 {dimension_numbers = #tpu.dot_dimension_numbers<[1], [0], [0], [1], [0, 0, 1, 1], [], []>} : vector<8x8xbf16>, vector<8x8xbf16>, vector<8x8xf32> -> vector<8x8xf32>
    %88 = arith.truncf %87 : vector<8x8xf32> to vector<8x8xbf16>
    %89 = vector.extract_strided_slice %27 {offsets = [0, 24], sizes = [8, 8], strides = [1, 1]} : vector<8x32xbf16> to vector<8x8xbf16>
    %90 = vector.extract_strided_slice %29 {offsets = [0, 24], sizes = [8, 8], strides = [1, 1]} : vector<8x32xbf16> to vector<8x8xbf16>
    %91 = vector.extract_strided_slice %31 {offsets = [0, 24], sizes = [8, 8], strides = [1, 1]} : vector<8x32xbf16> to vector<8x8xbf16>
    %cst_38 = arith.constant dense<0.000000e+00> : vector<8x8xf32>
    %92 = tpu.matmul %89, %90, %cst_38 {dimension_numbers = #tpu.dot_dimension_numbers<[1], [1], [0], [0], [0, 0, 1, 0], [], []>} : vector<8x8xbf16>, vector<8x8xbf16>, vector<8x8xf32> -> vector<8x8xf32>
    %93 = vector.broadcast %8 : vector<1x8xf32> to vector<8x8xf32>
    %94 = arith.addf %92, %93 : vector<8x8xf32>
    %cst_39 = arith.constant dense<0xFF800000> : vector<8xf32>
    %95 = vector.multi_reduction <maximumf>, %94, %cst_39 [1] : vector<8x8xf32> to vector<8xf32>
    %96 = vector.shape_cast %95 : vector<8xf32> to vector<8x1xf32>
    %97 = vector.broadcast %96 : vector<8x1xf32> to vector<8x8xf32>
    %98 = arith.subf %94, %97 : vector<8x8xf32>
    %99 = math.exp %98 : vector<8x8xf32>
    %cst_40 = arith.constant dense<0.000000e+00> : vector<8xf32>
    %100 = vector.multi_reduction <add>, %99, %cst_40 [1] : vector<8x8xf32> to vector<8xf32>
    %101 = vector.shape_cast %100 : vector<8xf32> to vector<8x1xf32>
    %102 = tpu.reciprocal %101 {approx = true} : vector<8x1xf32> -> vector<8x1xf32>
    %103 = vector.broadcast %102 : vector<8x1xf32> to vector<8x8xf32>
    %104 = arith.mulf %99, %103 : vector<8x8xf32>
    %105 = arith.truncf %104 : vector<8x8xf32> to vector<8x8xbf16>
    %cst_41 = arith.constant dense<0.000000e+00> : vector<8x8xf32>
    %106 = tpu.matmul %105, %91, %cst_41 {dimension_numbers = #tpu.dot_dimension_numbers<[1], [0], [0], [1], [0, 0, 1, 1], [], []>} : vector<8x8xbf16>, vector<8x8xbf16>, vector<8x8xf32> -> vector<8x8xf32>
    %107 = arith.truncf %106 : vector<8x8xf32> to vector<8x8xbf16>
    %108 = tpu.concatenate %50, %69, %88, %107 in 1 : vector<8x8xbf16>, vector<8x8xbf16>, vector<8x8xbf16>, vector<8x8xbf16> -> vector<8x32xbf16>
    %cst_42 = arith.constant dense<0.000000e+00> : vector<8x32xf32>
    %109 = tpu.matmul %108, %15, %cst_42 {dimension_numbers = #tpu.dot_dimension_numbers<[1], [0], [0], [1], [0, 0, 1, 1], [], []>} : vector<8x32xbf16>, vector<32x32xbf16>, vector<8x32xf32> -> vector<8x32xf32>
    %110 = vector.shape_cast %17 : vector<32xf32> to vector<1x32xf32>
    %111 = vector.broadcast %110 : vector<1x32xf32> to vector<8x32xf32>
    %112 = arith.addf %109, %111 : vector<8x32xf32>
    %113 = arith.addf %112, %1 : vector<8x32xf32>
    %cst_43 = arith.constant dense<0.000000e+00> : vector<8xf32>
    %114 = vector.multi_reduction <add>, %113, %cst_43 [1] : vector<8x32xf32> to vector<8xf32>
    %115 = vector.shape_cast %114 : vector<8xf32> to vector<8x1xf32>
    %cst_44 = arith.constant 3.200000e+01 : f32
    %116 = vector.broadcast %cst_44 : f32 to vector<8x1xf32>
    %117 = arith.divf %115, %116 : vector<8x1xf32>
    %118 = vector.broadcast %117 : vector<8x1xf32> to vector<8x32xf32>
    %119 = arith.subf %113, %118 : vector<8x32xf32>
    %120 = arith.mulf %119, %119 : vector<8x32xf32>
    %cst_45 = arith.constant dense<0.000000e+00> : vector<8xf32>
    %121 = vector.multi_reduction <add>, %120, %cst_45 [1] : vector<8x32xf32> to vector<8xf32>
    %122 = vector.shape_cast %121 : vector<8xf32> to vector<8x1xf32>
    %cst_46 = arith.constant 3.200000e+01 : f32
    %123 = vector.broadcast %cst_46 : f32 to vector<8x1xf32>
    %124 = arith.divf %122, %123 : vector<8x1xf32>
    %125 = vector.broadcast %117 : vector<8x1xf32> to vector<8x32xf32>
    %126 = arith.subf %113, %125 : vector<8x32xf32>
    %cst_47 = arith.constant 9.99999974E-6 : f32
    %127 = vector.broadcast %cst_47 : f32 to vector<8x1xf32>
    %128 = arith.addf %124, %127 : vector<8x1xf32>
    %129 = math.rsqrt %128 : vector<8x1xf32>
    %130 = vector.broadcast %129 : vector<8x1xf32> to vector<8x32xf32>
    %131 = arith.mulf %126, %130 : vector<8x32xf32>
    %132 = vector.shape_cast %19 : vector<32xf32> to vector<1x32xf32>
    %133 = vector.broadcast %132 : vector<1x32xf32> to vector<8x32xf32>
    %134 = arith.mulf %131, %133 : vector<8x32xf32>
    %135 = vector.shape_cast %21 : vector<32xf32> to vector<1x32xf32>
    %136 = vector.broadcast %135 : vector<1x32xf32> to vector<8x32xf32>
    %137 = arith.addf %134, %136 : vector<8x32xf32>
    %138 = arith.addf %9, %137 : vector<8x32xf32>
    %c1 = arith.constant 1 : index
    %c0_48 = arith.constant 0 : index
    %c0_49 = arith.constant 0 : index
    %139 = vector.load %arg3[%c1, %c0_48, %c0_49] : memref<4x32x96xbf16, #tpu.memory_space<vmem>>, vector<1x32x96xbf16>
    %140 = vector.shape_cast %139 : vector<1x32x96xbf16> to vector<32x96xbf16>
    %c1_50 = arith.constant 1 : index
    %c0_51 = arith.constant 0 : index
    %c0_52 = arith.constant 0 : index
    %141 = vector.load %arg4[%c1_50, %c0_51, %c0_52] : memref<4x1x96xf32, #tpu.memory_space<vmem>>, vector<1x1x96xf32>
    %142 = vector.shape_cast %141 : vector<1x1x96xf32> to vector<96xf32>
    %c1_53 = arith.constant 1 : index
    %c0_54 = arith.constant 0 : index
    %c0_55 = arith.constant 0 : index
    %143 = vector.load %arg5[%c1_53, %c0_54, %c0_55] : memref<4x32x32xbf16, #tpu.memory_space<vmem>>, vector<1x32x32xbf16>
    %144 = vector.shape_cast %143 : vector<1x32x32xbf16> to vector<32x32xbf16>
    %c1_56 = arith.constant 1 : index
    %c0_57 = arith.constant 0 : index
    %c0_58 = arith.constant 0 : index
    %145 = vector.load %arg6[%c1_56, %c0_57, %c0_58] : memref<4x1x32xf32, #tpu.memory_space<vmem>>, vector<1x1x32xf32>
    %146 = vector.shape_cast %145 : vector<1x1x32xf32> to vector<32xf32>
    %c1_59 = arith.constant 1 : index
    %c0_60 = arith.constant 0 : index
    %c0_61 = arith.constant 0 : index
    %147 = vector.load %arg7[%c1_59, %c0_60, %c0_61] : memref<4x1x32xf32, #tpu.memory_space<vmem>>, vector<1x1x32xf32>
    %148 = vector.shape_cast %147 : vector<1x1x32xf32> to vector<32xf32>
    %c1_62 = arith.constant 1 : index
    %c0_63 = arith.constant 0 : index
    %c0_64 = arith.constant 0 : index
    %149 = vector.load %arg8[%c1_62, %c0_63, %c0_64] : memref<4x1x32xf32, #tpu.memory_space<vmem>>, vector<1x1x32xf32>
    %150 = vector.shape_cast %149 : vector<1x1x32xf32> to vector<32xf32>
    %cst_65 = arith.constant dense<0.000000e+00> : vector<8x96xf32>
    %151 = tpu.matmul %2, %140, %cst_65 {dimension_numbers = #tpu.dot_dimension_numbers<[1], [0], [0], [1], [0, 0, 1, 1], [], []>} : vector<8x32xbf16>, vector<32x96xbf16>, vector<8x96xf32> -> vector<8x96xf32>
    %152 = vector.shape_cast %142 : vector<96xf32> to vector<1x96xf32>
    %153 = vector.broadcast %152 : vector<1x96xf32> to vector<8x96xf32>
    %154 = arith.addf %151, %153 : vector<8x96xf32>
    %155 = vector.extract_strided_slice %154 {offsets = [0, 0], sizes = [8, 32], strides = [1, 1]} : vector<8x96xf32> to vector<8x32xf32>
    %156 = arith.truncf %155 : vector<8x32xf32> to vector<8x32xbf16>
    %157 = vector.extract_strided_slice %154 {offsets = [0, 32], sizes = [8, 32], strides = [1, 1]} : vector<8x96xf32> to vector<8x32xf32>
    %158 = arith.truncf %157 : vector<8x32xf32> to vector<8x32xbf16>
    %159 = vector.extract_strided_slice %154 {offsets = [0, 64], sizes = [8, 32], strides = [1, 1]} : vector<8x96xf32> to vector<8x32xf32>
    %160 = arith.truncf %159 : vector<8x32xf32> to vector<8x32xbf16>
    %161 = vector.extract_strided_slice %156 {offsets = [0, 0], sizes = [8, 8], strides = [1, 1]} : vector<8x32xbf16> to vector<8x8xbf16>
    %162 = vector.extract_strided_slice %158 {offsets = [0, 0], sizes = [8, 8], strides = [1, 1]} : vector<8x32xbf16> to vector<8x8xbf16>
    %163 = vector.extract_strided_slice %160 {offsets = [0, 0], sizes = [8, 8], strides = [1, 1]} : vector<8x32xbf16> to vector<8x8xbf16>
    %cst_66 = arith.constant dense<0.000000e+00> : vector<8x8xf32>
    %164 = tpu.matmul %161, %162, %cst_66 {dimension_numbers = #tpu.dot_dimension_numbers<[1], [1], [0], [0], [0, 0, 1, 0], [], []>} : vector<8x8xbf16>, vector<8x8xbf16>, vector<8x8xf32> -> vector<8x8xf32>
    %165 = vector.broadcast %8 : vector<1x8xf32> to vector<8x8xf32>
    %166 = arith.addf %164, %165 : vector<8x8xf32>
    %cst_67 = arith.constant dense<0xFF800000> : vector<8xf32>
    %167 = vector.multi_reduction <maximumf>, %166, %cst_67 [1] : vector<8x8xf32> to vector<8xf32>
    %168 = vector.shape_cast %167 : vector<8xf32> to vector<8x1xf32>
    %169 = vector.broadcast %168 : vector<8x1xf32> to vector<8x8xf32>
    %170 = arith.subf %166, %169 : vector<8x8xf32>
    %171 = math.exp %170 : vector<8x8xf32>
    %cst_68 = arith.constant dense<0.000000e+00> : vector<8xf32>
    %172 = vector.multi_reduction <add>, %171, %cst_68 [1] : vector<8x8xf32> to vector<8xf32>
    %173 = vector.shape_cast %172 : vector<8xf32> to vector<8x1xf32>
    %174 = tpu.reciprocal %173 {approx = true} : vector<8x1xf32> -> vector<8x1xf32>
    %175 = vector.broadcast %174 : vector<8x1xf32> to vector<8x8xf32>
    %176 = arith.mulf %171, %175 : vector<8x8xf32>
    %177 = arith.truncf %176 : vector<8x8xf32> to vector<8x8xbf16>
    %cst_69 = arith.constant dense<0.000000e+00> : vector<8x8xf32>
    %178 = tpu.matmul %177, %163, %cst_69 {dimension_numbers = #tpu.dot_dimension_numbers<[1], [0], [0], [1], [0, 0, 1, 1], [], []>} : vector<8x8xbf16>, vector<8x8xbf16>, vector<8x8xf32> -> vector<8x8xf32>
    %179 = arith.truncf %178 : vector<8x8xf32> to vector<8x8xbf16>
    %180 = vector.extract_strided_slice %156 {offsets = [0, 8], sizes = [8, 8], strides = [1, 1]} : vector<8x32xbf16> to vector<8x8xbf16>
    %181 = vector.extract_strided_slice %158 {offsets = [0, 8], sizes = [8, 8], strides = [1, 1]} : vector<8x32xbf16> to vector<8x8xbf16>
    %182 = vector.extract_strided_slice %160 {offsets = [0, 8], sizes = [8, 8], strides = [1, 1]} : vector<8x32xbf16> to vector<8x8xbf16>
    %cst_70 = arith.constant dense<0.000000e+00> : vector<8x8xf32>
    %183 = tpu.matmul %180, %181, %cst_70 {dimension_numbers = #tpu.dot_dimension_numbers<[1], [1], [0], [0], [0, 0, 1, 0], [], []>} : vector<8x8xbf16>, vector<8x8xbf16>, vector<8x8xf32> -> vector<8x8xf32>
    %184 = vector.broadcast %8 : vector<1x8xf32> to vector<8x8xf32>
    %185 = arith.addf %183, %184 : vector<8x8xf32>
    %cst_71 = arith.constant dense<0xFF800000> : vector<8xf32>
    %186 = vector.multi_reduction <maximumf>, %185, %cst_71 [1] : vector<8x8xf32> to vector<8xf32>
    %187 = vector.shape_cast %186 : vector<8xf32> to vector<8x1xf32>
    %188 = vector.broadcast %187 : vector<8x1xf32> to vector<8x8xf32>
    %189 = arith.subf %185, %188 : vector<8x8xf32>
    %190 = math.exp %189 : vector<8x8xf32>
    %cst_72 = arith.constant dense<0.000000e+00> : vector<8xf32>
    %191 = vector.multi_reduction <add>, %190, %cst_72 [1] : vector<8x8xf32> to vector<8xf32>
    %192 = vector.shape_cast %191 : vector<8xf32> to vector<8x1xf32>
    %193 = tpu.reciprocal %192 {approx = true} : vector<8x1xf32> -> vector<8x1xf32>
    %194 = vector.broadcast %193 : vector<8x1xf32> to vector<8x8xf32>
    %195 = arith.mulf %190, %194 : vector<8x8xf32>
    %196 = arith.truncf %195 : vector<8x8xf32> to vector<8x8xbf16>
    %cst_73 = arith.constant dense<0.000000e+00> : vector<8x8xf32>
    %197 = tpu.matmul %196, %182, %cst_73 {dimension_numbers = #tpu.dot_dimension_numbers<[1], [0], [0], [1], [0, 0, 1, 1], [], []>} : vector<8x8xbf16>, vector<8x8xbf16>, vector<8x8xf32> -> vector<8x8xf32>
    %198 = arith.truncf %197 : vector<8x8xf32> to vector<8x8xbf16>
    %199 = vector.extract_strided_slice %156 {offsets = [0, 16], sizes = [8, 8], strides = [1, 1]} : vector<8x32xbf16> to vector<8x8xbf16>
    %200 = vector.extract_strided_slice %158 {offsets = [0, 16], sizes = [8, 8], strides = [1, 1]} : vector<8x32xbf16> to vector<8x8xbf16>
    %201 = vector.extract_strided_slice %160 {offsets = [0, 16], sizes = [8, 8], strides = [1, 1]} : vector<8x32xbf16> to vector<8x8xbf16>
    %cst_74 = arith.constant dense<0.000000e+00> : vector<8x8xf32>
    %202 = tpu.matmul %199, %200, %cst_74 {dimension_numbers = #tpu.dot_dimension_numbers<[1], [1], [0], [0], [0, 0, 1, 0], [], []>} : vector<8x8xbf16>, vector<8x8xbf16>, vector<8x8xf32> -> vector<8x8xf32>
    %203 = vector.broadcast %8 : vector<1x8xf32> to vector<8x8xf32>
    %204 = arith.addf %202, %203 : vector<8x8xf32>
    %cst_75 = arith.constant dense<0xFF800000> : vector<8xf32>
    %205 = vector.multi_reduction <maximumf>, %204, %cst_75 [1] : vector<8x8xf32> to vector<8xf32>
    %206 = vector.shape_cast %205 : vector<8xf32> to vector<8x1xf32>
    %207 = vector.broadcast %206 : vector<8x1xf32> to vector<8x8xf32>
    %208 = arith.subf %204, %207 : vector<8x8xf32>
    %209 = math.exp %208 : vector<8x8xf32>
    %cst_76 = arith.constant dense<0.000000e+00> : vector<8xf32>
    %210 = vector.multi_reduction <add>, %209, %cst_76 [1] : vector<8x8xf32> to vector<8xf32>
    %211 = vector.shape_cast %210 : vector<8xf32> to vector<8x1xf32>
    %212 = tpu.reciprocal %211 {approx = true} : vector<8x1xf32> -> vector<8x1xf32>
    %213 = vector.broadcast %212 : vector<8x1xf32> to vector<8x8xf32>
    %214 = arith.mulf %209, %213 : vector<8x8xf32>
    %215 = arith.truncf %214 : vector<8x8xf32> to vector<8x8xbf16>
    %cst_77 = arith.constant dense<0.000000e+00> : vector<8x8xf32>
    %216 = tpu.matmul %215, %201, %cst_77 {dimension_numbers = #tpu.dot_dimension_numbers<[1], [0], [0], [1], [0, 0, 1, 1], [], []>} : vector<8x8xbf16>, vector<8x8xbf16>, vector<8x8xf32> -> vector<8x8xf32>
    %217 = arith.truncf %216 : vector<8x8xf32> to vector<8x8xbf16>
    %218 = vector.extract_strided_slice %156 {offsets = [0, 24], sizes = [8, 8], strides = [1, 1]} : vector<8x32xbf16> to vector<8x8xbf16>
    %219 = vector.extract_strided_slice %158 {offsets = [0, 24], sizes = [8, 8], strides = [1, 1]} : vector<8x32xbf16> to vector<8x8xbf16>
    %220 = vector.extract_strided_slice %160 {offsets = [0, 24], sizes = [8, 8], strides = [1, 1]} : vector<8x32xbf16> to vector<8x8xbf16>
    %cst_78 = arith.constant dense<0.000000e+00> : vector<8x8xf32>
    %221 = tpu.matmul %218, %219, %cst_78 {dimension_numbers = #tpu.dot_dimension_numbers<[1], [1], [0], [0], [0, 0, 1, 0], [], []>} : vector<8x8xbf16>, vector<8x8xbf16>, vector<8x8xf32> -> vector<8x8xf32>
    %222 = vector.broadcast %8 : vector<1x8xf32> to vector<8x8xf32>
    %223 = arith.addf %221, %222 : vector<8x8xf32>
    %cst_79 = arith.constant dense<0xFF800000> : vector<8xf32>
    %224 = vector.multi_reduction <maximumf>, %223, %cst_79 [1] : vector<8x8xf32> to vector<8xf32>
    %225 = vector.shape_cast %224 : vector<8xf32> to vector<8x1xf32>
    %226 = vector.broadcast %225 : vector<8x1xf32> to vector<8x8xf32>
    %227 = arith.subf %223, %226 : vector<8x8xf32>
    %228 = math.exp %227 : vector<8x8xf32>
    %cst_80 = arith.constant dense<0.000000e+00> : vector<8xf32>
    %229 = vector.multi_reduction <add>, %228, %cst_80 [1] : vector<8x8xf32> to vector<8xf32>
    %230 = vector.shape_cast %229 : vector<8xf32> to vector<8x1xf32>
    %231 = tpu.reciprocal %230 {approx = true} : vector<8x1xf32> -> vector<8x1xf32>
    %232 = vector.broadcast %231 : vector<8x1xf32> to vector<8x8xf32>
    %233 = arith.mulf %228, %232 : vector<8x8xf32>
    %234 = arith.truncf %233 : vector<8x8xf32> to vector<8x8xbf16>
    %cst_81 = arith.constant dense<0.000000e+00> : vector<8x8xf32>
    %235 = tpu.matmul %234, %220, %cst_81 {dimension_numbers = #tpu.dot_dimension_numbers<[1], [0], [0], [1], [0, 0, 1, 1], [], []>} : vector<8x8xbf16>, vector<8x8xbf16>, vector<8x8xf32> -> vector<8x8xf32>
    %236 = arith.truncf %235 : vector<8x8xf32> to vector<8x8xbf16>
    %237 = tpu.concatenate %179, %198, %217, %236 in 1 : vector<8x8xbf16>, vector<8x8xbf16>, vector<8x8xbf16>, vector<8x8xbf16> -> vector<8x32xbf16>
    %cst_82 = arith.constant dense<0.000000e+00> : vector<8x32xf32>
    %238 = tpu.matmul %237, %144, %cst_82 {dimension_numbers = #tpu.dot_dimension_numbers<[1], [0], [0], [1], [0, 0, 1, 1], [], []>} : vector<8x32xbf16>, vector<32x32xbf16>, vector<8x32xf32> -> vector<8x32xf32>
    %239 = vector.shape_cast %146 : vector<32xf32> to vector<1x32xf32>
    %240 = vector.broadcast %239 : vector<1x32xf32> to vector<8x32xf32>
    %241 = arith.addf %238, %240 : vector<8x32xf32>
    %242 = arith.addf %241, %1 : vector<8x32xf32>
    %cst_83 = arith.constant dense<0.000000e+00> : vector<8xf32>
    %243 = vector.multi_reduction <add>, %242, %cst_83 [1] : vector<8x32xf32> to vector<8xf32>
    %244 = vector.shape_cast %243 : vector<8xf32> to vector<8x1xf32>
    %cst_84 = arith.constant 3.200000e+01 : f32
    %245 = vector.broadcast %cst_84 : f32 to vector<8x1xf32>
    %246 = arith.divf %244, %245 : vector<8x1xf32>
    %247 = vector.broadcast %246 : vector<8x1xf32> to vector<8x32xf32>
    %248 = arith.subf %242, %247 : vector<8x32xf32>
    %249 = arith.mulf %248, %248 : vector<8x32xf32>
    %cst_85 = arith.constant dense<0.000000e+00> : vector<8xf32>
    %250 = vector.multi_reduction <add>, %249, %cst_85 [1] : vector<8x32xf32> to vector<8xf32>
    %251 = vector.shape_cast %250 : vector<8xf32> to vector<8x1xf32>
    %cst_86 = arith.constant 3.200000e+01 : f32
    %252 = vector.broadcast %cst_86 : f32 to vector<8x1xf32>
    %253 = arith.divf %251, %252 : vector<8x1xf32>
    %254 = vector.broadcast %246 : vector<8x1xf32> to vector<8x32xf32>
    %255 = arith.subf %242, %254 : vector<8x32xf32>
    %cst_87 = arith.constant 9.99999974E-6 : f32
    %256 = vector.broadcast %cst_87 : f32 to vector<8x1xf32>
    %257 = arith.addf %253, %256 : vector<8x1xf32>
    %258 = math.rsqrt %257 : vector<8x1xf32>
    %259 = vector.broadcast %258 : vector<8x1xf32> to vector<8x32xf32>
    %260 = arith.mulf %255, %259 : vector<8x32xf32>
    %261 = vector.shape_cast %148 : vector<32xf32> to vector<1x32xf32>
    %262 = vector.broadcast %261 : vector<1x32xf32> to vector<8x32xf32>
    %263 = arith.mulf %260, %262 : vector<8x32xf32>
    %264 = vector.shape_cast %150 : vector<32xf32> to vector<1x32xf32>
    %265 = vector.broadcast %264 : vector<1x32xf32> to vector<8x32xf32>
    %266 = arith.addf %263, %265 : vector<8x32xf32>
    %267 = arith.addf %138, %266 : vector<8x32xf32>
    %c2 = arith.constant 2 : index
    %c0_88 = arith.constant 0 : index
    %c0_89 = arith.constant 0 : index
    %268 = vector.load %arg3[%c2, %c0_88, %c0_89] : memref<4x32x96xbf16, #tpu.memory_space<vmem>>, vector<1x32x96xbf16>
    %269 = vector.shape_cast %268 : vector<1x32x96xbf16> to vector<32x96xbf16>
    %c2_90 = arith.constant 2 : index
    %c0_91 = arith.constant 0 : index
    %c0_92 = arith.constant 0 : index
    %270 = vector.load %arg4[%c2_90, %c0_91, %c0_92] : memref<4x1x96xf32, #tpu.memory_space<vmem>>, vector<1x1x96xf32>
    %271 = vector.shape_cast %270 : vector<1x1x96xf32> to vector<96xf32>
    %c2_93 = arith.constant 2 : index
    %c0_94 = arith.constant 0 : index
    %c0_95 = arith.constant 0 : index
    %272 = vector.load %arg5[%c2_93, %c0_94, %c0_95] : memref<4x32x32xbf16, #tpu.memory_space<vmem>>, vector<1x32x32xbf16>
    %273 = vector.shape_cast %272 : vector<1x32x32xbf16> to vector<32x32xbf16>
    %c2_96 = arith.constant 2 : index
    %c0_97 = arith.constant 0 : index
    %c0_98 = arith.constant 0 : index
    %274 = vector.load %arg6[%c2_96, %c0_97, %c0_98] : memref<4x1x32xf32, #tpu.memory_space<vmem>>, vector<1x1x32xf32>
    %275 = vector.shape_cast %274 : vector<1x1x32xf32> to vector<32xf32>
    %c2_99 = arith.constant 2 : index
    %c0_100 = arith.constant 0 : index
    %c0_101 = arith.constant 0 : index
    %276 = vector.load %arg7[%c2_99, %c0_100, %c0_101] : memref<4x1x32xf32, #tpu.memory_space<vmem>>, vector<1x1x32xf32>
    %277 = vector.shape_cast %276 : vector<1x1x32xf32> to vector<32xf32>
    %c2_102 = arith.constant 2 : index
    %c0_103 = arith.constant 0 : index
    %c0_104 = arith.constant 0 : index
    %278 = vector.load %arg8[%c2_102, %c0_103, %c0_104] : memref<4x1x32xf32, #tpu.memory_space<vmem>>, vector<1x1x32xf32>
    %279 = vector.shape_cast %278 : vector<1x1x32xf32> to vector<32xf32>
    %cst_105 = arith.constant dense<0.000000e+00> : vector<8x96xf32>
    %280 = tpu.matmul %2, %269, %cst_105 {dimension_numbers = #tpu.dot_dimension_numbers<[1], [0], [0], [1], [0, 0, 1, 1], [], []>} : vector<8x32xbf16>, vector<32x96xbf16>, vector<8x96xf32> -> vector<8x96xf32>
    %281 = vector.shape_cast %271 : vector<96xf32> to vector<1x96xf32>
    %282 = vector.broadcast %281 : vector<1x96xf32> to vector<8x96xf32>
    %283 = arith.addf %280, %282 : vector<8x96xf32>
    %284 = vector.extract_strided_slice %283 {offsets = [0, 0], sizes = [8, 32], strides = [1, 1]} : vector<8x96xf32> to vector<8x32xf32>
    %285 = arith.truncf %284 : vector<8x32xf32> to vector<8x32xbf16>
    %286 = vector.extract_strided_slice %283 {offsets = [0, 32], sizes = [8, 32], strides = [1, 1]} : vector<8x96xf32> to vector<8x32xf32>
    %287 = arith.truncf %286 : vector<8x32xf32> to vector<8x32xbf16>
    %288 = vector.extract_strided_slice %283 {offsets = [0, 64], sizes = [8, 32], strides = [1, 1]} : vector<8x96xf32> to vector<8x32xf32>
    %289 = arith.truncf %288 : vector<8x32xf32> to vector<8x32xbf16>
    %290 = vector.extract_strided_slice %285 {offsets = [0, 0], sizes = [8, 8], strides = [1, 1]} : vector<8x32xbf16> to vector<8x8xbf16>
    %291 = vector.extract_strided_slice %287 {offsets = [0, 0], sizes = [8, 8], strides = [1, 1]} : vector<8x32xbf16> to vector<8x8xbf16>
    %292 = vector.extract_strided_slice %289 {offsets = [0, 0], sizes = [8, 8], strides = [1, 1]} : vector<8x32xbf16> to vector<8x8xbf16>
    %cst_106 = arith.constant dense<0.000000e+00> : vector<8x8xf32>
    %293 = tpu.matmul %290, %291, %cst_106 {dimension_numbers = #tpu.dot_dimension_numbers<[1], [1], [0], [0], [0, 0, 1, 0], [], []>} : vector<8x8xbf16>, vector<8x8xbf16>, vector<8x8xf32> -> vector<8x8xf32>
    %294 = vector.broadcast %8 : vector<1x8xf32> to vector<8x8xf32>
    %295 = arith.addf %293, %294 : vector<8x8xf32>
    %cst_107 = arith.constant dense<0xFF800000> : vector<8xf32>
    %296 = vector.multi_reduction <maximumf>, %295, %cst_107 [1] : vector<8x8xf32> to vector<8xf32>
    %297 = vector.shape_cast %296 : vector<8xf32> to vector<8x1xf32>
    %298 = vector.broadcast %297 : vector<8x1xf32> to vector<8x8xf32>
    %299 = arith.subf %295, %298 : vector<8x8xf32>
    %300 = math.exp %299 : vector<8x8xf32>
    %cst_108 = arith.constant dense<0.000000e+00> : vector<8xf32>
    %301 = vector.multi_reduction <add>, %300, %cst_108 [1] : vector<8x8xf32> to vector<8xf32>
    %302 = vector.shape_cast %301 : vector<8xf32> to vector<8x1xf32>
    %303 = tpu.reciprocal %302 {approx = true} : vector<8x1xf32> -> vector<8x1xf32>
    %304 = vector.broadcast %303 : vector<8x1xf32> to vector<8x8xf32>
    %305 = arith.mulf %300, %304 : vector<8x8xf32>
    %306 = arith.truncf %305 : vector<8x8xf32> to vector<8x8xbf16>
    %cst_109 = arith.constant dense<0.000000e+00> : vector<8x8xf32>
    %307 = tpu.matmul %306, %292, %cst_109 {dimension_numbers = #tpu.dot_dimension_numbers<[1], [0], [0], [1], [0, 0, 1, 1], [], []>} : vector<8x8xbf16>, vector<8x8xbf16>, vector<8x8xf32> -> vector<8x8xf32>
    %308 = arith.truncf %307 : vector<8x8xf32> to vector<8x8xbf16>
    %309 = vector.extract_strided_slice %285 {offsets = [0, 8], sizes = [8, 8], strides = [1, 1]} : vector<8x32xbf16> to vector<8x8xbf16>
    %310 = vector.extract_strided_slice %287 {offsets = [0, 8], sizes = [8, 8], strides = [1, 1]} : vector<8x32xbf16> to vector<8x8xbf16>
    %311 = vector.extract_strided_slice %289 {offsets = [0, 8], sizes = [8, 8], strides = [1, 1]} : vector<8x32xbf16> to vector<8x8xbf16>
    %cst_110 = arith.constant dense<0.000000e+00> : vector<8x8xf32>
    %312 = tpu.matmul %309, %310, %cst_110 {dimension_numbers = #tpu.dot_dimension_numbers<[1], [1], [0], [0], [0, 0, 1, 0], [], []>} : vector<8x8xbf16>, vector<8x8xbf16>, vector<8x8xf32> -> vector<8x8xf32>
    %313 = vector.broadcast %8 : vector<1x8xf32> to vector<8x8xf32>
    %314 = arith.addf %312, %313 : vector<8x8xf32>
    %cst_111 = arith.constant dense<0xFF800000> : vector<8xf32>
    %315 = vector.multi_reduction <maximumf>, %314, %cst_111 [1] : vector<8x8xf32> to vector<8xf32>
    %316 = vector.shape_cast %315 : vector<8xf32> to vector<8x1xf32>
    %317 = vector.broadcast %316 : vector<8x1xf32> to vector<8x8xf32>
    %318 = arith.subf %314, %317 : vector<8x8xf32>
    %319 = math.exp %318 : vector<8x8xf32>
    %cst_112 = arith.constant dense<0.000000e+00> : vector<8xf32>
    %320 = vector.multi_reduction <add>, %319, %cst_112 [1] : vector<8x8xf32> to vector<8xf32>
    %321 = vector.shape_cast %320 : vector<8xf32> to vector<8x1xf32>
    %322 = tpu.reciprocal %321 {approx = true} : vector<8x1xf32> -> vector<8x1xf32>
    %323 = vector.broadcast %322 : vector<8x1xf32> to vector<8x8xf32>
    %324 = arith.mulf %319, %323 : vector<8x8xf32>
    %325 = arith.truncf %324 : vector<8x8xf32> to vector<8x8xbf16>
    %cst_113 = arith.constant dense<0.000000e+00> : vector<8x8xf32>
    %326 = tpu.matmul %325, %311, %cst_113 {dimension_numbers = #tpu.dot_dimension_numbers<[1], [0], [0], [1], [0, 0, 1, 1], [], []>} : vector<8x8xbf16>, vector<8x8xbf16>, vector<8x8xf32> -> vector<8x8xf32>
    %327 = arith.truncf %326 : vector<8x8xf32> to vector<8x8xbf16>
    %328 = vector.extract_strided_slice %285 {offsets = [0, 16], sizes = [8, 8], strides = [1, 1]} : vector<8x32xbf16> to vector<8x8xbf16>
    %329 = vector.extract_strided_slice %287 {offsets = [0, 16], sizes = [8, 8], strides = [1, 1]} : vector<8x32xbf16> to vector<8x8xbf16>
    %330 = vector.extract_strided_slice %289 {offsets = [0, 16], sizes = [8, 8], strides = [1, 1]} : vector<8x32xbf16> to vector<8x8xbf16>
    %cst_114 = arith.constant dense<0.000000e+00> : vector<8x8xf32>
    %331 = tpu.matmul %328, %329, %cst_114 {dimension_numbers = #tpu.dot_dimension_numbers<[1], [1], [0], [0], [0, 0, 1, 0], [], []>} : vector<8x8xbf16>, vector<8x8xbf16>, vector<8x8xf32> -> vector<8x8xf32>
    %332 = vector.broadcast %8 : vector<1x8xf32> to vector<8x8xf32>
    %333 = arith.addf %331, %332 : vector<8x8xf32>
    %cst_115 = arith.constant dense<0xFF800000> : vector<8xf32>
    %334 = vector.multi_reduction <maximumf>, %333, %cst_115 [1] : vector<8x8xf32> to vector<8xf32>
    %335 = vector.shape_cast %334 : vector<8xf32> to vector<8x1xf32>
    %336 = vector.broadcast %335 : vector<8x1xf32> to vector<8x8xf32>
    %337 = arith.subf %333, %336 : vector<8x8xf32>
    %338 = math.exp %337 : vector<8x8xf32>
    %cst_116 = arith.constant dense<0.000000e+00> : vector<8xf32>
    %339 = vector.multi_reduction <add>, %338, %cst_116 [1] : vector<8x8xf32> to vector<8xf32>
    %340 = vector.shape_cast %339 : vector<8xf32> to vector<8x1xf32>
    %341 = tpu.reciprocal %340 {approx = true} : vector<8x1xf32> -> vector<8x1xf32>
    %342 = vector.broadcast %341 : vector<8x1xf32> to vector<8x8xf32>
    %343 = arith.mulf %338, %342 : vector<8x8xf32>
    %344 = arith.truncf %343 : vector<8x8xf32> to vector<8x8xbf16>
    %cst_117 = arith.constant dense<0.000000e+00> : vector<8x8xf32>
    %345 = tpu.matmul %344, %330, %cst_117 {dimension_numbers = #tpu.dot_dimension_numbers<[1], [0], [0], [1], [0, 0, 1, 1], [], []>} : vector<8x8xbf16>, vector<8x8xbf16>, vector<8x8xf32> -> vector<8x8xf32>
    %346 = arith.truncf %345 : vector<8x8xf32> to vector<8x8xbf16>
    %347 = vector.extract_strided_slice %285 {offsets = [0, 24], sizes = [8, 8], strides = [1, 1]} : vector<8x32xbf16> to vector<8x8xbf16>
    %348 = vector.extract_strided_slice %287 {offsets = [0, 24], sizes = [8, 8], strides = [1, 1]} : vector<8x32xbf16> to vector<8x8xbf16>
    %349 = vector.extract_strided_slice %289 {offsets = [0, 24], sizes = [8, 8], strides = [1, 1]} : vector<8x32xbf16> to vector<8x8xbf16>
    %cst_118 = arith.constant dense<0.000000e+00> : vector<8x8xf32>
    %350 = tpu.matmul %347, %348, %cst_118 {dimension_numbers = #tpu.dot_dimension_numbers<[1], [1], [0], [0], [0, 0, 1, 0], [], []>} : vector<8x8xbf16>, vector<8x8xbf16>, vector<8x8xf32> -> vector<8x8xf32>
    %351 = vector.broadcast %8 : vector<1x8xf32> to vector<8x8xf32>
    %352 = arith.addf %350, %351 : vector<8x8xf32>
    %cst_119 = arith.constant dense<0xFF800000> : vector<8xf32>
    %353 = vector.multi_reduction <maximumf>, %352, %cst_119 [1] : vector<8x8xf32> to vector<8xf32>
    %354 = vector.shape_cast %353 : vector<8xf32> to vector<8x1xf32>
    %355 = vector.broadcast %354 : vector<8x1xf32> to vector<8x8xf32>
    %356 = arith.subf %352, %355 : vector<8x8xf32>
    %357 = math.exp %356 : vector<8x8xf32>
    %cst_120 = arith.constant dense<0.000000e+00> : vector<8xf32>
    %358 = vector.multi_reduction <add>, %357, %cst_120 [1] : vector<8x8xf32> to vector<8xf32>
    %359 = vector.shape_cast %358 : vector<8xf32> to vector<8x1xf32>
    %360 = tpu.reciprocal %359 {approx = true} : vector<8x1xf32> -> vector<8x1xf32>
    %361 = vector.broadcast %360 : vector<8x1xf32> to vector<8x8xf32>
    %362 = arith.mulf %357, %361 : vector<8x8xf32>
    %363 = arith.truncf %362 : vector<8x8xf32> to vector<8x8xbf16>
    %cst_121 = arith.constant dense<0.000000e+00> : vector<8x8xf32>
    %364 = tpu.matmul %363, %349, %cst_121 {dimension_numbers = #tpu.dot_dimension_numbers<[1], [0], [0], [1], [0, 0, 1, 1], [], []>} : vector<8x8xbf16>, vector<8x8xbf16>, vector<8x8xf32> -> vector<8x8xf32>
    %365 = arith.truncf %364 : vector<8x8xf32> to vector<8x8xbf16>
    %366 = tpu.concatenate %308, %327, %346, %365 in 1 : vector<8x8xbf16>, vector<8x8xbf16>, vector<8x8xbf16>, vector<8x8xbf16> -> vector<8x32xbf16>
    %cst_122 = arith.constant dense<0.000000e+00> : vector<8x32xf32>
    %367 = tpu.matmul %366, %273, %cst_122 {dimension_numbers = #tpu.dot_dimension_numbers<[1], [0], [0], [1], [0, 0, 1, 1], [], []>} : vector<8x32xbf16>, vector<32x32xbf16>, vector<8x32xf32> -> vector<8x32xf32>
    %368 = vector.shape_cast %275 : vector<32xf32> to vector<1x32xf32>
    %369 = vector.broadcast %368 : vector<1x32xf32> to vector<8x32xf32>
    %370 = arith.addf %367, %369 : vector<8x32xf32>
    %371 = arith.addf %370, %1 : vector<8x32xf32>
    %cst_123 = arith.constant dense<0.000000e+00> : vector<8xf32>
    %372 = vector.multi_reduction <add>, %371, %cst_123 [1] : vector<8x32xf32> to vector<8xf32>
    %373 = vector.shape_cast %372 : vector<8xf32> to vector<8x1xf32>
    %cst_124 = arith.constant 3.200000e+01 : f32
    %374 = vector.broadcast %cst_124 : f32 to vector<8x1xf32>
    %375 = arith.divf %373, %374 : vector<8x1xf32>
    %376 = vector.broadcast %375 : vector<8x1xf32> to vector<8x32xf32>
    %377 = arith.subf %371, %376 : vector<8x32xf32>
    %378 = arith.mulf %377, %377 : vector<8x32xf32>
    %cst_125 = arith.constant dense<0.000000e+00> : vector<8xf32>
    %379 = vector.multi_reduction <add>, %378, %cst_125 [1] : vector<8x32xf32> to vector<8xf32>
    %380 = vector.shape_cast %379 : vector<8xf32> to vector<8x1xf32>
    %cst_126 = arith.constant 3.200000e+01 : f32
    %381 = vector.broadcast %cst_126 : f32 to vector<8x1xf32>
    %382 = arith.divf %380, %381 : vector<8x1xf32>
    %383 = vector.broadcast %375 : vector<8x1xf32> to vector<8x32xf32>
    %384 = arith.subf %371, %383 : vector<8x32xf32>
    %cst_127 = arith.constant 9.99999974E-6 : f32
    %385 = vector.broadcast %cst_127 : f32 to vector<8x1xf32>
    %386 = arith.addf %382, %385 : vector<8x1xf32>
    %387 = math.rsqrt %386 : vector<8x1xf32>
    %388 = vector.broadcast %387 : vector<8x1xf32> to vector<8x32xf32>
    %389 = arith.mulf %384, %388 : vector<8x32xf32>
    %390 = vector.shape_cast %277 : vector<32xf32> to vector<1x32xf32>
    %391 = vector.broadcast %390 : vector<1x32xf32> to vector<8x32xf32>
    %392 = arith.mulf %389, %391 : vector<8x32xf32>
    %393 = vector.shape_cast %279 : vector<32xf32> to vector<1x32xf32>
    %394 = vector.broadcast %393 : vector<1x32xf32> to vector<8x32xf32>
    %395 = arith.addf %392, %394 : vector<8x32xf32>
    %396 = arith.addf %267, %395 : vector<8x32xf32>
    %c3 = arith.constant 3 : index
    %c0_128 = arith.constant 0 : index
    %c0_129 = arith.constant 0 : index
    %397 = vector.load %arg3[%c3, %c0_128, %c0_129] : memref<4x32x96xbf16, #tpu.memory_space<vmem>>, vector<1x32x96xbf16>
    %398 = vector.shape_cast %397 : vector<1x32x96xbf16> to vector<32x96xbf16>
    %c3_130 = arith.constant 3 : index
    %c0_131 = arith.constant 0 : index
    %c0_132 = arith.constant 0 : index
    %399 = vector.load %arg4[%c3_130, %c0_131, %c0_132] : memref<4x1x96xf32, #tpu.memory_space<vmem>>, vector<1x1x96xf32>
    %400 = vector.shape_cast %399 : vector<1x1x96xf32> to vector<96xf32>
    %c3_133 = arith.constant 3 : index
    %c0_134 = arith.constant 0 : index
    %c0_135 = arith.constant 0 : index
    %401 = vector.load %arg5[%c3_133, %c0_134, %c0_135] : memref<4x32x32xbf16, #tpu.memory_space<vmem>>, vector<1x32x32xbf16>
    %402 = vector.shape_cast %401 : vector<1x32x32xbf16> to vector<32x32xbf16>
    %c3_136 = arith.constant 3 : index
    %c0_137 = arith.constant 0 : index
    %c0_138 = arith.constant 0 : index
    %403 = vector.load %arg6[%c3_136, %c0_137, %c0_138] : memref<4x1x32xf32, #tpu.memory_space<vmem>>, vector<1x1x32xf32>
    %404 = vector.shape_cast %403 : vector<1x1x32xf32> to vector<32xf32>
    %c3_139 = arith.constant 3 : index
    %c0_140 = arith.constant 0 : index
    %c0_141 = arith.constant 0 : index
    %405 = vector.load %arg7[%c3_139, %c0_140, %c0_141] : memref<4x1x32xf32, #tpu.memory_space<vmem>>, vector<1x1x32xf32>
    %406 = vector.shape_cast %405 : vector<1x1x32xf32> to vector<32xf32>
    %c3_142 = arith.constant 3 : index
    %c0_143 = arith.constant 0 : index
    %c0_144 = arith.constant 0 : index
    %407 = vector.load %arg8[%c3_142, %c0_143, %c0_144] : memref<4x1x32xf32, #tpu.memory_space<vmem>>, vector<1x1x32xf32>
    %408 = vector.shape_cast %407 : vector<1x1x32xf32> to vector<32xf32>
    %cst_145 = arith.constant dense<0.000000e+00> : vector<8x96xf32>
    %409 = tpu.matmul %2, %398, %cst_145 {dimension_numbers = #tpu.dot_dimension_numbers<[1], [0], [0], [1], [0, 0, 1, 1], [], []>} : vector<8x32xbf16>, vector<32x96xbf16>, vector<8x96xf32> -> vector<8x96xf32>
    %410 = vector.shape_cast %400 : vector<96xf32> to vector<1x96xf32>
    %411 = vector.broadcast %410 : vector<1x96xf32> to vector<8x96xf32>
    %412 = arith.addf %409, %411 : vector<8x96xf32>
    %413 = vector.extract_strided_slice %412 {offsets = [0, 0], sizes = [8, 32], strides = [1, 1]} : vector<8x96xf32> to vector<8x32xf32>
    %414 = arith.truncf %413 : vector<8x32xf32> to vector<8x32xbf16>
    %415 = vector.extract_strided_slice %412 {offsets = [0, 32], sizes = [8, 32], strides = [1, 1]} : vector<8x96xf32> to vector<8x32xf32>
    %416 = arith.truncf %415 : vector<8x32xf32> to vector<8x32xbf16>
    %417 = vector.extract_strided_slice %412 {offsets = [0, 64], sizes = [8, 32], strides = [1, 1]} : vector<8x96xf32> to vector<8x32xf32>
    %418 = arith.truncf %417 : vector<8x32xf32> to vector<8x32xbf16>
    %419 = vector.extract_strided_slice %414 {offsets = [0, 0], sizes = [8, 8], strides = [1, 1]} : vector<8x32xbf16> to vector<8x8xbf16>
    %420 = vector.extract_strided_slice %416 {offsets = [0, 0], sizes = [8, 8], strides = [1, 1]} : vector<8x32xbf16> to vector<8x8xbf16>
    %421 = vector.extract_strided_slice %418 {offsets = [0, 0], sizes = [8, 8], strides = [1, 1]} : vector<8x32xbf16> to vector<8x8xbf16>
    %cst_146 = arith.constant dense<0.000000e+00> : vector<8x8xf32>
    %422 = tpu.matmul %419, %420, %cst_146 {dimension_numbers = #tpu.dot_dimension_numbers<[1], [1], [0], [0], [0, 0, 1, 0], [], []>} : vector<8x8xbf16>, vector<8x8xbf16>, vector<8x8xf32> -> vector<8x8xf32>
    %423 = vector.broadcast %8 : vector<1x8xf32> to vector<8x8xf32>
    %424 = arith.addf %422, %423 : vector<8x8xf32>
    %cst_147 = arith.constant dense<0xFF800000> : vector<8xf32>
    %425 = vector.multi_reduction <maximumf>, %424, %cst_147 [1] : vector<8x8xf32> to vector<8xf32>
    %426 = vector.shape_cast %425 : vector<8xf32> to vector<8x1xf32>
    %427 = vector.broadcast %426 : vector<8x1xf32> to vector<8x8xf32>
    %428 = arith.subf %424, %427 : vector<8x8xf32>
    %429 = math.exp %428 : vector<8x8xf32>
    %cst_148 = arith.constant dense<0.000000e+00> : vector<8xf32>
    %430 = vector.multi_reduction <add>, %429, %cst_148 [1] : vector<8x8xf32> to vector<8xf32>
    %431 = vector.shape_cast %430 : vector<8xf32> to vector<8x1xf32>
    %432 = tpu.reciprocal %431 {approx = true} : vector<8x1xf32> -> vector<8x1xf32>
    %433 = vector.broadcast %432 : vector<8x1xf32> to vector<8x8xf32>
    %434 = arith.mulf %429, %433 : vector<8x8xf32>
    %435 = arith.truncf %434 : vector<8x8xf32> to vector<8x8xbf16>
    %cst_149 = arith.constant dense<0.000000e+00> : vector<8x8xf32>
    %436 = tpu.matmul %435, %421, %cst_149 {dimension_numbers = #tpu.dot_dimension_numbers<[1], [0], [0], [1], [0, 0, 1, 1], [], []>} : vector<8x8xbf16>, vector<8x8xbf16>, vector<8x8xf32> -> vector<8x8xf32>
    %437 = arith.truncf %436 : vector<8x8xf32> to vector<8x8xbf16>
    %438 = vector.extract_strided_slice %414 {offsets = [0, 8], sizes = [8, 8], strides = [1, 1]} : vector<8x32xbf16> to vector<8x8xbf16>
    %439 = vector.extract_strided_slice %416 {offsets = [0, 8], sizes = [8, 8], strides = [1, 1]} : vector<8x32xbf16> to vector<8x8xbf16>
    %440 = vector.extract_strided_slice %418 {offsets = [0, 8], sizes = [8, 8], strides = [1, 1]} : vector<8x32xbf16> to vector<8x8xbf16>
    %cst_150 = arith.constant dense<0.000000e+00> : vector<8x8xf32>
    %441 = tpu.matmul %438, %439, %cst_150 {dimension_numbers = #tpu.dot_dimension_numbers<[1], [1], [0], [0], [0, 0, 1, 0], [], []>} : vector<8x8xbf16>, vector<8x8xbf16>, vector<8x8xf32> -> vector<8x8xf32>
    %442 = vector.broadcast %8 : vector<1x8xf32> to vector<8x8xf32>
    %443 = arith.addf %441, %442 : vector<8x8xf32>
    %cst_151 = arith.constant dense<0xFF800000> : vector<8xf32>
    %444 = vector.multi_reduction <maximumf>, %443, %cst_151 [1] : vector<8x8xf32> to vector<8xf32>
    %445 = vector.shape_cast %444 : vector<8xf32> to vector<8x1xf32>
    %446 = vector.broadcast %445 : vector<8x1xf32> to vector<8x8xf32>
    %447 = arith.subf %443, %446 : vector<8x8xf32>
    %448 = math.exp %447 : vector<8x8xf32>
    %cst_152 = arith.constant dense<0.000000e+00> : vector<8xf32>
    %449 = vector.multi_reduction <add>, %448, %cst_152 [1] : vector<8x8xf32> to vector<8xf32>
    %450 = vector.shape_cast %449 : vector<8xf32> to vector<8x1xf32>
    %451 = tpu.reciprocal %450 {approx = true} : vector<8x1xf32> -> vector<8x1xf32>
    %452 = vector.broadcast %451 : vector<8x1xf32> to vector<8x8xf32>
    %453 = arith.mulf %448, %452 : vector<8x8xf32>
    %454 = arith.truncf %453 : vector<8x8xf32> to vector<8x8xbf16>
    %cst_153 = arith.constant dense<0.000000e+00> : vector<8x8xf32>
    %455 = tpu.matmul %454, %440, %cst_153 {dimension_numbers = #tpu.dot_dimension_numbers<[1], [0], [0], [1], [0, 0, 1, 1], [], []>} : vector<8x8xbf16>, vector<8x8xbf16>, vector<8x8xf32> -> vector<8x8xf32>
    %456 = arith.truncf %455 : vector<8x8xf32> to vector<8x8xbf16>
    %457 = vector.extract_strided_slice %414 {offsets = [0, 16], sizes = [8, 8], strides = [1, 1]} : vector<8x32xbf16> to vector<8x8xbf16>
    %458 = vector.extract_strided_slice %416 {offsets = [0, 16], sizes = [8, 8], strides = [1, 1]} : vector<8x32xbf16> to vector<8x8xbf16>
    %459 = vector.extract_strided_slice %418 {offsets = [0, 16], sizes = [8, 8], strides = [1, 1]} : vector<8x32xbf16> to vector<8x8xbf16>
    %cst_154 = arith.constant dense<0.000000e+00> : vector<8x8xf32>
    %460 = tpu.matmul %457, %458, %cst_154 {dimension_numbers = #tpu.dot_dimension_numbers<[1], [1], [0], [0], [0, 0, 1, 0], [], []>} : vector<8x8xbf16>, vector<8x8xbf16>, vector<8x8xf32> -> vector<8x8xf32>
    %461 = vector.broadcast %8 : vector<1x8xf32> to vector<8x8xf32>
    %462 = arith.addf %460, %461 : vector<8x8xf32>
    %cst_155 = arith.constant dense<0xFF800000> : vector<8xf32>
    %463 = vector.multi_reduction <maximumf>, %462, %cst_155 [1] : vector<8x8xf32> to vector<8xf32>
    %464 = vector.shape_cast %463 : vector<8xf32> to vector<8x1xf32>
    %465 = vector.broadcast %464 : vector<8x1xf32> to vector<8x8xf32>
    %466 = arith.subf %462, %465 : vector<8x8xf32>
    %467 = math.exp %466 : vector<8x8xf32>
    %cst_156 = arith.constant dense<0.000000e+00> : vector<8xf32>
    %468 = vector.multi_reduction <add>, %467, %cst_156 [1] : vector<8x8xf32> to vector<8xf32>
    %469 = vector.shape_cast %468 : vector<8xf32> to vector<8x1xf32>
    %470 = tpu.reciprocal %469 {approx = true} : vector<8x1xf32> -> vector<8x1xf32>
    %471 = vector.broadcast %470 : vector<8x1xf32> to vector<8x8xf32>
    %472 = arith.mulf %467, %471 : vector<8x8xf32>
    %473 = arith.truncf %472 : vector<8x8xf32> to vector<8x8xbf16>
    %cst_157 = arith.constant dense<0.000000e+00> : vector<8x8xf32>
    %474 = tpu.matmul %473, %459, %cst_157 {dimension_numbers = #tpu.dot_dimension_numbers<[1], [0], [0], [1], [0, 0, 1, 1], [], []>} : vector<8x8xbf16>, vector<8x8xbf16>, vector<8x8xf32> -> vector<8x8xf32>
    %475 = arith.truncf %474 : vector<8x8xf32> to vector<8x8xbf16>
    %476 = vector.extract_strided_slice %414 {offsets = [0, 24], sizes = [8, 8], strides = [1, 1]} : vector<8x32xbf16> to vector<8x8xbf16>
    %477 = vector.extract_strided_slice %416 {offsets = [0, 24], sizes = [8, 8], strides = [1, 1]} : vector<8x32xbf16> to vector<8x8xbf16>
    %478 = vector.extract_strided_slice %418 {offsets = [0, 24], sizes = [8, 8], strides = [1, 1]} : vector<8x32xbf16> to vector<8x8xbf16>
    %cst_158 = arith.constant dense<0.000000e+00> : vector<8x8xf32>
    %479 = tpu.matmul %476, %477, %cst_158 {dimension_numbers = #tpu.dot_dimension_numbers<[1], [1], [0], [0], [0, 0, 1, 0], [], []>} : vector<8x8xbf16>, vector<8x8xbf16>, vector<8x8xf32> -> vector<8x8xf32>
    %480 = vector.broadcast %8 : vector<1x8xf32> to vector<8x8xf32>
    %481 = arith.addf %479, %480 : vector<8x8xf32>
    %cst_159 = arith.constant dense<0xFF800000> : vector<8xf32>
    %482 = vector.multi_reduction <maximumf>, %481, %cst_159 [1] : vector<8x8xf32> to vector<8xf32>
    %483 = vector.shape_cast %482 : vector<8xf32> to vector<8x1xf32>
    %484 = vector.broadcast %483 : vector<8x1xf32> to vector<8x8xf32>
    %485 = arith.subf %481, %484 : vector<8x8xf32>
    %486 = math.exp %485 : vector<8x8xf32>
    %cst_160 = arith.constant dense<0.000000e+00> : vector<8xf32>
    %487 = vector.multi_reduction <add>, %486, %cst_160 [1] : vector<8x8xf32> to vector<8xf32>
    %488 = vector.shape_cast %487 : vector<8xf32> to vector<8x1xf32>
    %489 = tpu.reciprocal %488 {approx = true} : vector<8x1xf32> -> vector<8x1xf32>
    %490 = vector.broadcast %489 : vector<8x1xf32> to vector<8x8xf32>
    %491 = arith.mulf %486, %490 : vector<8x8xf32>
    %492 = arith.truncf %491 : vector<8x8xf32> to vector<8x8xbf16>
    %cst_161 = arith.constant dense<0.000000e+00> : vector<8x8xf32>
    %493 = tpu.matmul %492, %478, %cst_161 {dimension_numbers = #tpu.dot_dimension_numbers<[1], [0], [0], [1], [0, 0, 1, 1], [], []>} : vector<8x8xbf16>, vector<8x8xbf16>, vector<8x8xf32> -> vector<8x8xf32>
    %494 = arith.truncf %493 : vector<8x8xf32> to vector<8x8xbf16>
    %495 = tpu.concatenate %437, %456, %475, %494 in 1 : vector<8x8xbf16>, vector<8x8xbf16>, vector<8x8xbf16>, vector<8x8xbf16> -> vector<8x32xbf16>
    %cst_162 = arith.constant dense<0.000000e+00> : vector<8x32xf32>
    %496 = tpu.matmul %495, %402, %cst_162 {dimension_numbers = #tpu.dot_dimension_numbers<[1], [0], [0], [1], [0, 0, 1, 1], [], []>} : vector<8x32xbf16>, vector<32x32xbf16>, vector<8x32xf32> -> vector<8x32xf32>
    %497 = vector.shape_cast %404 : vector<32xf32> to vector<1x32xf32>
    %498 = vector.broadcast %497 : vector<1x32xf32> to vector<8x32xf32>
    %499 = arith.addf %496, %498 : vector<8x32xf32>
    %500 = arith.addf %499, %1 : vector<8x32xf32>
    %cst_163 = arith.constant dense<0.000000e+00> : vector<8xf32>
    %501 = vector.multi_reduction <add>, %500, %cst_163 [1] : vector<8x32xf32> to vector<8xf32>
    %502 = vector.shape_cast %501 : vector<8xf32> to vector<8x1xf32>
    %cst_164 = arith.constant 3.200000e+01 : f32
    %503 = vector.broadcast %cst_164 : f32 to vector<8x1xf32>
    %504 = arith.divf %502, %503 : vector<8x1xf32>
    %505 = vector.broadcast %504 : vector<8x1xf32> to vector<8x32xf32>
    %506 = arith.subf %500, %505 : vector<8x32xf32>
    %507 = arith.mulf %506, %506 : vector<8x32xf32>
    %cst_165 = arith.constant dense<0.000000e+00> : vector<8xf32>
    %508 = vector.multi_reduction <add>, %507, %cst_165 [1] : vector<8x32xf32> to vector<8xf32>
    %509 = vector.shape_cast %508 : vector<8xf32> to vector<8x1xf32>
    %cst_166 = arith.constant 3.200000e+01 : f32
    %510 = vector.broadcast %cst_166 : f32 to vector<8x1xf32>
    %511 = arith.divf %509, %510 : vector<8x1xf32>
    %512 = vector.broadcast %504 : vector<8x1xf32> to vector<8x32xf32>
    %513 = arith.subf %500, %512 : vector<8x32xf32>
    %cst_167 = arith.constant 9.99999974E-6 : f32
    %514 = vector.broadcast %cst_167 : f32 to vector<8x1xf32>
    %515 = arith.addf %511, %514 : vector<8x1xf32>
    %516 = math.rsqrt %515 : vector<8x1xf32>
    %517 = vector.broadcast %516 : vector<8x1xf32> to vector<8x32xf32>
    %518 = arith.mulf %513, %517 : vector<8x32xf32>
    %519 = vector.shape_cast %406 : vector<32xf32> to vector<1x32xf32>
    %520 = vector.broadcast %519 : vector<1x32xf32> to vector<8x32xf32>
    %521 = arith.mulf %518, %520 : vector<8x32xf32>
    %522 = vector.shape_cast %408 : vector<32xf32> to vector<1x32xf32>
    %523 = vector.broadcast %522 : vector<1x32xf32> to vector<8x32xf32>
    %524 = arith.addf %521, %523 : vector<8x32xf32>
    %525 = arith.addf %396, %524 : vector<8x32xf32>
    %cst_168 = arith.constant 2.500000e-01 : f32
    %526 = vector.broadcast %cst_168 : f32 to vector<8x32xf32>
    %527 = arith.mulf %525, %526 : vector<8x32xf32>
    %c0_169 = arith.constant 0 : index
    %c0_170 = arith.constant 0 : index
    %c0_171 = arith.constant 0 : index
    %528 = vector.load %arg9[%c0_169, %c0_170, %c0_171] : memref<1x8x32xf32, #tpu.memory_space<vmem>>, vector<1x8x32xf32>
    %529 = vector.shape_cast %528 : vector<1x8x32xf32> to vector<8x32xf32>
    %530 = vector.shape_cast %527 : vector<8x32xf32> to vector<1x8x32xf32>
    tpu.vector_store %arg9[%c0_169, %c0_170, %c0_171], %530 {strides = array<i32>} : memref<1x8x32xf32, #tpu.memory_space<vmem>>, vector<1x8x32xf32>,
    return
  }
  func.func @transform_0(%arg0: i32) -> (i32, i32, i32) {
    %c0_i32 = arith.constant 0 : i32
    %c0_i32_0 = arith.constant 0 : i32
    %c0_i32_1 = arith.constant 0 : i32
    return %arg0, %c0_i32, %c0_i32_0 : i32, i32, i32
  }
  func.func @transform_1(%arg0: i32) -> (i32, i32, i32) {
    %c0_i32 = arith.constant 0 : i32
    %c0_i32_0 = arith.constant 0 : i32
    %c0_i32_1 = arith.constant 0 : i32
    return %arg0, %c0_i32, %c0_i32_0 : i32, i32, i32
  }
  func.func @transform_2(%arg0: i32) -> (i32, i32, i32) {
    %c0_i32 = arith.constant 0 : i32
    %c0_i32_0 = arith.constant 0 : i32
    %c0_i32_1 = arith.constant 0 : i32
    %c0_i32_2 = arith.constant 0 : i32
    return %c0_i32, %c0_i32_0, %c0_i32_1 : i32, i32, i32
  }
  func.func @transform_3(%arg0: i32) -> (i32, i32, i32) {
    %c0_i32 = arith.constant 0 : i32
    %c0_i32_0 = arith.constant 0 : i32
    %c0_i32_1 = arith.constant 0 : i32
    %c0_i32_2 = arith.constant 0 : i32
    return %c0_i32, %c0_i32_0, %c0_i32_1 : i32, i32, i32
  }
  func.func @transform_4(%arg0: i32) -> (i32, i32, i32) {
    %c0_i32 = arith.constant 0 : i32
    %c0_i32_0 = arith.constant 0 : i32
    %c0_i32_1 = arith.constant 0 : i32
    %c0_i32_2 = arith.constant 0 : i32
    return %c0_i32, %c0_i32_0, %c0_i32_1 : i32, i32, i32
  }
  func.func @transform_5(%arg0: i32) -> (i32, i32, i32) {
    %c0_i32 = arith.constant 0 : i32
    %c0_i32_0 = arith.constant 0 : i32
    %c0_i32_1 = arith.constant 0 : i32
    %c0_i32_2 = arith.constant 0 : i32
    return %c0_i32, %c0_i32_0, %c0_i32_1 : i32, i32, i32
  }
  func.func @transform_6(%arg0: i32) -> (i32, i32, i32) {
    %c0_i32 = arith.constant 0 : i32
    %c0_i32_0 = arith.constant 0 : i32
    %c0_i32_1 = arith.constant 0 : i32
    %c0_i32_2 = arith.constant 0 : i32
    return %c0_i32, %c0_i32_0, %c0_i32_1 : i32, i32, i32
  }
  func.func @transform_7(%arg0: i32) -> (i32, i32, i32) {
    %c0_i32 = arith.constant 0 : i32
    %c0_i32_0 = arith.constant 0 : i32
    %c0_i32_1 = arith.constant 0 : i32
    %c0_i32_2 = arith.constant 0 : i32
    return %c0_i32, %c0_i32_0, %c0_i32_1 : i32, i32, i32
  }
  func.func @transform_8(%arg0: i32) -> (i32, i32, i32) {
    %c0_i32 = arith.constant 0 : i32
    %c0_i32_0 = arith.constant 0 : i32
    %c0_i32_1 = arith.constant 0 : i32
    return %arg0, %c0_i32, %c0_i32_0 : i32, i32, i32
  }
}

</mosaic_0001>

<bundles_post_ra>
// kernel: tpu_custom_call.1
= control target key start
LH: loop header
LB: loop body
LE: loop exit
PB: predicated region body
PF: predicated region fallthrough
CT: control target
= control target key end

     0   :  { %s4957_s0 = inlined_call_operand.hbm [shape: f32[2,8,32], index: 0, kind: input, shape index: {}]   ;;  %s4958_s1 = inlined_call_operand.hbm [shape: f32[2,1,8], index: 1, kind: input, shape index: {}]   ;;  %s4959_s2 = inlined_call_operand.hbm [shape: bf16[4,32,96], index: 2, kind: input, shape index: {}]   ;;  %s4960_s3 = inlined_call_operand.hbm [shape: f32[4,1,96], index: 3, kind: input, shape index: {}]   ;;  %s4961_s4 = inlined_call_operand.hbm [shape: bf16[4,32,32], index: 4, kind: input, shape index: {}]   ;;  %s4962_s5 = inlined_call_operand.hbm [shape: f32[4,1,32], index: 5, kind: input, shape index: {}]   ;;  %s4963_s6 = inlined_call_operand.hbm [shape: f32[4,1,32], index: 6, kind: input, shape index: {}]   ;;  %s4964_s7 = inlined_call_operand.hbm [shape: f32[4,1,32], index: 7, kind: input, shape index: {}]   ;;  %s4965_s8 = inlined_call_operand.hbm [shape: f32[2,8,32], index: 8, kind: output, shape index: {}]  }
   0x1   :  { %4973 = sst [smem:[#allocation24_spill]] %s4957_s0 }
   0x2   :  { %4974 = sst [smem:[#allocation25_spill]] %s4959_s2 }
   0x3   :  { %4975 = sst [smem:[#allocation26_spill]] %s4960_s3 }
   0x4   :  { %13 = vsyncpa [#allocation3], 0 }
   0x5   :  { %15 = vsyncpa [#allocation3 + $0x1], 0 }
   0x6   :  { %16 = vsyncpa [#allocation6], 0 }
   0x7   :  { %18 = vsyncpa [#allocation6 + $0x1], 0 }
   0x8   :  { %19 = vsyncpa [#allocation9], 0 }
   0x9   :  { %20 = vsyncpa [#allocation12], 0 }
   0xa   :  { %21 = vsyncpa [#allocation15], 0 }
   0xb   :  { %22 = vsyncpa [#allocation4], 0 }
   0xc   :  { %24 = vsyncpa [#allocation4 + $0x1], 0  ;;  %s4172_s27 = smov 0   ;;  %s4174_s28 = smov 0  }
   0xd   :  { %s4176_s29 = smov 0   ;;  %s4178_s30 = smov 0  }
   0xe LB: > { %s4098_s9 = smov [#allocation7]   ;;  %s4193_s11 = sadd.s32 4294967295, %s4096_s30   ;;  %s4096_s30 = sphi %s4178_s30, %s5008_s30   ;;  %s4092_s29 = sphi %s4176_s29, %s5007_s29   ;;  %s4088_s28 = sphi %s4174_s28, %s5006_s28   ;;  %s4084_s27 = sphi %s4172_s27, %s5005_s27  }
   0xf   : > { %s251_s10 = sshll.u32 %s4098_s9, 4  ;;  %p3121_p0 = scmp.ge.s32.totalorder %s4096_s30, 1  ;;  %s4198_s10 = int_to_ptr.vmem [resolvable:$true] %s251_s10 }
  0x10   : > { %p4967_p1 = scmp.eq.s32.totalorder %s4193_s11, 0  ;;  %p239_p2 = scmp.lt.s32.totalorder %s4096_s30, 3 }
  0x11   : > { %s4099_s13 = smov [#allocation8]   ;;  %s4100_s16 = smov [#allocation11]  }
  0x12   : > { %p4200_p3 = pnand %p3121_p0, %p239_p2  ;;  %s264_s14 = sshll.u32 %s4099_s13, 4  ;;  %s4213_s14 = int_to_ptr.vmem [resolvable:$true] %s264_s14 }
  0x13   : > { %s4215_s17 = sshll.u32 %s4100_s16, 4  ;;  %s4978_s2 = sld [smem:[#allocation25_spill]]  ;;  %s291_s17 = int_to_ptr.vmem [resolvable:$true] %s4215_s17 }
  0x14   : > { %s4976_s12 = scalar_select %p4200_p3, 1, 0 }
  0x15   : > { %p3591_p5 = pneg %p4200_p3 }
  0x17   : > { %p4209_p6 = pnand %p3591_p5, %p4967_p1 }
  0x19   : > { %s3782_s20 = scalar_lea.hbm %s4978_s2, 1024  ;;  %p4225_p8 = pneg %p4209_p6 }
  0x1a   : > { %p3783_p7 = scmp.ne.s32.totalorder %s4978_s2, %s3782_s20  ;;  %p3789_p11 = scmp.lt.u32.totalorder %s3782_s20, %s4978_s2 }
  0x1c   : > { %p3785_p9 = pnand %p4225_p8, %p3783_p7 }
  0x1e   : > { %p3786_p10 = pneg %p3785_p9 }
  0x20   : > { %p3791_p12 = pnand %p3789_p11, %p3786_p10 }
  0x22   : > { %3794 = shalt.err (!%p3791_p12)
}
  0x23   : > { %s3795_s26 = scalar_lea.vmem %s4198_s10, 1024  ;;  %p3803_p5 = scmp.lt.s32.totalorder %s4198_s10, %s4198_s10 }
  0x24   : > { %p3796_p13 = scmp.ne.s32.totalorder %s4198_s10, %s3795_s26  ;;  %p3804_p4 = scmp.lt.s32.totalorder %s3795_s26, %s3795_s26 }
  0x26   : > { %p3798_p0 = pnand %p3796_p13, %p4225_p8  ;;  %p3805_p7 = por %p3804_p4, %p3803_p5 }
  0x28   : > { %p3799_p2 = pneg %p3798_p0 }
  0x2a   : > { %p3806_p9 = pnand %p3805_p7, %p3799_p2 }
  0x2c   : > { %3809 = shalt.err (!%p3806_p9)
}
  0x2d   : > { %s4966_s9 = smov 64   ;;  %s4969_s13 = smov 4  }
  0x2e   : > { %3594 = dma.hbm_to_vmem [thread:$0]  (!%p4209_p6), %s4978_s2, 1024, %s4198_s10, [#allocation6], %s4966_s9, %s4966_s9, %s4969_s13  }
  0x2f   : > { %s4980_s3 = sld [smem:[#allocation26_spill]] }
  0x35   : > { %s3810_s21 = scalar_lea.hbm %s4980_s3, 64 }
  0x36   : > { %p3811_p4 = scmp.ne.s32.totalorder %s4980_s3, %s3810_s21  ;;  %p3817_p12 = scmp.lt.u32.totalorder %s3810_s21, %s4980_s3 }
  0x38   : > { %p3813_p10 = pnand %p3811_p4, %p4225_p8 }
  0x3a   : > { %p3814_p11 = pneg %p3813_p10 }
  0x3c   : > { %p3819_p13 = pnand %p3817_p12, %p3814_p11 }
  0x3e   : > { %3822 = shalt.err (!%p3819_p13)
}
  0x3f   : > { %s3823_s10 = scalar_lea.vmem %s4213_s14, 64  ;;  %p3831_p7 = scmp.lt.s32.totalorder %s4213_s14, %s4213_s14 }
  0x40   : > { %p3824_p0 = scmp.ne.s32.totalorder %s4213_s14, %s3823_s10  ;;  %p3832_p9 = scmp.lt.s32.totalorder %s3823_s10, %s3823_s10 }
  0x42   : > { %p3826_p2 = pnand %p3824_p0, %p4225_p8  ;;  %p3833_p4 = por %p3832_p9, %p3831_p7 }
  0x44   : > { %p3827_p5 = pneg %p3826_p2 }
  0x46   : > { %p3834_p10 = pnand %p3833_p4, %p3827_p5 }
  0x48   : > { %3837 = shalt.err (!%p3834_p10)
}
  0x49   : > { %s4103_s16 = smov 16   ;;  %s4104_s18 = smov 1  }
  0x4a   : > { %3597 = dma.hbm_to_vmem [thread:$0]  (!%p4209_p6), %s4980_s3, 64, %s4213_s14, [#allocation9], %s4103_s16, %s4103_s16, %s4104_s18  }
  0x4b   : > { %s3838_s24 = scalar_lea.hbm %s4962_s5, 64 }
  0x4c   : > { %p3839_p11 = scmp.ne.s32.totalorder %s4962_s5, %s3838_s24  ;;  %p3845_p0 = scmp.lt.u32.totalorder %s3838_s24, %s4962_s5 }
  0x4e   : > { %p3841_p12 = pnand %p3839_p11, %p4225_p8 }
  0x50   : > { %p3842_p13 = pneg %p3841_p12 }
  0x52   : > { %p3847_p2 = pnand %p3845_p0, %p3842_p13 }
  0x54   : > { %3850 = shalt.err (!%p3847_p2)
}
  0x55   : > { %s3851_s19 = scalar_lea.vmem %s291_s17, 64  ;;  %p3859_p4 = scmp.lt.s32.totalorder %s291_s17, %s291_s17 }
  0x56   : > { %p3852_p5 = scmp.ne.s32.totalorder %s291_s17, %s3851_s19  ;;  %p3860_p10 = scmp.lt.s32.totalorder %s3851_s19, %s3851_s19 }
  0x58   : > { %p3854_p7 = pnand %p3852_p5, %p4225_p8  ;;  %p3861_p1 = por %p3860_p10, %p3859_p4 }
  0x5a   : > { %p3855_p9 = pneg %p3854_p7 }
  0x5c   : > { %p3862_p3 = pnand %p3861_p1, %p3855_p9 }
  0x5e   : > { %3865 = shalt.err (!%p3862_p3)
}
  0x5f   : > { %3603 = dma.hbm_to_vmem [thread:$0]  (!%p4209_p6), %s4962_s5, 64, %s291_s17, [#allocation12], %s4103_s16, %s4103_s16, %s4104_s18  }
  0x60   : > { %s4105_s20 = smov [#allocation10]   ;;  %s4106_s22 = smov [#allocation13]  }
  0x61   : > { %s277_s21 = sshll.u32 %s4105_s20, 4  ;;  %s303_s24 = sshll.u32 %s4106_s22, 4  ;;  %s278_s21 = int_to_ptr.vmem [resolvable:$true] %s277_s21  ;;  %s304_s24 = int_to_ptr.vmem [resolvable:$true] %s303_s24 }
  0x62   : > { %s3866_s10 = scalar_lea.hbm %s4961_s4, 1024 }
  0x63   : > { %p3867_p1 = scmp.ne.s32.totalorder %s4961_s4, %s3866_s10  ;;  %p3873_p12 = scmp.lt.u32.totalorder %s3866_s10, %s4961_s4 }
  0x65   : > { %p3869_p3 = pnand %p3867_p1, %p4225_p8 }
  0x67   : > { %p3870_p11 = pneg %p3869_p3 }
  0x69   : > { %p3875_p13 = pnand %p3873_p12, %p3870_p11 }
  0x6b   : > { %3878 = shalt.err (!%p3875_p13)
}
  0x6c   : > { %s3879_s17 = scalar_lea.vmem %s278_s21, 1024  ;;  %p3887_p7 = scmp.lt.s32.totalorder %s278_s21, %s278_s21 }
  0x6d   : > { %p3880_p0 = scmp.ne.s32.totalorder %s278_s21, %s3879_s17  ;;  %p3888_p9 = scmp.lt.s32.totalorder %s3879_s17, %s3879_s17 }
  0x6f   : > { %p3882_p2 = pnand %p3880_p0, %p4225_p8  ;;  %p3889_p4 = por %p3888_p9, %p3887_p7 }
  0x71   : > { %p3883_p5 = pneg %p3882_p2 }
  0x73   : > { %p3890_p10 = pnand %p3889_p4, %p3883_p5 }
  0x75   : > { %3893 = shalt.err (!%p3890_p10)
}
  0x76   : > { %s4981_s13 = smov 4   ;;  %s4982_s9 = smov 64  }
  0x77   : > { %3600 = dma.hbm_to_vmem [thread:$0]  (!%p4209_p6), %s4961_s4, 1024, %s278_s21, [#allocation9], %s4982_s9, %s4982_s9, %s4981_s13  }
  0x78   : > { %s3894_s26 = scalar_lea.hbm %s4963_s6, 64 }
  0x79   : > { %p3895_p1 = scmp.ne.s32.totalorder %s4963_s6, %s3894_s26  ;;  %p3901_p12 = scmp.lt.u32.totalorder %s3894_s26, %s4963_s6 }
  0x7b   : > { %p3897_p3 = pnand %p3895_p1, %p4225_p8 }
  0x7d   : > { %p3898_p11 = pneg %p3897_p3 }
  0x7f   : > { %p3903_p13 = pnand %p3901_p12, %p3898_p11 }
  0x81   : > { %3906 = shalt.err (!%p3903_p13)
}
  0x82   : > { %s3907_s2 = scalar_lea.vmem %s304_s24, 64  ;;  %p3915_p7 = scmp.lt.s32.totalorder %s304_s24, %s304_s24 }
  0x83   : > { %p3908_p0 = scmp.ne.s32.totalorder %s304_s24, %s3907_s2  ;;  %p3916_p9 = scmp.lt.s32.totalorder %s3907_s2, %s3907_s2 }
  0x85   : > { %p3910_p2 = pnand %p3908_p0, %p4225_p8  ;;  %p3917_p4 = por %p3916_p9, %p3915_p7 }
  0x87   : > { %p3911_p5 = pneg %p3910_p2 }
  0x89   : > { %p3918_p10 = pnand %p3917_p4, %p3911_p5 }
  0x8b   : > { %3921 = shalt.err (!%p3918_p10)
}
  0x8c   : > { %3606 = dma.hbm_to_vmem [thread:$0]  (!%p4209_p6), %s4963_s6, 64, %s304_s24, [#allocation12], %s4103_s16, %s4103_s16, %s4104_s18  }
  0x8d   : > { %s4107_s9 = smov [#allocation14]   ;;  %s3922_s26 = scalar_lea.hbm %s4964_s7, 64 }
  0x8e   : > { %s316_s20 = sshll.u32 %s4107_s9, 4  ;;  %p3923_p1 = scmp.ne.s32.totalorder %s4964_s7, %s3922_s26  ;;  %s317_s20 = int_to_ptr.vmem [resolvable:$true] %s316_s20 }
  0x8f   : > { %p3929_p12 = scmp.lt.u32.totalorder %s3922_s26, %s4964_s7 }
  0x90   : > { %p3925_p3 = pnand %p3923_p1, %p4225_p8 }
  0x92   : > { %p3926_p11 = pneg %p3925_p3 }
  0x94   : > { %p3931_p13 = pnand %p3929_p12, %p3926_p11 }
  0x96   : > { %3934 = shalt.err (!%p3931_p13)
}
  0x97   : > { %s3935_s24 = scalar_lea.vmem %s317_s20, 64  ;;  %p3943_p7 = scmp.lt.s32.totalorder %s317_s20, %s317_s20 }
  0x98   : > { %p3936_p0 = scmp.ne.s32.totalorder %s317_s20, %s3935_s24  ;;  %p3944_p9 = scmp.lt.s32.totalorder %s3935_s24, %s3935_s24 }
  0x9a   : > { %p3938_p2 = pnand %p3936_p0, %p4225_p8  ;;  %p3945_p4 = por %p3944_p9, %p3943_p7 }
  0x9c   : > { %p3939_p5 = pneg %p3938_p2 }
  0x9e   : > { %p3946_p10 = pnand %p3945_p4, %p3939_p5 }
  0xa0   : > { %3949 = shalt.err (!%p3946_p10)
}
  0xa1   : > { %3609 = dma.hbm_to_vmem [thread:$0]  (!%p4209_p6), %s4964_s7, 64, %s317_s20, [#allocation15], %s4103_s16, %s4103_s16, %s4104_s18  }
  0xa2   : > { %s3120_s15 = sadd.s32 4294967294, %s4096_s30   ;;  %s4362_s23 = sadd.s32 1, %s4096_s30  }
  0xa3   : > { %s34_s13 = ssub.s32 %s4096_s30, %s4362_s23  ;;  %s37_s9 = sadd.s32 1, %s4092_s29 }
  0xa4   : > { %p35_p8 = scmp.eq.s32.totalorder %s34_s13, 0  ;;  %p44_p1 = scmp.ne.s32.totalorder %s4092_s29, %s4088_s28 }
  0xa5   : > { %p45_p3 = scmp.eq.s32.totalorder %s4096_s30, 0  ;;  %p50_p11 = scmp.ne.s32.totalorder %s4088_s28, %s4084_s27 }
  0xa6   : > { %s4373_s22 = scalar_select %p35_p8, %s4092_s29, %s37_s9  }
  0xa7   : > { %p4375_p12 = por %p45_p3, %p44_p1  ;;  %p4984_p13 = scmp.eq.s32.totalorder %s4193_s11, 0 }
  0xa8   : > { %p226_p0 = scmp.eq.s32.totalorder %s4193_s11, 1  ;;  %p232_p2 = scmp.eq.s32.totalorder %s3120_s15, 1 }
  0xa9   : > { %p4381_p6 = por %p4984_p13, %p50_p11  ;;  %p3627_p5 = scmp.lt.s32.totalorder %s4096_s30, 2 }
  0xaa   : > { %s4388_s18 = sand.u32 1, %s4092_s29   ;;  %p4390_p7 = por %p226_p0, %p44_p1 }
  0xab   : > { %s4985_s16 = scalar_select %p4381_p6, 1, 0 }
  0xac   : > { %s4986_s20 = scalar_select %p4390_p7, 1, 0 }
  0xad   : > { %p4394_p9 = por %p232_p2, %p50_p11  ;;  %s3129_s10 = sshll.u32 %s4388_s18, 3 }
  0xae   : > { %s3130_s19 = sshll.u32 %s4096_s30, 7  ;;  %s4988_s0 = sld [smem:[#allocation24_spill]] }
  0xaf   : > { %s4987_s26 = scalar_select %p4394_p9, 1, 0 }
  0xb0   : > { %s334_s2 = scalar_lea.vmem [#allocation2], %s3129_s10  ;;  %p4409_p4 = pnand %p3627_p5, %p4375_p12 }
  0xb1   : > { %s341_s21 = sshll.u32 %s334_s2, 4  ;;  %s331_s9 = scalar_lea.sflag [#allocation3], %s4388_s18  ;;  %s4405_s21 = int_to_ptr.vmem [resolvable:$true] %s341_s21 }
  0xb2   : > { %p3952_p8 = pneg %p4409_p4 }
  0xb4   : > { %s4403_s24 = scalar_lea.hbm %s4988_s0, %s3130_s19  ;;  %s3955_s25 = scalar_lea.hbm %s4988_s0, 256 }
  0xb5   : > { %s3950_s14 = scalar_lea.hbm %s4403_s24, 128  ;;  %p3956_p11 = scmp.lt.u32.totalorder %s4403_s24, %s4988_s0 }
  0xb6   : > { %p3951_p10 = scmp.ne.s32.totalorder %s4403_s24, %s3950_s14  ;;  %p3957_p12 = scmp.lt.u32.totalorder %s3955_s25, %s3950_s14 }
  0xb7   : > { %p3959_p0 = scmp.lt.u32.totalorder %s3950_s14, %s4403_s24 }
  0xb8   : > { %p3953_p1 = pnand %p3952_p8, %p3951_p10  ;;  %p3958_p13 = por %p3957_p12, %p3956_p11 }
  0xba   : > { %p3954_p3 = pneg %p3953_p1  ;;  %p3960_p2 = por %p3959_p0, %p3958_p13 }
  0xbc   : > { %p3961_p5 = pnand %p3960_p2, %p3954_p3 }
  0xbe   : > { %3964 = shalt.err (!%p3961_p5)
}
  0xbf   : > { %s3965_s13 = scalar_lea.vmem %s4405_s21, 128  ;;  %s4108_s10 = smov [#allocation2]  }
  0xc0   : > { %p3966_p10 = scmp.ne.s32.totalorder %s4405_s21, %s3965_s13  ;;  %s3970_s19 = sshll.u32 %s4108_s10, 4  ;;  %s3971_s19 = int_to_ptr.vmem [resolvable:$false] %s3970_s19 }
  0xc1   : > { %s3972_s17 = scalar_lea.vmem %s3971_s19, 256  ;;  %p3973_p7 = scmp.lt.s32.totalorder %s4405_s21, %s3971_s19 }
  0xc2   : > { %p3968_p1 = pnand %p3966_p10, %p3952_p8  ;;  %p3974_p11 = scmp.lt.s32.totalorder %s3972_s17, %s3965_s13 }
  0xc4   : > { %p3969_p9 = pneg %p3968_p1  ;;  %p3975_p12 = por %p3974_p11, %p3973_p7 }
  0xc6   : > { %p3976_p13 = pnand %p3975_p12, %p3969_p9 }
  0xc8   : > { %3979 = shalt.err (!%p3976_p13)
}
  0xc9   : > { %3613 = dma.hbm_to_vmem [thread:$0]  (!%p4409_p4), %s4403_s24, 128, %s4405_s21, %s331_s9  }
  0xca   : > { %s3131_s14 = sshll.u32 %s4096_s30, 4  ;;  %s351_s25 = scalar_lea.vmem [#allocation5], %s4388_s18 }
  0xcb   : > { %s358_s2 = sshll.u32 %s351_s25, 4  ;;  %s4445_s19 = scalar_lea.hbm %s4958_s1, %s3131_s14  ;;  %s359_s2 = int_to_ptr.vmem [resolvable:$true] %s358_s2 }
  0xcc   : > { %s4990_s13 = sand.u32 1, %s4096_s30   ;;  %s3980_s3 = scalar_lea.hbm %s4445_s19, 16 }
  0xcd   : > { %s349_s17 = scalar_lea.sflag [#allocation6], %s4990_s13  ;;  %p3981_p7 = scmp.ne.s32.totalorder %s4445_s19, %s3980_s3 }
  0xce   : > { %s3985_s21 = scalar_lea.hbm %s4958_s1, 32  ;;  %p3986_p0 = scmp.lt.u32.totalorder %s4445_s19, %s4958_s1 }
  0xcf   : > { %p3983_p9 = pnand %p3981_p7, %p3952_p8  ;;  %p3987_p2 = scmp.lt.u32.totalorder %s3985_s21, %s3980_s3 }
  0xd0   : > { %p3989_p10 = scmp.lt.u32.totalorder %s3980_s3, %s4445_s19 }
  0xd1   : > { %p3984_p3 = pneg %p3983_p9  ;;  %p3988_p5 = por %p3987_p2, %p3986_p0 }
  0xd3   : > { %p3990_p1 = por %p3989_p10, %p3988_p5 }
  0xd5   : > { %p3991_p11 = pnand %p3990_p1, %p3984_p3 }
  0xd7   : > { %3994 = shalt.err (!%p3991_p11)
}
  0xd8   : > { %s3995_s14 = scalar_lea.vmem %s359_s2, 16  ;;  %s4109_s25 = smov [#allocation5]  }
  0xd9   : > { %p3996_p12 = scmp.ne.s32.totalorder %s359_s2, %s3995_s14  ;;  %s4000_s10 = sshll.u32 %s4109_s25, 4  ;;  %s4001_s10 = int_to_ptr.vmem [resolvable:$false] %s4000_s10 }
  0xda   : > { %s4002_s13 = scalar_lea.vmem %s4001_s10, 32  ;;  %p4003_p9 = scmp.lt.s32.totalorder %s359_s2, %s4001_s10 }
  0xdb   : > { %p3998_p13 = pnand %p3996_p12, %p3952_p8  ;;  %p4004_p6 = scmp.lt.s32.totalorder %s4002_s13, %s3995_s14 }
  0xdd   : > { %p3999_p7 = pneg %p3998_p13  ;;  %p4005_p0 = por %p4004_p6, %p4003_p9 }
  0xdf   : > { %p4006_p2 = pnand %p4005_p0, %p3999_p7 }
  0xe1   : > { %4009 = shalt.err (!%p4006_p2)
}
  0xe2   : > { %3616 = dma.hbm_to_vmem [thread:$0]  (!%p4409_p4), %s4445_s19, 16, %s359_s2, %s349_s17  }
  0xe3   : > { %p4991_p3 = scmp.ne.s32.totalorder %s4976_s12, 0 }
  0xe4   : > { %s4471_s3 = sand.u32 (!%p4991_p3), 1, %s4088_s28   ;;  %p4992_p6 = scmp.ne.s32.totalorder (!%p4991_p3), %s4985_s16, 0 }
  0xe5   : > { %367 = sbr.rel (%p4991_p3) target bundleno = 4887 (0x1317), region = 52  ;;  %s4972_s18 = sshll.u32 (!%p4991_p3), %s4471_s3, 3 }
  0xe6   : > { %s370_s24 = scalar_lea.sflag (!%p4991_p3), [#allocation3], %s4471_s3  ;;  %s4477_s21 = scalar_lea.vmem (!%p4991_p3), [#allocation2], %s4972_s18 }
  0xec   : > { %4055 = dma.done.wait (%p4992_p6), %s370_s24, 128  }
  0xed   : > { %4057 = vsyncadd (%p4992_p6), %s370_s24, 4294967168  ;;  %s378_s12 = sand.u32 1, %s4193_s11   ;;  %s381_s2 = scalar_lea.vmem [#allocation5], %s4471_s3 }
  0xee   : > { %s379_s15 = scalar_lea.sflag [#allocation6], %s378_s12 }
  0xef   : > { %4059 = dma.done.wait (%p4992_p6), %s379_s15, 16  }
  0xf0   : > { %4061 = vsyncadd (%p4992_p6), %s379_s15, 4294967280  ;;  %p4993_p4 = scmp.eq.s32.totalorder %s4193_s11, 0 }
  0xf2   : > { %4063 = dma.done.wait (%p4993_p4), [#allocation6], 1024   ;;  %p4994_p8 = pmov %p4993_p4 }
  0xf3   : > { %p4995_p5 = pmov %p4993_p4 }
  0xf4   : > { %4065 = vsyncadd (%p4994_p8), [#allocation6], 4294966272 }
  0xf5   : > { %4067 = dma.done.wait (%p4995_p5), [#allocation9], 1088   ;;  %p4996_p10 = pmov %p4993_p4 }
  0xf6   : > { %p4997_p1 = pmov %p4993_p4 }
  0xf7   : > { %4069 = vsyncadd (%p4996_p10), [#allocation9], 4294966208 }
  0xf8   : > { %4071 = dma.done.wait (%p4997_p1), [#allocation12], 128   ;;  %p4998_p11 = pmov %p4997_p1 }
  0xf9   : > { %p4999_p12 = pmov %p4997_p1 }
  0xfa   : > { %4073 = vsyncadd (%p4998_p11), [#allocation12], 4294967168 }
  0xfb   : > { %4075 = dma.done.wait (%p4999_p12), [#allocation15], 64   ;;  %p5000_p13 = pmov %p4997_p1 }
  0xfc   : > { %v4110_v0 = vmov 0.0   ;;  %vm4111_vm0 = vmmov 0   ;;  %v3693_v1 = vld [vmem:[#allocation7] sm:$0xff]   ;;  %v3694_v2 = vld [vmem:[#allocation7 + $0x8] sm:$0xff]   ;;  %vm478_vm1 = vcmask 261120   ;;  %s4112_s16 = smov 120   ;;  %v524_v23 = vlaneseq }
  0xfd   : > { %4077 = vsyncadd (%p5000_p13), [#allocation15], 4294967232  ;;  %3305 = vmatprep.subr.bf16.mxu0 %v4110_v0  ;;  %3309 = vmatprep.mubr.msk.bf16.mxu0 %vm4111_vm0, %v4110_v0  ;;  %v443_v3 = vld [vmem:[%s4477_s21] sm:$0xff]  ;;  %v3141_v5 = vld [vmem:[#allocation8] ss:$0 sm:$0xff]  ;;  %s4113_s19 = smov 96  }
  0xfe   : > { %3313 = vmatprep.subr.bf16.mxu1 %v4110_v0  ;;  %3315 = vmatprep.mubr.msk.bf16.mxu1 %vm4111_vm0, %v4110_v0  ;;  %v4513_v4 = vpack.c.bf16 %v443_v3, %v443_v3  ;;  %s4114_s17 = smov 80   ;;  %s4115_s0 = smov 88   ;;  %vm532_vm2 = vcmask 64512   ;;  %v445_v24 = vld [vmem:[%s381_s2] sm:$0x1]  ;;  %v525_v26 = vshrl.u32 %v524_v23, 7 }
  0xff   : > { %3306 = vmatpush3.bf16.msra.mxu0 %v3693_v1  ;;  %s4116_s9 = smov 72   ;;  %s4117_s14 = smov 112   ;;  %v446_v25 = vsub.f32 1.0, %v445_v24  ;;  %vm596_vm3 = vcmask 1043456   ;;  %vm986_vm4 = vcmask 130048   ;;  %vm989_vm5 = vcmask 195584  }
 0x100   : > { %3307 = vmatprep.subr.bf16.mxu0 %v4110_v0  ;;  %s4118_s25 = smov 104   ;;  %v526_v28 = vsub.s32 0, %v525_v26  ;;  %s4119_s10 = smov 56  }
 0x101   : > { %v447_v27 = vmul.f32 -10000.0, %v446_v25  ;;  %s4120_s13 = smov 64   ;;  %s4121_s24 = smov 40  }
 0x102   : > { %s4122_s12 = smov 48   ;;  %s4123_s15 = smov 8  }
 0x103   : > { %3308 = vmatpush3.bf16.msra.mxu0 %v3694_v2  ;;  %v4559_v29 = vrot.slane %v447_v27, %v526_v28  ;;  %s4124_s2 = smov 16   ;;  %s4125_s18 = smov 24  }
 0x104   : > { %3319 = vmatprep.subr.bf16.mxu0 %v4110_v0  ;;  %p5002_p9 = scmp.ne.s32.totalorder %s4986_s20, 0 }
 0x106   : > { %3310 = vmatmul.mubr.msk.bf16.vlgmr.msra.gmra.mrb[0].mxu0 %vm478_vm1, %v4513_v4 }
 0x107   : > { %3321 = vmatprep.mubr.msk.bf16.mxu0 %vm4111_vm0, %v4110_v0 }
 0x1d9   : > { %v516_v6 = vpop.f32.mrb[0].mxu0 }
 0x1da   : > { %v517_v7 = vadd.f32 %v3141_v5, %v516_v6  ;;  %v3311_v8 = vpop.f32.mrb[1].mxu0 }
 0x1db   : > { %v519_v9 = vpop.f32.mrb[2].mxu0 }
 0x1dc   : > { %v4520_v10 = vpack.c.bf16 %v517_v7, %v517_v7  ;;  %v3312_v11 = vpop.f32.mrb[3].mxu0 }
 0x1de   : > { %641 = vrot.lane.b32.xlu1 %v4520_v10, %s4112_s16  ;;  %530 = vrot.lane.b32.xlu0 %v4520_v10, %s4113_s19 }
 0x1e2   : > { %754 = vrot.lane.b32.xlu1 %v4520_v10, %s4114_s17  ;;  %643 = vrot.lane.b32.xlu0 %v4520_v10, %s4115_s0 }
 0x1e6   : > { %865 = vrot.lane.b32.xlu1 %v4520_v10, %s4116_s9  ;;  %752 = vrot.lane.b32.xlu0 %v4520_v10, %s4117_s14 }
 0x1ea   : > { %863 = vrot.lane.b32.xlu0 %v4520_v10, %s4118_s25 }
 0x250   : > { %v531_v12 = vpop.permute.xlu0 %530  ;;  %v642_v15 = vpop.permute.xlu1 %641 }
 0x251   : > { %v537_v13 = vsel %vm532_vm2, %v531_v12, 0 }
 0x252   : > { %3314 = vmatpush3.bf16.xpose.msra.mxu1 %v537_v13 }
 0x253   : > { %3325 = vmatprep.subr.bf16.mxu1 %v4110_v0 }
 0x254   : > { %v644_v14 = vpop.permute.xlu0 %643  ;;  %v755_v17 = vpop.permute.xlu1 %754 }
 0x255   : > { %v649_v16 = vsel %vm532_vm2, %v644_v14, 0  ;;  %v760_v18 = vsel %vm532_vm2, %v755_v17, 0 }
 0x258   : > { %v866_v19 = vpop.permute.xlu1 %865  ;;  %v753_v20 = vpop.permute.xlu0 %752 }
 0x259   : > { %3316 = vmatmul.mubr.msk.bf16.vlgmr.msra.gmra.mrb[0].mxu1 %vm532_vm2, %v4520_v10  ;;  %v871_v21 = vsel %vm532_vm2, %v866_v19, 0 }
 0x25a   : > { %3326 = vmatpush3.bf16.xpose.msra.mxu1 %v649_v16  ;;  %3327 = vmatprep.mubr.msk.bf16.mxu1 %vm4111_vm0, %v4110_v0 }
 0x25b   : > { %3337 = vmatprep.subr.bf16.mxu1 %v4110_v0 }
 0x25c   : > { %v864_v22 = vpop.permute.xlu0 %863 }
 0x261   : > { %3328 = vmatmul.mubr.msk.bf16.vlgmr.msra.gmra.mrb[4].mxu1 %vm532_vm2, %v642_v15 }
 0x262   : > { %3338 = vmatpush3.bf16.xpose.msra.mxu1 %v760_v18  ;;  %3339 = vmatprep.mubr.msk.bf16.mxu1 %vm4111_vm0, %v4110_v0 }
 0x263   : > { %3349 = vmatprep.subr.bf16.mxu1 %v4110_v0 }
 0x269   : > { %3340 = vmatmul.mubr.msk.bf16.vlgmr.msra.gmra.mrb[8].mxu1 %vm532_vm2, %v753_v20 }
 0x26a   : > { %3350 = vmatpush3.bf16.xpose.msra.mxu1 %v871_v21  ;;  %3351 = vmatprep.mubr.msk.bf16.mxu1 %vm4111_vm0, %v4110_v0 }
 0x26b   : > { %3361 = vmatprep.subr.bf16.mxu1 %v4110_v0 }
 0x271   : > { %3352 = vmatmul.mubr.msk.bf16.vlgmr.msra.gmra.mrb[12].mxu1 %vm532_vm2, %v864_v22 }
 0x272   : > { %3365 = vmatprep.mubr.msk.bf16.mxu1 %vm4111_vm0, %v4110_v0 }
 0x32c   : > { %v573_v30 = vpop.f32.mrb[0].mxu1 }
 0x32d   : > { %v574_v31 = vadd.f32 %v573_v30, %v4559_v29  ;;  %v3317_v32 = vpop.f32.mrb[1].mxu1 }
 0x32e   : > { %v576_v33 = vpop.f32.mrb[2].mxu1 }
 0x32f   : > { %v3318_v34 = vpop.f32.mrb[3].mxu1  ;;  %v579_v35 = vsel %vm532_vm2, %v574_v31, -inf }
 0x330   : > { %580 = vmax.xlane.f32.xlu1 %v579_v35 }
 0x334   : > { %v685_v36 = vpop.f32.mrb[4].mxu1 }
 0x335   : > { %v686_v37 = vadd.f32 %v685_v36, %v4559_v29  ;;  %v3329_v38 = vpop.f32.mrb[5].mxu1 }
 0x336   : > { %v688_v39 = vpop.f32.mrb[6].mxu1  ;;  %v3696_v38 = vld [vmem:[#allocation7 + $0x18] sm:$0xff]  }
 0x337   : > { %v3330_v40 = vpop.f32.mrb[7].mxu1  ;;  %v691_v41 = vsel %vm532_vm2, %v686_v37, -inf }
 0x338   : > { %692 = vmax.xlane.f32.xlu0 %v691_v41 }
 0x33c   : > { %v796_v42 = vpop.f32.mrb[8].mxu1 }
 0x33d   : > { %v797_v43 = vadd.f32 %v796_v42, %v4559_v29  ;;  %v3341_v44 = vpop.f32.mrb[9].mxu1 }
 0x33e   : > { %v799_v45 = vpop.f32.mrb[10].mxu1 }
 0x33f   : > { %v3342_v46 = vpop.f32.mrb[11].mxu1  ;;  %v802_v47 = vsel %vm532_vm2, %v797_v43, -inf }
 0x340   : > { %803 = vmax.xlane.f32.xlu0 %v802_v47 }
 0x344   : > { %v907_v48 = vpop.f32.mrb[12].mxu1 }
 0x345   : > { %v908_v49 = vadd.f32 %v907_v48, %v4559_v29  ;;  %v3353_v50 = vpop.f32.mrb[13].mxu1  ;;  %v3697_v48 = vld [vmem:[#allocation10] sm:$0xff]  }
 0x346   : > { %v910_v51 = vpop.f32.mrb[14].mxu1  ;;  %3362 = vmatpush3.bf16.msra.mxu1 %v3697_v48 }
 0x347   : > { %v3354_v52 = vpop.f32.mrb[15].mxu1  ;;  %v913_v53 = vsel %vm532_vm2, %v908_v49, -inf  ;;  %3363 = vmatprep.subr.bf16.mxu1 %v4110_v0 }
 0x348   : > { %914 = vmax.xlane.f32.xlu1 %v913_v53 }
 0x3bd   : > { %v581_v54 = vpop.xlane.xlu1 %580 }
 0x3be   : > { %v582_v55 = vsub.f32 %v574_v31, %v581_v54 }
 0x3c0   : > { %v583_v56 = vmul.f32 1.442695, %v582_v55 }
 0x3c2   : > { %3709 = vpow2.f32 %v583_v56 }
 0x3c5   : > { %v693_v57 = vpop.xlane.xlu0 %692 }
 0x3c6   : > { %v694_v58 = vsub.f32 %v686_v37, %v693_v57  ;;  %v3695_v37 = vld [vmem:[#allocation7 + $0x10] sm:$0xff]  }
 0x3c8   : > { %v695_v59 = vmul.f32 1.442695, %v694_v58 }
 0x3ca   : > { %3711 = vpow2.f32 %v695_v59 }
 0x3cc   : > { %v3710_v60 = vpop.eup %3709 }
 0x3cd   : > { %v804_v61 = vpop.xlane.xlu0 %803  ;;  %v585_v62 = vsel %vm532_vm2, %v3710_v60, 0.0 }
 0x3ce   : > { %v805_v63 = vsub.f32 %v797_v43, %v804_v61  ;;  %586 = vadd.xlane.f32.xlu0 %v585_v62 }
 0x3d0   : > { %v806_v1 = vmul.f32 1.442695, %v805_v63 }
 0x3d2   : > { %3713 = vpow2.f32 %v806_v1 }
 0x3d4   : > { %v3712_v2 = vpop.eup %3711 }
 0x3d5   : > { %v697_v3 = vsel %vm532_vm2, %v3712_v2, 0.0  ;;  %v915_v7 = vpop.xlane.xlu1 %914 }
 0x3d6   : > { %698 = vadd.xlane.f32.xlu1 %v697_v3  ;;  %v916_v8 = vsub.f32 %v908_v49, %v915_v7  ;;  %v3698_v49 = vld [vmem:[#allocation10 + $0x8] sm:$0xff]  }
 0x3d7   : > { %3364 = vmatpush3.bf16.msra.mxu1 %v3698_v49 }
 0x3d8   : > { %v917_v9 = vmul.f32 1.442695, %v916_v8  ;;  %3377 = vmatprep.subr.bf16.mxu1 %v4110_v0 }
 0x3da   : > { %3715 = vpow2.f32 %v917_v9 }
 0x3dc   : > { %v3714_v5 = vpop.eup %3713 }
 0x3dd   : > { %v808_v6 = vsel %vm532_vm2, %v3714_v5, 0.0 }
 0x3de   : > { %809 = vadd.xlane.f32.xlu0 %v808_v6 }
 0x3e4   : > { %v3716_v11 = vpop.eup %3715 }
 0x3e5   : > { %v919_v12 = vsel %vm532_vm2, %v3716_v11, 0.0 }
 0x3e7   : > { %703 = vrot.lane.b32.xlu1 %v4520_v10, %s4119_s10 }
 0x3f4   : > { %591 = vrot.lane.b32.xlu0 %v4520_v10, %s4120_s13 }
 0x3f8   : > { %925 = vrot.lane.b32.xlu0 %v4520_v10, %s4121_s24 }
 0x40b   : > { %920 = vadd.xlane.f32.xlu1 %v919_v12 }
 0x41c   : > { %814 = vrot.lane.b32.xlu1 %v4520_v10, %s4122_s12 }
 0x45b   : > { %v587_v13 = vpop.xlane.xlu0 %586 }
 0x45c   : > { %3717 = vrcp.f32 %v587_v13 }
 0x463   : > { %v699_v14 = vpop.xlane.xlu1 %698 }
 0x464   : > { %3719 = vrcp.f32 %v699_v14 }
 0x466   : > { %v3718_v15 = vpop.eup %3717 }
 0x467   : > { %v589_v17 = vmul.f32 %v3718_v15, %v3710_v60  ;;  %v704_v20 = vpop.permute.xlu1 %703  ;;  %v3159_v60 = vld [vmem:[#allocation8 + $0x1] ss:$0 sm:$0xff] }
 0x468   : > { %v709_v23 = vsel %vm596_vm3, %v704_v20, 0 }
 0x469   : > { %v590_v21 = vpack.c.bf16 %v589_v17, %v589_v17 }
 0x46b   : > { %v810_v16 = vpop.xlane.xlu0 %809 }
 0x46c   : > { %3721 = vrcp.f32 %v810_v16 }
 0x46e   : > { %v3720_v22 = vpop.eup %3719 }
 0x46f   : > { %v592_v18 = vpop.permute.xlu0 %591  ;;  %v701_v10 = vmul.f32 %v3720_v22, %v3712_v2 }
 0x470   : > { %v598_v19 = vsel %vm596_vm3, %v592_v18, 0 }
 0x471   : > { %3320 = vmatpush3.bf16.msra.mxu0 %v598_v19  ;;  %v702_v24 = vpack.c.bf16 %v701_v10, %v701_v10 }
 0x472   : > { %3331 = vmatprep.subr.bf16.mxu0 %v4110_v0 }
 0x473   : > { %v926_v31 = vpop.permute.xlu0 %925 }
 0x474   : > { %3322 = vmatmul.mubr.msk.bf16.vlgmr.msra.gmra.mrb[4].mxu0 %vm532_vm2, %v590_v21  ;;  %v931_v33 = vsel %vm596_vm3, %v926_v31, 0 }
 0x475   : > { %3332 = vmatpush3.bf16.msra.mxu0 %v709_v23  ;;  %3333 = vmatprep.mubr.msk.bf16.mxu0 %vm4111_vm0, %v4110_v0 }
 0x476   : > { %3343 = vmatprep.subr.bf16.mxu0 %v4110_v0  ;;  %v3722_v25 = vpop.eup %3721 }
 0x477   : > { %v812_v27 = vmul.f32 %v3722_v25, %v3714_v5 }
 0x479   : > { %v813_v32 = vpack.c.bf16 %v812_v27, %v812_v27 }
 0x47c   : > { %3334 = vmatmul.mubr.msk.bf16.vlgmr.msra.gmra.mrb[8].mxu0 %vm532_vm2, %v702_v24 }
 0x47d   : > { %3345 = vmatprep.mubr.msk.bf16.mxu0 %vm4111_vm0, %v4110_v0 }
 0x498   : > { %v921_v26 = vpop.xlane.xlu1 %920 }
 0x499   : > { %3723 = vrcp.f32 %v921_v26 }
 0x49c   : > { %v815_v28 = vpop.permute.xlu1 %814 }
 0x49d   : > { %v820_v30 = vsel %vm596_vm3, %v815_v28, 0 }
 0x49e   : > { %3344 = vmatpush3.bf16.msra.mxu0 %v820_v30 }
 0x49f   : > { %3355 = vmatprep.subr.bf16.mxu0 %v4110_v0 }
 0x4a1   : > { %3346 = vmatmul.mubr.msk.bf16.vlgmr.msra.gmra.mrb[12].mxu0 %vm532_vm2, %v813_v32 }
 0x4a2   : > { %3356 = vmatpush3.bf16.msra.mxu0 %v931_v33  ;;  %3357 = vmatprep.mubr.msk.bf16.mxu0 %vm4111_vm0, %v4110_v0 }
 0x4a3   : > { %v3724_v34 = vpop.eup %3723  ;;  %3369 = vmatprep.subr.bf16.mxu0 %v4110_v0 }
 0x4a4   : > { %v923_v35 = vmul.f32 %v3724_v34, %v3716_v11 }
 0x4a6   : > { %v924_v36 = vpack.c.bf16 %v923_v35, %v923_v35 }
 0x4a9   : > { %3358 = vmatmul.mubr.msk.bf16.vlgmr.msra.gmra.mrb[16].mxu0 %vm532_vm2, %v924_v36 }
 0x4aa   : > { %3370 = vmatpush3.bf16.msra.mxu0 %v3695_v37  ;;  %3373 = vmatprep.mubr.msk.bf16.mxu0 %vm4111_vm0, %v4110_v0 }
 0x4ab   : > { %3371 = vmatprep.subr.bf16.mxu0 %v4110_v0 }
 0x4ae   : > { %3372 = vmatpush3.bf16.msra.mxu0 %v3696_v38 }
 0x4af   : > { %3383 = vmatprep.subr.bf16.mxu0 %v4110_v0 }
 0x4b1   : > { %3374 = vmatmul.mubr.msk.bf16.vlgmr.msra.gmra.mrb[20].mxu0 %vm478_vm1, %v4513_v4 }
 0x4b2   : > { %3385 = vmatprep.mubr.msk.bf16.mxu0 %vm4111_vm0, %v4110_v0 }
 0x547   : > { %v634_v39 = vpop.f32.mrb[4].mxu0 }
 0x548   : > { %v3323_v40 = vpop.f32.mrb[5].mxu0  ;;  %v640_v6 = vpack.c.bf16 %v634_v39, %v634_v39 }
 0x549   : > { %v637_v41 = vpop.f32.mrb[6].mxu0 }
 0x54a   : > { %v3324_v42 = vpop.f32.mrb[7].mxu0 }
 0x54f   : > { %v745_v43 = vpop.f32.mrb[8].mxu0 }
 0x550   : > { %v751_v44 = vpack.c.bf16 %v745_v43, %v745_v43  ;;  %v3335_v45 = vpop.f32.mrb[9].mxu0 }
 0x551   : > { %v748_v46 = vpop.f32.mrb[10].mxu0 }
 0x552   : > { %975 = vrot.lane.b32.xlu1 %v751_v44, %s4123_s15  ;;  %v3336_v47 = vpop.f32.mrb[11].mxu0 }
 0x574   : > { %v856_v50 = vpop.f32.mrb[12].mxu0 }
 0x575   : > { %v862_v51 = vpack.c.bf16 %v856_v50, %v856_v50  ;;  %v3347_v52 = vpop.f32.mrb[13].mxu0 }
 0x576   : > { %v859_v53 = vpop.f32.mrb[14].mxu0 }
 0x577   : > { %978 = vrot.lane.b32.xlu0 %v862_v51, %s4124_s2  ;;  %v3348_v54 = vpop.f32.mrb[15].mxu0 }
 0x57c   : > { %v967_v55 = vpop.f32.mrb[16].mxu0 }
 0x57d   : > { %v973_v56 = vpack.c.bf16 %v967_v55, %v967_v55  ;;  %v3359_v57 = vpop.f32.mrb[17].mxu0 }
 0x57e   : > { %v970_v58 = vpop.f32.mrb[18].mxu0 }
 0x57f   : > { %981 = vrot.lane.b32.xlu1 %v973_v56, %s4125_s18  ;;  %v3360_v59 = vpop.f32.mrb[19].mxu0 }
 0x584   : > { %v1152_v61 = vpop.f32.mrb[20].mxu0 }
 0x585   : > { %v1153_v62 = vadd.f32 %v3159_v60, %v1152_v61  ;;  %v3375_v63 = vpop.f32.mrb[21].mxu0 }
 0x586   : > { %v1155_v1 = vpop.f32.mrb[22].mxu0 }
 0x587   : > { %v4612_v2 = vpack.c.bf16 %v1153_v62, %v1153_v62  ;;  %v3376_v3 = vpop.f32.mrb[23].mxu0 }
 0x589   : > { %1271 = vrot.lane.b32.xlu1 %v4612_v2, %s4115_s0  ;;  %1160 = vrot.lane.b32.xlu0 %v4612_v2, %s4113_s19 }
 0x58d   : > { %1382 = vrot.lane.b32.xlu1 %v4612_v2, %s4114_s17  ;;  %1269 = vrot.lane.b32.xlu0 %v4612_v2, %s4112_s16 }
 0x591   : > { %1493 = vrot.lane.b32.xlu1 %v4612_v2, %s4116_s9  ;;  %1380 = vrot.lane.b32.xlu0 %v4612_v2, %s4117_s14 }
 0x595   : > { %1491 = vrot.lane.b32.xlu0 %v4612_v2, %s4118_s25 }
 0x5c4   : > { %v976_v5 = vpop.permute.xlu1 %975 }
 0x5c5   : > { %v985_v8 = vsel %vm532_vm2, %v640_v6, %v976_v5 }
 0x5e9   : > { %v979_v7 = vpop.permute.xlu0 %978 }
 0x5ea   : > { %v988_v9 = vsel %vm986_vm4, %v985_v8, %v979_v7 }
 0x5f1   : > { %v982_v11 = vpop.permute.xlu1 %981 }
 0x5f2   : > { %v991_v12 = vsel %vm989_vm5, %v988_v9, %v982_v11 }
 0x5f3   : > { %3366 = vmatmul.mubr.msk.bf16.vlgmr.msra.gmra.mrb[16].mxu1 %vm478_vm1, %v991_v12 }
 0x5f4   : > { %3379 = vmatprep.mubr.msk.bf16.mxu1 %vm4111_vm0, %v4110_v0 }
 0x5fb   : > { %v1161_v13 = vpop.permute.xlu0 %1160  ;;  %v1272_v15 = vpop.permute.xlu1 %1271 }
 0x5fc   : > { %v1166_v14 = vsel %vm532_vm2, %v1161_v13, 0  ;;  %v1277_v16 = vsel %vm532_vm2, %v1272_v15, 0 }
 0x5fd   : > { %3378 = vmatpush3.bf16.xpose.msra.mxu1 %v1166_v14 }
 0x5fe   : > { %3389 = vmatprep.subr.bf16.mxu1 %v4110_v0 }
 0x5ff   : > { %v1383_v17 = vpop.permute.xlu1 %1382  ;;  %v1270_v18 = vpop.permute.xlu0 %1269 }
 0x600   : > { %v1388_v19 = vsel %vm532_vm2, %v1383_v17, 0 }
 0x603   : > { %v1494_v20 = vpop.permute.xlu1 %1493  ;;  %v1381_v21 = vpop.permute.xlu0 %1380 }
 0x604   : > { %3380 = vmatmul.mubr.msk.bf16.vlgmr.msra.gmra.mrb[20].mxu1 %vm532_vm2, %v4612_v2  ;;  %v1499_v22 = vsel %vm532_vm2, %v1494_v20, 0 }
 0x605   : > { %3390 = vmatpush3.bf16.xpose.msra.mxu1 %v1277_v16  ;;  %3391 = vmatprep.mubr.msk.bf16.mxu1 %vm4111_vm0, %v4110_v0 }
 0x606   : > { %3401 = vmatprep.subr.bf16.mxu1 %v4110_v0 }
 0x607   : > { %v1492_v23 = vpop.permute.xlu0 %1491 }
 0x60c   : > { %3392 = vmatmul.mubr.msk.bf16.vlgmr.msra.gmra.mrb[24].mxu1 %vm532_vm2, %v1270_v18 }
 0x60d   : > { %3402 = vmatpush3.bf16.xpose.msra.mxu1 %v1388_v19  ;;  %3403 = vmatprep.mubr.msk.bf16.mxu1 %vm4111_vm0, %v4110_v0 }
 0x60e   : > { %3413 = vmatprep.subr.bf16.mxu1 %v4110_v0 }
 0x614   : > { %3404 = vmatmul.mubr.msk.bf16.vlgmr.msra.gmra.mrb[28].mxu1 %vm532_vm2, %v1381_v21 }
 0x615   : > { %3414 = vmatpush3.bf16.xpose.msra.mxu1 %v1499_v22  ;;  %3415 = vmatprep.mubr.msk.bf16.mxu1 %vm4111_vm0, %v4110_v0 }
 0x616   : > { %3425 = vmatprep.subr.bf16.mxu1 %v4110_v0 }
 0x61c   : > { %3416 = vmatmul.mubr.msk.bf16.vlgmr.msra.gmra.mrb[32].mxu1 %vm532_vm2, %v1492_v23 }
 0x61d   : > { %3429 = vmatprep.mubr.msk.bf16.mxu1 %vm4111_vm0, %v4110_v0 }
 0x6c6   : > { %v4655_v10 = vpop.f32.mrb[16].mxu1 }
 0x6c7   : > { %v3367_v24 = vpop.f32.mrb[17].mxu1 }
 0x6c8   : > { %v1049_v25 = vpop.f32.mrb[18].mxu1 }
 0x6c9   : > { %v3368_v26 = vpop.f32.mrb[19].mxu1 }
 0x6d7   : > { %v1202_v27 = vpop.f32.mrb[20].mxu1 }
 0x6d8   : > { %v1203_v28 = vadd.f32 %v1202_v27, %v4559_v29  ;;  %v3381_v30 = vpop.f32.mrb[21].mxu1 }
 0x6d9   : > { %v1205_v31 = vpop.f32.mrb[22].mxu1 }
 0x6da   : > { %v3382_v32 = vpop.f32.mrb[23].mxu1  ;;  %v1208_v33 = vsel %vm532_vm2, %v1203_v28, -inf }
 0x6db   : > { %1209 = vmax.xlane.f32.xlu1 %v1208_v33 }
 0x6df   : > { %v1313_v34 = vpop.f32.mrb[24].mxu1 }
 0x6e0   : > { %v1314_v35 = vadd.f32 %v1313_v34, %v4559_v29  ;;  %v3393_v36 = vpop.f32.mrb[25].mxu1 }
 0x6e1   : > { %v1316_v37 = vpop.f32.mrb[26].mxu1  ;;  %v3699_v36 = vld [vmem:[#allocation7 + $0x20] sm:$0xff]  }
 0x6e2   : > { %v3394_v38 = vpop.f32.mrb[27].mxu1  ;;  %v1319_v39 = vsel %vm532_vm2, %v1314_v35, -inf  ;;  %v3700_v37 = vld [vmem:[#allocation7 + $0x28] sm:$0xff]  }
 0x6e3   : > { %1320 = vmax.xlane.f32.xlu0 %v1319_v39 }
 0x6e7   : > { %v1424_v40 = vpop.f32.mrb[28].mxu1 }
 0x6e8   : > { %v1425_v41 = vadd.f32 %v1424_v40, %v4559_v29  ;;  %v3405_v42 = vpop.f32.mrb[29].mxu1 }
 0x6e9   : > { %v1427_v43 = vpop.f32.mrb[30].mxu1 }
 0x6ea   : > { %v3406_v44 = vpop.f32.mrb[31].mxu1  ;;  %v1430_v45 = vsel %vm532_vm2, %v1425_v41, -inf }
 0x6eb   : > { %1431 = vmax.xlane.f32.xlu0 %v1430_v45 }
 0x6ef   : > { %v1535_v46 = vpop.f32.mrb[32].mxu1 }
 0x6f0   : > { %v1536_v47 = vadd.f32 %v1535_v46, %v4559_v29  ;;  %v3417_v48 = vpop.f32.mrb[33].mxu1 }
 0x6f1   : > { %v1538_v49 = vpop.f32.mrb[34].mxu1  ;;  %v3702_v48 = vld [vmem:[#allocation10 + $0x18] sm:$0xff]  }
 0x6f2   : > { %v3418_v50 = vpop.f32.mrb[35].mxu1  ;;  %v1541_v51 = vsel %vm532_vm2, %v1536_v47, -inf }
 0x6f3   : > { %1542 = vmax.xlane.f32.xlu1 %v1541_v51 }
 0x768   : > { %v1210_v52 = vpop.xlane.xlu1 %1209 }
 0x769   : > { %v1211_v53 = vsub.f32 %v1203_v28, %v1210_v52 }
 0x76b   : > { %v1212_v54 = vmul.f32 1.442695, %v1211_v53 }
 0x76d   : > { %3725 = vpow2.f32 %v1212_v54 }
 0x770   : > { %v1321_v55 = vpop.xlane.xlu0 %1320 }
 0x771   : > { %v1322_v56 = vsub.f32 %v1314_v35, %v1321_v55 }
 0x773   : > { %v1323_v57 = vmul.f32 1.442695, %v1322_v56 }
 0x775   : > { %3727 = vpow2.f32 %v1323_v57 }
 0x777   : > { %v3726_v58 = vpop.eup %3725 }
 0x778   : > { %v1432_v59 = vpop.xlane.xlu0 %1431  ;;  %v1214_v60 = vsel %vm532_vm2, %v3726_v58, 0.0 }
 0x779   : > { %v1433_v61 = vsub.f32 %v1425_v41, %v1432_v59  ;;  %1215 = vadd.xlane.f32.xlu0 %v1214_v60  ;;  %v3177_v59 = vld [vmem:[#allocation8 + $0x2] ss:$0 sm:$0xff] }
 0x77b   : > { %v1434_v62 = vmul.f32 1.442695, %v1433_v61 }
 0x77d   : > { %3729 = vpow2.f32 %v1434_v62 }
 0x77f   : > { %v3728_v63 = vpop.eup %3727 }
 0x780   : > { %v1325_v1 = vsel %vm532_vm2, %v3728_v63, 0.0  ;;  %v1543_v6 = vpop.xlane.xlu1 %1542 }
 0x781   : > { %1326 = vadd.xlane.f32.xlu1 %v1325_v1  ;;  %v1544_v7 = vsub.f32 %v1536_v47, %v1543_v6  ;;  %v3701_v47 = vld [vmem:[#allocation10 + $0x10] sm:$0xff]  }
 0x782   : > { %3426 = vmatpush3.bf16.msra.mxu1 %v3701_v47 }
 0x783   : > { %v1545_v8 = vmul.f32 1.442695, %v1544_v7  ;;  %3427 = vmatprep.subr.bf16.mxu1 %v4110_v0 }
 0x785   : > { %3731 = vpow2.f32 %v1545_v8 }
 0x786   : > { %3428 = vmatpush3.bf16.msra.mxu1 %v3702_v48 }
 0x787   : > { %v3730_v3 = vpop.eup %3729  ;;  %3441 = vmatprep.subr.bf16.mxu1 %v4110_v0 }
 0x788   : > { %v1436_v5 = vsel %vm532_vm2, %v3730_v3, 0.0 }
 0x789   : > { %1437 = vadd.xlane.f32.xlu0 %v1436_v5 }
 0x78f   : > { %v3732_v9 = vpop.eup %3731 }
 0x790   : > { %v1547_v11 = vsel %vm532_vm2, %v3732_v9, 0.0 }
 0x792   : > { %1331 = vrot.lane.b32.xlu1 %v4612_v2, %s4119_s10 }
 0x79f   : > { %1220 = vrot.lane.b32.xlu0 %v4612_v2, %s4120_s13 }
 0x7a3   : > { %1553 = vrot.lane.b32.xlu0 %v4612_v2, %s4121_s24 }
 0x7b6   : > { %1548 = vadd.xlane.f32.xlu1 %v1547_v11 }
 0x7c7   : > { %1442 = vrot.lane.b32.xlu1 %v4612_v2, %s4122_s12 }
 0x806   : > { %v1216_v12 = vpop.xlane.xlu0 %1215 }
 0x807   : > { %3733 = vrcp.f32 %v1216_v12 }
 0x80e   : > { %v1327_v13 = vpop.xlane.xlu1 %1326 }
 0x80f   : > { %3735 = vrcp.f32 %v1327_v13 }
 0x811   : > { %v3734_v14 = vpop.eup %3733 }
 0x812   : > { %v1218_v16 = vmul.f32 %v3734_v14, %v3726_v58  ;;  %v1332_v19 = vpop.permute.xlu1 %1331 }
 0x813   : > { %v1337_v22 = vsel %vm596_vm3, %v1332_v19, 0 }
 0x814   : > { %v1219_v20 = vpack.c.bf16 %v1218_v16, %v1218_v16 }
 0x816   : > { %v1438_v15 = vpop.xlane.xlu0 %1437 }
 0x817   : > { %3737 = vrcp.f32 %v1438_v15 }
 0x819   : > { %v3736_v21 = vpop.eup %3735 }
 0x81a   : > { %v1221_v17 = vpop.permute.xlu0 %1220  ;;  %v1329_v2 = vmul.f32 %v3736_v21, %v3728_v63 }
 0x81b   : > { %v1226_v18 = vsel %vm596_vm3, %v1221_v17, 0 }
 0x81c   : > { %3384 = vmatpush3.bf16.msra.mxu0 %v1226_v18  ;;  %v1330_v23 = vpack.c.bf16 %v1329_v2, %v1329_v2 }
 0x81d   : > { %3395 = vmatprep.subr.bf16.mxu0 %v4110_v0 }
 0x81e   : > { %v1554_v30 = vpop.permute.xlu0 %1553 }
 0x81f   : > { %3386 = vmatmul.mubr.msk.bf16.vlgmr.msra.gmra.mrb[24].mxu0 %vm532_vm2, %v1219_v20  ;;  %v1559_v32 = vsel %vm596_vm3, %v1554_v30, 0 }
 0x820   : > { %3396 = vmatpush3.bf16.msra.mxu0 %v1337_v22  ;;  %3397 = vmatprep.mubr.msk.bf16.mxu0 %vm4111_vm0, %v4110_v0 }
 0x821   : > { %3407 = vmatprep.subr.bf16.mxu0 %v4110_v0  ;;  %v3738_v24 = vpop.eup %3737 }
 0x822   : > { %v1440_v26 = vmul.f32 %v3738_v24, %v3730_v3 }
 0x824   : > { %v1441_v31 = vpack.c.bf16 %v1440_v26, %v1440_v26 }
 0x827   : > { %3398 = vmatmul.mubr.msk.bf16.vlgmr.msra.gmra.mrb[28].mxu0 %vm532_vm2, %v1330_v23 }
 0x828   : > { %3409 = vmatprep.mubr.msk.bf16.mxu0 %vm4111_vm0, %v4110_v0 }
 0x843   : > { %v1549_v25 = vpop.xlane.xlu1 %1548 }
 0x844   : > { %3739 = vrcp.f32 %v1549_v25 }
 0x847   : > { %v1443_v27 = vpop.permute.xlu1 %1442 }
 0x848   : > { %v1448_v28 = vsel %vm596_vm3, %v1443_v27, 0 }
 0x849   : > { %3408 = vmatpush3.bf16.msra.mxu0 %v1448_v28 }
 0x84a   : > { %3419 = vmatprep.subr.bf16.mxu0 %v4110_v0 }
 0x84c   : > { %3410 = vmatmul.mubr.msk.bf16.vlgmr.msra.gmra.mrb[32].mxu0 %vm532_vm2, %v1441_v31 }
 0x84d   : > { %3420 = vmatpush3.bf16.msra.mxu0 %v1559_v32  ;;  %3421 = vmatprep.mubr.msk.bf16.mxu0 %vm4111_vm0, %v4110_v0 }
 0x84e   : > { %v3740_v33 = vpop.eup %3739  ;;  %3433 = vmatprep.subr.bf16.mxu0 %v4110_v0 }
 0x84f   : > { %v1551_v34 = vmul.f32 %v3740_v33, %v3732_v9 }
 0x851   : > { %v1552_v35 = vpack.c.bf16 %v1551_v34, %v1551_v34 }
 0x854   : > { %3422 = vmatmul.mubr.msk.bf16.vlgmr.msra.gmra.mrb[36].mxu0 %vm532_vm2, %v1552_v35 }
 0x855   : > { %3434 = vmatpush3.bf16.msra.mxu0 %v3699_v36  ;;  %3437 = vmatprep.mubr.msk.bf16.mxu0 %vm4111_vm0, %v4110_v0 }
 0x856   : > { %3435 = vmatprep.subr.bf16.mxu0 %v4110_v0 }
 0x859   : > { %3436 = vmatpush3.bf16.msra.mxu0 %v3700_v37 }
 0x85a   : > { %3447 = vmatprep.subr.bf16.mxu0 %v4110_v0 }
 0x85c   : > { %3438 = vmatmul.mubr.msk.bf16.vlgmr.msra.gmra.mrb[40].mxu0 %vm478_vm1, %v4513_v4 }
 0x85d   : > { %3449 = vmatprep.mubr.msk.bf16.mxu0 %vm4111_vm0, %v4110_v0 }
 0x8f2   : > { %v1262_v38 = vpop.f32.mrb[24].mxu0 }
 0x8f3   : > { %v3387_v39 = vpop.f32.mrb[25].mxu0  ;;  %v1268_v6 = vpack.c.bf16 %v1262_v38, %v1262_v38 }
 0x8f4   : > { %v1265_v40 = vpop.f32.mrb[26].mxu0 }
 0x8f5   : > { %v3388_v41 = vpop.f32.mrb[27].mxu0 }
 0x8fa   : > { %v1373_v42 = vpop.f32.mrb[28].mxu0 }
 0x8fb   : > { %v1379_v43 = vpack.c.bf16 %v1373_v42, %v1373_v42  ;;  %v3399_v44 = vpop.f32.mrb[29].mxu0 }
 0x8fc   : > { %v1376_v45 = vpop.f32.mrb[30].mxu0 }
 0x8fd   : > { %1603 = vrot.lane.b32.xlu1 %v1379_v43, %s4123_s15  ;;  %v3400_v46 = vpop.f32.mrb[31].mxu0 }
 0x91f   : > { %v1484_v49 = vpop.f32.mrb[32].mxu0 }
 0x920   : > { %v1490_v50 = vpack.c.bf16 %v1484_v49, %v1484_v49  ;;  %v3411_v51 = vpop.f32.mrb[33].mxu0 }
 0x921   : > { %v1487_v52 = vpop.f32.mrb[34].mxu0 }
 0x922   : > { %1606 = vrot.lane.b32.xlu0 %v1490_v50, %s4124_s2  ;;  %v3412_v53 = vpop.f32.mrb[35].mxu0 }
 0x927   : > { %v1595_v54 = vpop.f32.mrb[36].mxu0 }
 0x928   : > { %v1601_v55 = vpack.c.bf16 %v1595_v54, %v1595_v54  ;;  %v3423_v56 = vpop.f32.mrb[37].mxu0 }
 0x929   : > { %v1598_v57 = vpop.f32.mrb[38].mxu0 }
 0x92a   : > { %1609 = vrot.lane.b32.xlu1 %v1601_v55, %s4125_s18  ;;  %v3424_v58 = vpop.f32.mrb[39].mxu0 }
 0x92f   : > { %v1777_v60 = vpop.f32.mrb[40].mxu0 }
 0x930   : > { %v1778_v61 = vadd.f32 %v3177_v59, %v1777_v60  ;;  %v3439_v62 = vpop.f32.mrb[41].mxu0 }
 0x931   : > { %v1780_v63 = vpop.f32.mrb[42].mxu0 }
 0x932   : > { %v4708_v1 = vpack.c.bf16 %v1778_v61, %v1778_v61  ;;  %v3440_v3 = vpop.f32.mrb[43].mxu0 }
 0x934   : > { %1896 = vrot.lane.b32.xlu1 %v4708_v1, %s4115_s0  ;;  %1785 = vrot.lane.b32.xlu0 %v4708_v1, %s4113_s19 }
 0x938   : > { %2007 = vrot.lane.b32.xlu1 %v4708_v1, %s4114_s17  ;;  %1894 = vrot.lane.b32.xlu0 %v4708_v1, %s4112_s16 }
 0x93c   : > { %2118 = vrot.lane.b32.xlu1 %v4708_v1, %s4116_s9  ;;  %2005 = vrot.lane.b32.xlu0 %v4708_v1, %s4117_s14 }
 0x940   : > { %2116 = vrot.lane.b32.xlu0 %v4708_v1, %s4118_s25 }
 0x96f   : > { %v1604_v5 = vpop.permute.xlu1 %1603 }
 0x970   : > { %v1613_v8 = vsel %vm532_vm2, %v1268_v6, %v1604_v5 }
 0x994   : > { %v1607_v7 = vpop.permute.xlu0 %1606 }
 0x995   : > { %v1615_v9 = vsel %vm986_vm4, %v1613_v8, %v1607_v7 }
 0x99c   : > { %v1610_v11 = vpop.permute.xlu1 %1609 }
 0x99d   : > { %v1617_v12 = vsel %vm989_vm5, %v1615_v9, %v1610_v11 }
 0x99e   : > { %3430 = vmatmul.mubr.msk.bf16.vlgmr.msra.gmra.mrb[36].mxu1 %vm478_vm1, %v1617_v12 }
 0x99f   : > { %3443 = vmatprep.mubr.msk.bf16.mxu1 %vm4111_vm0, %v4110_v0 }
 0x9a6   : > { %v1786_v13 = vpop.permute.xlu0 %1785  ;;  %v1897_v15 = vpop.permute.xlu1 %1896 }
 0x9a7   : > { %v1791_v14 = vsel %vm532_vm2, %v1786_v13, 0  ;;  %v1902_v16 = vsel %vm532_vm2, %v1897_v15, 0 }
 0x9a8   : > { %3442 = vmatpush3.bf16.xpose.msra.mxu1 %v1791_v14 }
 0x9a9   : > { %3453 = vmatprep.subr.bf16.mxu1 %v4110_v0 }
 0x9aa   : > { %v2008_v17 = vpop.permute.xlu1 %2007  ;;  %v1895_v18 = vpop.permute.xlu0 %1894 }
 0x9ab   : > { %v2013_v19 = vsel %vm532_vm2, %v2008_v17, 0 }
 0x9ae   : > { %v2119_v20 = vpop.permute.xlu1 %2118  ;;  %v2006_v21 = vpop.permute.xlu0 %2005 }
 0x9af   : > { %3444 = vmatmul.mubr.msk.bf16.vlgmr.msra.gmra.mrb[40].mxu1 %vm532_vm2, %v4708_v1  ;;  %v2124_v22 = vsel %vm532_vm2, %v2119_v20, 0 }
 0x9b0   : > { %3454 = vmatpush3.bf16.xpose.msra.mxu1 %v1902_v16  ;;  %3455 = vmatprep.mubr.msk.bf16.mxu1 %vm4111_vm0, %v4110_v0 }
 0x9b1   : > { %3465 = vmatprep.subr.bf16.mxu1 %v4110_v0 }
 0x9b2   : > { %v2117_v2 = vpop.permute.xlu0 %2116 }
 0x9b7   : > { %3456 = vmatmul.mubr.msk.bf16.vlgmr.msra.gmra.mrb[44].mxu1 %vm532_vm2, %v1895_v18 }
 0x9b8   : > { %3466 = vmatpush3.bf16.xpose.msra.mxu1 %v2013_v19  ;;  %3467 = vmatprep.mubr.msk.bf16.mxu1 %vm4111_vm0, %v4110_v0 }
 0x9b9   : > { %3477 = vmatprep.subr.bf16.mxu1 %v4110_v0 }
 0x9bf   : > { %3468 = vmatmul.mubr.msk.bf16.vlgmr.msra.gmra.mrb[48].mxu1 %vm532_vm2, %v2006_v21 }
 0x9c0   : > { %3478 = vmatpush3.bf16.xpose.msra.mxu1 %v2124_v22  ;;  %3479 = vmatprep.mubr.msk.bf16.mxu1 %vm4111_vm0, %v4110_v0 }
 0x9c1   : > { %3489 = vmatprep.subr.bf16.mxu1 %v4110_v0 }
 0x9c7   : > { %3480 = vmatmul.mubr.msk.bf16.vlgmr.msra.gmra.mrb[52].mxu1 %vm532_vm2, %v2117_v2 }
 0x9c8   : > { %3493 = vmatprep.mubr.msk.bf16.mxu1 %vm4111_vm0, %v4110_v0 }
 0xa71   : > { %v4751_v23 = vpop.f32.mrb[36].mxu1 }
 0xa72   : > { %v3431_v24 = vpop.f32.mrb[37].mxu1 }
 0xa73   : > { %v1675_v25 = vpop.f32.mrb[38].mxu1 }
 0xa74   : > { %v3432_v26 = vpop.f32.mrb[39].mxu1 }
 0xa82   : > { %v1827_v27 = vpop.f32.mrb[40].mxu1 }
 0xa83   : > { %v1828_v28 = vadd.f32 %v1827_v27, %v4559_v29  ;;  %v3445_v30 = vpop.f32.mrb[41].mxu1 }
 0xa84   : > { %v1830_v31 = vpop.f32.mrb[42].mxu1 }
 0xa85   : > { %v3446_v32 = vpop.f32.mrb[43].mxu1  ;;  %v1833_v33 = vsel %vm532_vm2, %v1828_v28, -inf }
 0xa86   : > { %1834 = vmax.xlane.f32.xlu1 %v1833_v33 }
 0xa8a   : > { %v1938_v34 = vpop.f32.mrb[44].mxu1 }
 0xa8b   : > { %v1939_v35 = vadd.f32 %v1938_v34, %v4559_v29  ;;  %v3457_v36 = vpop.f32.mrb[45].mxu1 }
 0xa8c   : > { %v1941_v37 = vpop.f32.mrb[46].mxu1 }
 0xa8d   : > { %v3458_v38 = vpop.f32.mrb[47].mxu1  ;;  %v1944_v39 = vsel %vm532_vm2, %v1939_v35, -inf  ;;  %v3703_v37 = vld [vmem:[#allocation7 + $0x30] sm:$0xff]  }
 0xa8e   : > { %1945 = vmax.xlane.f32.xlu0 %v1944_v39  ;;  %v3704_v38 = vld [vmem:[#allocation7 + $0x38] sm:$0xff]  }
 0xa92   : > { %v2049_v40 = vpop.f32.mrb[48].mxu1 }
 0xa93   : > { %v2050_v41 = vadd.f32 %v2049_v40, %v4559_v29  ;;  %v3469_v42 = vpop.f32.mrb[49].mxu1 }
 0xa94   : > { %v2052_v43 = vpop.f32.mrb[50].mxu1 }
 0xa95   : > { %v3470_v44 = vpop.f32.mrb[51].mxu1  ;;  %v2055_v45 = vsel %vm532_vm2, %v2050_v41, -inf }
 0xa96   : > { %2056 = vmax.xlane.f32.xlu0 %v2055_v45 }
 0xa9a   : > { %v2160_v46 = vpop.f32.mrb[52].mxu1 }
 0xa9b   : > { %v2161_v47 = vadd.f32 %v2160_v46, %v4559_v29  ;;  %v3481_v48 = vpop.f32.mrb[53].mxu1 }
 0xa9c   : > { %v2163_v49 = vpop.f32.mrb[54].mxu1  ;;  %v3705_v48 = vld [vmem:[#allocation10 + $0x20] sm:$0xff]  }
 0xa9d   : > { %v3482_v50 = vpop.f32.mrb[55].mxu1  ;;  %v2166_v51 = vsel %vm532_vm2, %v2161_v47, -inf  ;;  %3490 = vmatpush3.bf16.msra.mxu1 %v3705_v48  ;;  %v3706_v49 = vld [vmem:[#allocation10 + $0x28] sm:$0xff]  }
 0xa9e   : > { %2167 = vmax.xlane.f32.xlu1 %v2166_v51  ;;  %3491 = vmatprep.subr.bf16.mxu1 %v4110_v0 }
 0xaa1   : > { %3492 = vmatpush3.bf16.msra.mxu1 %v3706_v49 }
 0xaa2   : > { %3505 = vmatprep.subr.bf16.mxu1 %v4110_v0 }
 0xb13   : > { %v1835_v52 = vpop.xlane.xlu1 %1834 }
 0xb14   : > { %v1836_v53 = vsub.f32 %v1828_v28, %v1835_v52 }
 0xb16   : > { %v1837_v54 = vmul.f32 1.442695, %v1836_v53 }
 0xb18   : > { %3741 = vpow2.f32 %v1837_v54 }
 0xb1b   : > { %v1946_v55 = vpop.xlane.xlu0 %1945 }
 0xb1c   : > { %v1947_v56 = vsub.f32 %v1939_v35, %v1946_v55 }
 0xb1e   : > { %v1948_v57 = vmul.f32 1.442695, %v1947_v56 }
 0xb20   : > { %3743 = vpow2.f32 %v1948_v57 }
 0xb22   : > { %v3742_v58 = vpop.eup %3741 }
 0xb23   : > { %v2057_v59 = vpop.xlane.xlu0 %2056  ;;  %v1839_v60 = vsel %vm532_vm2, %v3742_v58, 0.0 }
 0xb24   : > { %v2058_v61 = vsub.f32 %v2050_v41, %v2057_v59  ;;  %1840 = vadd.xlane.f32.xlu0 %v1839_v60  ;;  %v3195_v59 = vld [vmem:[#allocation8 + $0x3] ss:$0 sm:$0xff] }
 0xb26   : > { %v2059_v62 = vmul.f32 1.442695, %v2058_v61 }
 0xb28   : > { %3745 = vpow2.f32 %v2059_v62 }
 0xb2a   : > { %v3744_v63 = vpop.eup %3743 }
 0xb2b   : > { %v1950_v3 = vsel %vm532_vm2, %v3744_v63, 0.0  ;;  %v2168_v7 = vpop.xlane.xlu1 %2167 }
 0xb2c   : > { %1951 = vadd.xlane.f32.xlu1 %v1950_v3  ;;  %v2169_v8 = vsub.f32 %v2161_v47, %v2168_v7 }
 0xb2e   : > { %v2170_v9 = vmul.f32 1.442695, %v2169_v8 }
 0xb30   : > { %3747 = vpow2.f32 %v2170_v9 }
 0xb32   : > { %v3746_v5 = vpop.eup %3745 }
 0xb33   : > { %v2061_v6 = vsel %vm532_vm2, %v3746_v5, 0.0 }
 0xb34   : > { %2062 = vadd.xlane.f32.xlu0 %v2061_v6 }
 0xb3a   : > { %v3748_v11 = vpop.eup %3747 }
 0xb3b   : > { %v2172_v12 = vsel %vm532_vm2, %v3748_v11, 0.0 }
 0xb3d   : > { %1956 = vrot.lane.b32.xlu1 %v4708_v1, %s4119_s10 }
 0xb4a   : > { %1845 = vrot.lane.b32.xlu0 %v4708_v1, %s4120_s13 }
 0xb4e   : > { %2178 = vrot.lane.b32.xlu0 %v4708_v1, %s4121_s24 }
 0xb61   : > { %2173 = vadd.xlane.f32.xlu1 %v2172_v12 }
 0xb72   : > { %2067 = vrot.lane.b32.xlu1 %v4708_v1, %s4122_s12 }
 0xbb1   : > { %v1841_v13 = vpop.xlane.xlu0 %1840 }
 0xbb2   : > { %3749 = vrcp.f32 %v1841_v13 }
 0xbb9   : > { %v1952_v14 = vpop.xlane.xlu1 %1951 }
 0xbba   : > { %3751 = vrcp.f32 %v1952_v14 }
 0xbbc   : > { %v3750_v15 = vpop.eup %3749 }
 0xbbd   : > { %v1843_v17 = vmul.f32 %v3750_v15, %v3742_v58  ;;  %v1957_v20 = vpop.permute.xlu1 %1956 }
 0xbbe   : > { %v1962_v2 = vsel %vm596_vm3, %v1957_v20, 0 }
 0xbbf   : > { %v1844_v21 = vpack.c.bf16 %v1843_v17, %v1843_v17 }
 0xbc1   : > { %v2063_v16 = vpop.xlane.xlu0 %2062 }
 0xbc2   : > { %3753 = vrcp.f32 %v2063_v16 }
 0xbc4   : > { %v3752_v22 = vpop.eup %3751 }
 0xbc5   : > { %v1846_v18 = vpop.permute.xlu0 %1845  ;;  %v1954_v1 = vmul.f32 %v3752_v22, %v3744_v63 }
 0xbc6   : > { %v1851_v19 = vsel %vm596_vm3, %v1846_v18, 0 }
 0xbc7   : > { %3448 = vmatpush3.bf16.msra.mxu0 %v1851_v19  ;;  %v1955_v24 = vpack.c.bf16 %v1954_v1, %v1954_v1 }
 0xbc8   : > { %3459 = vmatprep.subr.bf16.mxu0 %v4110_v0 }
 0xbc9   : > { %v2179_v31 = vpop.permute.xlu0 %2178 }
 0xbca   : > { %3450 = vmatmul.mubr.msk.bf16.vlgmr.msra.gmra.mrb[44].mxu0 %vm532_vm2, %v1844_v21  ;;  %v2184_v33 = vsel %vm596_vm3, %v2179_v31, 0 }
 0xbcb   : > { %3460 = vmatpush3.bf16.msra.mxu0 %v1962_v2  ;;  %3461 = vmatprep.mubr.msk.bf16.mxu0 %vm4111_vm0, %v4110_v0 }
 0xbcc   : > { %3471 = vmatprep.subr.bf16.mxu0 %v4110_v0  ;;  %v3754_v25 = vpop.eup %3753 }
 0xbcd   : > { %v2065_v27 = vmul.f32 %v3754_v25, %v3746_v5 }
 0xbcf   : > { %v2066_v32 = vpack.c.bf16 %v2065_v27, %v2065_v27 }
 0xbd2   : > { %3462 = vmatmul.mubr.msk.bf16.vlgmr.msra.gmra.mrb[48].mxu0 %vm532_vm2, %v1955_v24 }
 0xbd3   : > { %3473 = vmatprep.mubr.msk.bf16.mxu0 %vm4111_vm0, %v4110_v0 }
 0xbee   : > { %v2174_v26 = vpop.xlane.xlu1 %2173 }
 0xbef   : > { %3755 = vrcp.f32 %v2174_v26 }
 0xbf2   : > { %v2068_v28 = vpop.permute.xlu1 %2067 }
 0xbf3   : > { %v2073_v30 = vsel %vm596_vm3, %v2068_v28, 0 }
 0xbf4   : > { %3472 = vmatpush3.bf16.msra.mxu0 %v2073_v30 }
 0xbf5   : > { %3483 = vmatprep.subr.bf16.mxu0 %v4110_v0 }
 0xbf7   : > { %3474 = vmatmul.mubr.msk.bf16.vlgmr.msra.gmra.mrb[52].mxu0 %vm532_vm2, %v2066_v32 }
 0xbf8   : > { %3484 = vmatpush3.bf16.msra.mxu0 %v2184_v33  ;;  %3485 = vmatprep.mubr.msk.bf16.mxu0 %vm4111_vm0, %v4110_v0 }
 0xbf9   : > { %v3756_v34 = vpop.eup %3755  ;;  %3497 = vmatprep.subr.bf16.mxu0 %v4110_v0 }
 0xbfa   : > { %v2176_v35 = vmul.f32 %v3756_v34, %v3748_v11 }
 0xbfc   : > { %v2177_v36 = vpack.c.bf16 %v2176_v35, %v2176_v35 }
 0xbff   : > { %3486 = vmatmul.mubr.msk.bf16.vlgmr.msra.gmra.mrb[56].mxu0 %vm532_vm2, %v2177_v36 }
 0xc00   : > { %3498 = vmatpush3.bf16.msra.mxu0 %v3703_v37  ;;  %3501 = vmatprep.mubr.msk.bf16.mxu0 %vm4111_vm0, %v4110_v0 }
 0xc01   : > { %3499 = vmatprep.subr.bf16.mxu0 %v4110_v0 }
 0xc04   : > { %3500 = vmatpush3.bf16.msra.mxu0 %v3704_v38 }
 0xc05   : > { %3511 = vmatprep.subr.bf16.mxu0 %v4110_v0 }
 0xc07   : > { %3502 = vmatmul.mubr.msk.bf16.vlgmr.msra.gmra.mrb[60].mxu0 %vm478_vm1, %v4513_v4 }
 0xc08   : > { %3513 = vmatprep.mubr.msk.bf16.mxu0 %vm4111_vm0, %v4110_v0 }
 0xc9d   : > { %v1887_v39 = vpop.f32.mrb[44].mxu0 }
 0xc9e   : > { %v3451_v40 = vpop.f32.mrb[45].mxu0  ;;  %v1893_v7 = vpack.c.bf16 %v1887_v39, %v1887_v39 }
 0xc9f   : > { %v1890_v41 = vpop.f32.mrb[46].mxu0 }
 0xca0   : > { %v3452_v42 = vpop.f32.mrb[47].mxu0 }
 0xca5   : > { %v1998_v43 = vpop.f32.mrb[48].mxu0 }
 0xca6   : > { %v2004_v44 = vpack.c.bf16 %v1998_v43, %v1998_v43  ;;  %v3463_v45 = vpop.f32.mrb[49].mxu0 }
 0xca7   : > { %v2001_v46 = vpop.f32.mrb[50].mxu0 }
 0xca8   : > { %2228 = vrot.lane.b32.xlu1 %v2004_v44, %s4123_s15  ;;  %v3464_v47 = vpop.f32.mrb[51].mxu0 }
 0xcca   : > { %v2109_v4 = vpop.f32.mrb[52].mxu0 }
 0xccb   : > { %v2115_v50 = vpack.c.bf16 %v2109_v4, %v2109_v4  ;;  %v3475_v51 = vpop.f32.mrb[53].mxu0 }
 0xccc   : > { %v2112_v52 = vpop.f32.mrb[54].mxu0 }
 0xccd   : > { %2231 = vrot.lane.b32.xlu0 %v2115_v50, %s4124_s2  ;;  %v3476_v53 = vpop.f32.mrb[55].mxu0 }
 0xcd2   : > { %v2220_v54 = vpop.f32.mrb[56].mxu0 }
 0xcd3   : > { %v2226_v55 = vpack.c.bf16 %v2220_v54, %v2220_v54  ;;  %v3487_v56 = vpop.f32.mrb[57].mxu0 }
 0xcd4   : > { %v2223_v57 = vpop.f32.mrb[58].mxu0 }
 0xcd5   : > { %2234 = vrot.lane.b32.xlu1 %v2226_v55, %s4125_s18  ;;  %v3488_v58 = vpop.f32.mrb[59].mxu0 }
 0xcda   : > { %v2402_v60 = vpop.f32.mrb[60].mxu0 }
 0xcdb   : > { %v2403_v61 = vadd.f32 %v3195_v59, %v2402_v60  ;;  %v3503_v62 = vpop.f32.mrb[61].mxu0 }
 0xcdc   : > { %v2405_v63 = vpop.f32.mrb[62].mxu0 }
 0xcdd   : > { %v4804_v3 = vpack.c.bf16 %v2403_v61, %v2403_v61  ;;  %v3504_v5 = vpop.f32.mrb[63].mxu0 }
 0xcdf   : > { %2521 = vrot.lane.b32.xlu1 %v4804_v3, %s4115_s0  ;;  %2410 = vrot.lane.b32.xlu0 %v4804_v3, %s4113_s19 }
 0xce3   : > { %2632 = vrot.lane.b32.xlu1 %v4804_v3, %s4114_s17  ;;  %2519 = vrot.lane.b32.xlu0 %v4804_v3, %s4112_s16 }
 0xce7   : > { %2743 = vrot.lane.b32.xlu1 %v4804_v3, %s4116_s9  ;;  %2630 = vrot.lane.b32.xlu0 %v4804_v3, %s4117_s14  ;;  %s2960_s14 = scalar_lea.sflag [#allocation4], %s4471_s3 }
 0xceb   : > { %2741 = vrot.lane.b32.xlu0 %v4804_v3, %s4118_s25 }
 0xd1a   : > { %v2229_v6 = vpop.permute.xlu1 %2228 }
 0xd1b   : > { %v2238_v9 = vsel %vm532_vm2, %v1893_v7, %v2229_v6 }
 0xd3f   : > { %v2232_v8 = vpop.permute.xlu0 %2231 }
 0xd40   : > { %v2240_v11 = vsel %vm986_vm4, %v2238_v9, %v2232_v8 }
 0xd47   : > { %v2235_v12 = vpop.permute.xlu1 %2234 }
 0xd48   : > { %v2242_v13 = vsel %vm989_vm5, %v2240_v11, %v2235_v12 }
 0xd49   : > { %3494 = vmatmul.mubr.msk.bf16.vlgmr.msra.gmra.mrb[56].mxu1 %vm478_vm1, %v2242_v13 }
 0xd4a   : > { %3507 = vmatprep.mubr.msk.bf16.mxu1 %vm4111_vm0, %v4110_v0 }
 0xd51   : > { %v2411_v14 = vpop.permute.xlu0 %2410  ;;  %v2522_v16 = vpop.permute.xlu1 %2521 }
 0xd52   : > { %v2416_v15 = vsel %vm532_vm2, %v2411_v14, 0  ;;  %v2527_v17 = vsel %vm532_vm2, %v2522_v16, 0 }
 0xd53   : > { %3506 = vmatpush3.bf16.xpose.msra.mxu1 %v2416_v15 }
 0xd54   : > { %3517 = vmatprep.subr.bf16.mxu1 %v4110_v0 }
 0xd55   : > { %v2633_v18 = vpop.permute.xlu1 %2632  ;;  %v2520_v19 = vpop.permute.xlu0 %2519 }
 0xd56   : > { %v2638_v20 = vsel %vm532_vm2, %v2633_v18, 0 }
 0xd59   : > { %v2744_v21 = vpop.permute.xlu1 %2743  ;;  %v2631_v22 = vpop.permute.xlu0 %2630 }
 0xd5a   : > { %3508 = vmatmul.mubr.msk.bf16.vlgmr.msra.gmra.mrb[60].mxu1 %vm532_vm2, %v4804_v3  ;;  %v2749_v2 = vsel %vm532_vm2, %v2744_v21, 0 }
 0xd5b   : > { %3518 = vmatpush3.bf16.xpose.msra.mxu1 %v2527_v17  ;;  %3519 = vmatprep.mubr.msk.bf16.mxu1 %vm4111_vm0, %v4110_v0 }
 0xd5c   : > { %3529 = vmatprep.subr.bf16.mxu1 %v4110_v0 }
 0xd5d   : > { %v2742_v1 = vpop.permute.xlu0 %2741 }
 0xd62   : > { %3520 = vmatmul.mubr.msk.bf16.vlgmr.msra.gmra.mrb[64].mxu1 %vm532_vm2, %v2520_v19 }
 0xd63   : > { %3530 = vmatpush3.bf16.xpose.msra.mxu1 %v2638_v20  ;;  %3531 = vmatprep.mubr.msk.bf16.mxu1 %vm4111_vm0, %v4110_v0 }
 0xd64   : > { %3541 = vmatprep.subr.bf16.mxu1 %v4110_v0 }
 0xd6a   : > { %3532 = vmatmul.mubr.msk.bf16.vlgmr.msra.gmra.mrb[68].mxu1 %vm532_vm2, %v2631_v22 }
 0xd6b   : > { %3542 = vmatpush3.bf16.xpose.msra.mxu1 %v2749_v2  ;;  %3543 = vmatprep.mubr.msk.bf16.mxu1 %vm4111_vm0, %v4110_v0 }
 0xd6c   : > { %3553 = vmatprep.subr.bf16.mxu1 %v4110_v0 }
 0xd72   : > { %3544 = vmatmul.mubr.msk.bf16.vlgmr.msra.gmra.mrb[72].mxu1 %vm532_vm2, %v2742_v1 }
 0xd73   : > { %3557 = vmatprep.mubr.msk.bf16.mxu1 %vm4111_vm0, %v4110_v0 }
 0xe1c   : > { %v4847_v24 = vpop.f32.mrb[56].mxu1 }
 0xe1d   : > { %v3495_v25 = vpop.f32.mrb[57].mxu1 }
 0xe1e   : > { %v2300_v26 = vpop.f32.mrb[58].mxu1 }
 0xe1f   : > { %v3496_v27 = vpop.f32.mrb[59].mxu1 }
 0xe2d   : > { %v2452_v28 = vpop.f32.mrb[60].mxu1 }
 0xe2e   : > { %v2453_v30 = vadd.f32 %v2452_v28, %v4559_v29  ;;  %v3509_v31 = vpop.f32.mrb[61].mxu1 }
 0xe2f   : > { %v2455_v32 = vpop.f32.mrb[62].mxu1 }
 0xe30   : > { %v3510_v33 = vpop.f32.mrb[63].mxu1  ;;  %v2458_v34 = vsel %vm532_vm2, %v2453_v30, -inf }
 0xe31   : > { %2459 = vmax.xlane.f32.xlu1 %v2458_v34 }
 0xe35   : > { %v2563_v35 = vpop.f32.mrb[64].mxu1 }
 0xe36   : > { %v2564_v36 = vadd.f32 %v2563_v35, %v4559_v29  ;;  %v3521_v37 = vpop.f32.mrb[65].mxu1 }
 0xe37   : > { %v2566_v38 = vpop.f32.mrb[66].mxu1 }
 0xe38   : > { %v3522_v39 = vpop.f32.mrb[67].mxu1  ;;  %v2569_v40 = vsel %vm532_vm2, %v2564_v36, -inf }
 0xe39   : > { %2570 = vmax.xlane.f32.xlu0 %v2569_v40 }
 0xe3d   : > { %v2674_v41 = vpop.f32.mrb[68].mxu1 }
 0xe3e   : > { %v2675_v42 = vadd.f32 %v2674_v41, %v4559_v29  ;;  %v3533_v43 = vpop.f32.mrb[69].mxu1 }
 0xe3f   : > { %v2677_v44 = vpop.f32.mrb[70].mxu1 }
 0xe40   : > { %v3534_v45 = vpop.f32.mrb[71].mxu1  ;;  %v2680_v46 = vsel %vm532_vm2, %v2675_v42, -inf }
 0xe41   : > { %2681 = vmax.xlane.f32.xlu0 %v2680_v46  ;;  %v3707_v46 = vld [vmem:[#allocation10 + $0x30] sm:$0xff]  }
 0xe42   : > { %3554 = vmatpush3.bf16.msra.mxu1 %v3707_v46 }
 0xe43   : > { %3555 = vmatprep.subr.bf16.mxu1 %v4110_v0 }
 0xe45   : > { %v2785_v47 = vpop.f32.mrb[72].mxu1 }
 0xe46   : > { %v2786_v48 = vadd.f32 %v2785_v47, %v4559_v29  ;;  %v3545_v49 = vpop.f32.mrb[73].mxu1  ;;  %v3708_v47 = vld [vmem:[#allocation10 + $0x38] sm:$0xff]  }
 0xe47   : > { %v2788_v4 = vpop.f32.mrb[74].mxu1  ;;  %3556 = vmatpush3.bf16.msra.mxu1 %v3708_v47 }
 0xe48   : > { %v3546_v50 = vpop.f32.mrb[75].mxu1  ;;  %v2791_v51 = vsel %vm532_vm2, %v2786_v48, -inf }
 0xe49   : > { %2792 = vmax.xlane.f32.xlu1 %v2791_v51 }
 0xebe   : > { %v2460_v52 = vpop.xlane.xlu1 %2459 }
 0xebf   : > { %v2461_v53 = vsub.f32 %v2453_v30, %v2460_v52 }
 0xec1   : > { %v2462_v54 = vmul.f32 1.442695, %v2461_v53 }
 0xec3   : > { %3757 = vpow2.f32 %v2462_v54 }
 0xec6   : > { %v2571_v55 = vpop.xlane.xlu0 %2570 }
 0xec7   : > { %v2572_v56 = vsub.f32 %v2564_v36, %v2571_v55 }
 0xec9   : > { %v2573_v57 = vmul.f32 1.442695, %v2572_v56 }
 0xecb   : > { %3759 = vpow2.f32 %v2573_v57  ;;  %v3153_v57 = vld [vmem:[#allocation11] ss:$0 sm:$0xff] }
 0xecd   : > { %v3758_v58 = vpop.eup %3757 }
 0xece   : > { %v2682_v59 = vpop.xlane.xlu0 %2681  ;;  %v2464_v60 = vsel %vm532_vm2, %v3758_v58, 0.0 }
 0xecf   : > { %v2683_v61 = vsub.f32 %v2675_v42, %v2682_v59  ;;  %2465 = vadd.xlane.f32.xlu0 %v2464_v60  ;;  %v3781_v60 = vld [vmem:[%s4477_s21] sm:$0xff]  ;;  %s5001_s21 = sshll.u32 %s4471_s3, 3 }
 0xed0   : > { %s441_s16 = scalar_lea.vmem [#allocation16], %s5001_s21 }
 0xed1   : > { %v2684_v29 = vmul.f32 1.442695, %v2683_v61  ;;  %s2973_s19 = sshll.u32 %s441_s16, 4  ;;  %s4914_s19 = int_to_ptr.vmem [resolvable:$true] %s2973_s19 }
 0xed2   : > { %s4010_s25 = scalar_lea.vmem %s4914_s19, 128 }
 0xed3   : > { %3761 = vpow2.f32 %v2684_v29  ;;  %p4011_p7 = scmp.ne.s32.totalorder %s4914_s19, %s4010_s25 }
 0xed5   : > { %v3760_v62 = vpop.eup %3759  ;;  %p4012_p0 = pnand %p4011_p7, %p5002_p9 }
 0xed6   : > { %v2575_v63 = vsel %vm532_vm2, %v3760_v62, 0.0  ;;  %v2793_v7 = vpop.xlane.xlu1 %2792 }
 0xed7   : > { %2576 = vadd.xlane.f32.xlu1 %v2575_v63  ;;  %v2794_v8 = vsub.f32 %v2786_v48, %v2793_v7  ;;  %p4013_p2 = pneg %p4012_p0 }
 0xed9   : > { %v2795_v9 = vmul.f32 1.442695, %v2794_v8 }
 0xedb   : > { %3763 = vpow2.f32 %v2795_v9 }
 0xedd   : > { %v3762_v5 = vpop.eup %3761 }
 0xede   : > { %v2686_v6 = vsel %vm532_vm2, %v3762_v5, 0.0 }
 0xedf   : > { %2687 = vadd.xlane.f32.xlu0 %v2686_v6 }
 0xee5   : > { %v3764_v11 = vpop.eup %3763 }
 0xee6   : > { %v2797_v12 = vsel %vm532_vm2, %v3764_v11, 0.0 }
 0xee8   : > { %2581 = vrot.lane.b32.xlu1 %v4804_v3, %s4119_s10 }
 0xef5   : > { %2470 = vrot.lane.b32.xlu0 %v4804_v3, %s4120_s13 }
 0xef9   : > { %2803 = vrot.lane.b32.xlu0 %v4804_v3, %s4121_s24 }
 0xf0c   : > { %2798 = vadd.xlane.f32.xlu1 %v2797_v12 }
 0xf1d   : > { %2692 = vrot.lane.b32.xlu1 %v4804_v3, %s4122_s12 }
 0xf5c   : > { %v2466_v13 = vpop.xlane.xlu0 %2465 }
 0xf5d   : > { %3765 = vrcp.f32 %v2466_v13 }
 0xf64   : > { %v2577_v14 = vpop.xlane.xlu1 %2576 }
 0xf65   : > { %3767 = vrcp.f32 %v2577_v14 }
 0xf67   : > { %v3766_v15 = vpop.eup %3765 }
 0xf68   : > { %v2468_v17 = vmul.f32 %v3766_v15, %v3758_v58  ;;  %v2582_v20 = vpop.permute.xlu1 %2581  ;;  %v1047_v58 = vadd.f32 %v3153_v57, %v4655_v10  ;;  %v3175_v57 = vld [vmem:[#allocation13 + $0x1] ss:$0 sm:$0xff] }
 0xf69   : > { %v2587_v2 = vsel %vm596_vm3, %v2582_v20, 0 }
 0xf6a   : > { %v2469_v21 = vpack.c.bf16 %v2468_v17, %v2468_v17  ;;  %v1052_v61 = vadd.f32 %v3781_v60, %v1047_v58 }
 0xf6c   : > { %v2688_v16 = vpop.xlane.xlu0 %2687  ;;  %v1053_v29 = vsel %vm478_vm1, %v1052_v61, 0.0 }
 0xf6d   : > { %3769 = vrcp.f32 %v2688_v16 }
 0xf6f   : > { %v3768_v22 = vpop.eup %3767 }
 0xf70   : > { %v2471_v18 = vpop.permute.xlu0 %2470  ;;  %v2579_v3 = vmul.f32 %v3768_v22, %v3760_v62 }
 0xf71   : > { %v2476_v19 = vsel %vm596_vm3, %v2471_v18, 0 }
 0xf72   : > { %3512 = vmatpush3.bf16.msra.mxu0 %v2476_v19  ;;  %v2580_v1 = vpack.c.bf16 %v2579_v3, %v2579_v3 }
 0xf73   : > { %3523 = vmatprep.subr.bf16.mxu0 %v4110_v0 }
 0xf74   : > { %v2804_v31 = vpop.permute.xlu0 %2803 }
 0xf75   : > { %3514 = vmatmul.mubr.msk.bf16.vlgmr.msra.gmra.mrb[64].mxu0 %vm532_vm2, %v2469_v21  ;;  %v2809_v33 = vsel %vm596_vm3, %v2804_v31, 0 }
 0xf76   : > { %3524 = vmatpush3.bf16.msra.mxu0 %v2587_v2  ;;  %3525 = vmatprep.mubr.msk.bf16.mxu0 %vm4111_vm0, %v4110_v0 }
 0xf77   : > { %3535 = vmatprep.subr.bf16.mxu0 %v4110_v0  ;;  %v3770_v25 = vpop.eup %3769 }
 0xf78   : > { %v2690_v27 = vmul.f32 %v3770_v25, %v3762_v5 }
 0xf7a   : > { %v2691_v32 = vpack.c.bf16 %v2690_v27, %v2690_v27 }
 0xf7d   : > { %3526 = vmatmul.mubr.msk.bf16.vlgmr.msra.gmra.mrb[68].mxu0 %vm532_vm2, %v2580_v1 }
 0xf7e   : > { %3537 = vmatprep.mubr.msk.bf16.mxu0 %vm4111_vm0, %v4110_v0 }
 0xf99   : > { %v2799_v26 = vpop.xlane.xlu1 %2798 }
 0xf9a   : > { %3771 = vrcp.f32 %v2799_v26 }
 0xf9d   : > { %v2693_v28 = vpop.permute.xlu1 %2692 }
 0xf9e   : > { %v2698_v30 = vsel %vm596_vm3, %v2693_v28, 0 }
 0xf9f   : > { %3536 = vmatpush3.bf16.msra.mxu0 %v2698_v30  ;;  %v3207_v30 = vld [vmem:[#allocation11 + $0x3] ss:$0 sm:$0xff] }
 0xfa0   : > { %3547 = vmatprep.subr.bf16.mxu0 %v4110_v0 }
 0xfa2   : > { %3538 = vmatmul.mubr.msk.bf16.vlgmr.msra.gmra.mrb[72].mxu0 %vm532_vm2, %v2691_v32 }
 0xfa3   : > { %3548 = vmatpush3.bf16.msra.mxu0 %v2809_v33  ;;  %3549 = vmatprep.mubr.msk.bf16.mxu0 %vm4111_vm0, %v4110_v0  ;;  %v3171_v0 = vld [vmem:[#allocation11 + $0x1] ss:$0 sm:$0xff] }
 0xfa4   : > { %v3772_v34 = vpop.eup %3771  ;;  %v1673_v59 = vadd.f32 %v3171_v0, %v4751_v23  ;;  %v3189_v23 = vld [vmem:[#allocation11 + $0x2] ss:$0 sm:$0xff] }
 0xfa5   : > { %v2801_v35 = vmul.f32 %v3772_v34, %v3764_v11  ;;  %v2298_v14 = vadd.f32 %v3189_v23, %v4847_v24 }
 0xfa6   : > { %v1678_v62 = vadd.f32 %v3781_v60, %v1673_v59  ;;  %v3157_v59 = vld [vmem:[#allocation13] ss:$0 sm:$0xff] }
 0xfa7   : > { %v2802_v36 = vpack.c.bf16 %v2801_v35, %v2801_v35  ;;  %v2303_v21 = vadd.f32 %v3781_v60, %v2298_v14 }
 0xfa8   : > { %v1679_v63 = vsel %vm478_vm1, %v1678_v62, 0.0 }
 0xfa9   : > { %v2304_v3 = vsel %vm478_vm1, %v2303_v21, 0.0 }
 0xfaa   : > { %3550 = vmatmul.mubr.msk.bf16.vlgmr.msra.gmra.mrb[76].mxu0 %vm532_vm2, %v2802_v36 }
0x1048   : > { %v2512_v37 = vpop.f32.mrb[64].mxu0 }
0x1049   : > { %v3515_v38 = vpop.f32.mrb[65].mxu0  ;;  %v2518_v6 = vpack.c.bf16 %v2512_v37, %v2512_v37 }
0x104a   : > { %v2515_v39 = vpop.f32.mrb[66].mxu0 }
0x104b   : > { %v3516_v40 = vpop.f32.mrb[67].mxu0 }
0x1050   : > { %v2623_v41 = vpop.f32.mrb[68].mxu0 }
0x1051   : > { %v2629_v42 = vpack.c.bf16 %v2623_v41, %v2623_v41  ;;  %v3527_v43 = vpop.f32.mrb[69].mxu0 }
0x1052   : > { %v2626_v44 = vpop.f32.mrb[70].mxu0 }
0x1053   : > { %2853 = vrot.lane.b32.xlu1 %v2629_v42, %s4123_s15  ;;  %v3528_v45 = vpop.f32.mrb[71].mxu0 }
0x1075   : > { %v2734_v48 = vpop.f32.mrb[72].mxu0 }
0x1076   : > { %v2740_v49 = vpack.c.bf16 %v2734_v48, %v2734_v48  ;;  %v3539_v4 = vpop.f32.mrb[73].mxu0 }
0x1077   : > { %v2737_v50 = vpop.f32.mrb[74].mxu0 }
0x1078   : > { %2856 = vrot.lane.b32.xlu0 %v2740_v49, %s4124_s2  ;;  %v3540_v51 = vpop.f32.mrb[75].mxu0 }
0x107d   : > { %v2845_v52 = vpop.f32.mrb[76].mxu0 }
0x107e   : > { %v2851_v53 = vpack.c.bf16 %v2845_v52, %v2845_v52  ;;  %v3551_v54 = vpop.f32.mrb[77].mxu0 }
0x107f   : > { %v2848_v55 = vpop.f32.mrb[78].mxu0 }
0x1080   : > { %2859 = vrot.lane.b32.xlu1 %v2851_v53, %s4125_s18  ;;  %v3552_v56 = vpop.f32.mrb[79].mxu0  ;;  %s3214_s18 = sshll.u32 %s4193_s11, 7  ;;  %s4126_s11 = smov [#allocation16]  }
0x1081   : > { %s4912_s9 = scalar_lea.hbm %s4965_s8, %s3214_s18  ;;  %s4014_s10 = sshll.u32 %s4126_s11, 4  ;;  %s4015_s10 = int_to_ptr.vmem [resolvable:$false] %s4014_s10 }
0x1082   : > { %s4016_s13 = scalar_lea.vmem %s4015_s10, 256  ;;  %p4017_p3 = scmp.lt.s32.totalorder %s4914_s19, %s4015_s10 }
0x1083   : > { %p4018_p6 = scmp.lt.s32.totalorder %s4016_s13, %s4010_s25 }
0x1085   : > { %p4019_p4 = por %p4018_p6, %p4017_p3 }
0x1087   : > { %p4020_p8 = pnand %p4019_p4, %p4013_p2 }
0x1097   : > { %1054 = vadd.xlane.f32.xlu0 %v1053_v29  ;;  %v3176_v29 = vld [vmem:[#allocation14 + $0x1] ss:$0 sm:$0xff] }
0x109b   : > { %1680 = vadd.xlane.f32.xlu0 %v1679_v63 }
0x10c5   : > { %v2854_v5 = vpop.permute.xlu1 %2853 }
0x10c6   : > { %v2863_v8 = vsel %vm532_vm2, %v2518_v6, %v2854_v5  ;;  %v3158_v5 = vld [vmem:[#allocation14] ss:$0 sm:$0xff]  ;;  %v3194_v6 = vld [vmem:[#allocation14 + $0x2] ss:$0 sm:$0xff] }
0x10ea   : > { %v2857_v7 = vpop.permute.xlu0 %2856 }
0x10eb   : > { %v2865_v9 = vsel %vm986_vm4, %v2863_v8, %v2857_v7 }
0x10f2   : > { %v2860_v10 = vpop.permute.xlu1 %2859 }
0x10f3   : > { %v2867_v11 = vsel %vm989_vm5, %v2865_v9, %v2860_v10  ;;  %v3211_v9 = vld [vmem:[#allocation13 + $0x3] ss:$0 sm:$0xff] }
0x10f4   : > { %3558 = vmatmul.mubr.msk.bf16.vlgmr.msra.gmra.mrb[76].mxu1 %vm478_vm1, %v2867_v11 }
0x1124   : > { %v1055_v12 = vpop.xlane.xlu0 %1054 }
0x1125   : > { %v1057_v13 = vmul.f32 0.03125, %v1055_v12  ;;  %v3212_v12 = vld [vmem:[#allocation14 + $0x3] ss:$0 sm:$0xff] }
0x1127   : > { %v1058_v15 = vsub.f32 %v1052_v61, %v1057_v13 }
0x1128   : > { %v1681_v16 = vpop.xlane.xlu0 %1680 }
0x1129   : > { %v1682_v17 = vmul.f32 0.03125, %v1681_v16  ;;  %v1059_v18 = vmul.f32 %v1058_v15, %v1058_v15 }
0x112b   : > { %v1683_v19 = vsub.f32 %v1678_v62, %v1682_v17  ;;  %v1060_v20 = vsel %vm478_vm1, %v1059_v18, 0.0 }
0x112c   : > { %1061 = vadd.xlane.f32.xlu1 %v1060_v20 }
0x112d   : > { %v1684_v22 = vmul.f32 %v1683_v19, %v1683_v19 }
0x112f   : > { %v1685_v2 = vsel %vm478_vm1, %v1684_v22, 0.0 }
0x1130   : > { %1686 = vadd.xlane.f32.xlu0 %v1685_v2  ;;  %2305 = vadd.xlane.f32.xlu1 %v2304_v3 }
0x11b9   : > { %v1062_v1 = vpop.xlane.xlu1 %1061 }
0x11ba   : > { %v1063_v46 = vmul.f32 0.03125, %v1062_v1 }
0x11bc   : > { %v1064_v49 = vadd.f32 1e-05, %v1063_v46 }
0x11bd   : > { %v2306_v25 = vpop.xlane.xlu1 %2305  ;;  %v1687_v43 = vpop.xlane.xlu0 %1686 }
0x11be   : > { %v2307_v26 = vmul.f32 0.03125, %v2306_v25  ;;  %v1688_v45 = vmul.f32 0.03125, %v1687_v43 }
0x11c0   : > { %v2308_v24 = vsub.f32 %v2303_v21, %v2307_v26  ;;  %v1689_v48 = vadd.f32 1e-05, %v1688_v45 }
0x11c2   : > { %v2309_v27 = vmul.f32 %v2308_v24, %v2308_v24  ;;  %3773 = vrsqrt.f32 %v1689_v48 }
0x11c3   : > { %3775 = vrsqrt.f32 %v1064_v49 }
0x11c4   : > { %v2310_v28 = vsel %vm478_vm1, %v2309_v27, 0.0 }
0x11c5   : > { %2311 = vadd.xlane.f32.xlu0 %v2310_v28 }
0x11c7   : > { %v2922_v31 = vpop.f32.mrb[76].mxu1 }
0x11c8   : > { %v2923_v32 = vadd.f32 %v3207_v30, %v2922_v31  ;;  %v3559_v33 = vpop.f32.mrb[77].mxu1 }
0x11c9   : > { %v2925_v34 = vpop.f32.mrb[78].mxu1 }
0x11ca   : > { %v3560_v35 = vpop.f32.mrb[79].mxu1  ;;  %v2928_v36 = vadd.f32 %v3781_v60, %v2923_v32  ;;  %v3193_v60 = vld [vmem:[#allocation13 + $0x2] ss:$0 sm:$0xff] }
0x11cc   : > { %v2929_v37 = vsel %vm478_vm1, %v2928_v36, 0.0  ;;  %v3774_v52 = vpop.eup %3773 }
0x11cd   : > { %2930 = vadd.xlane.f32.xlu1 %v2929_v37  ;;  %v3776_v54 = vpop.eup %3775  ;;  %v1691_v56 = vmul.f32 %v3774_v52, %v1683_v19 }
0x11ce   : > { %v1066_v58 = vmul.f32 %v3776_v54, %v1058_v15 }
0x11cf   : > { %v1698_v61 = vmul.f32 %v3175_v57, %v1691_v56 }
0x11d0   : > { %v1073_v62 = vmul.f32 %v3157_v59, %v1066_v58 }
0x11d1   : > { %v1705_v7 = vadd.f32 %v3176_v29, %v1698_v61 }
0x11d2   : > { %v1080_v10 = vadd.f32 %v3158_v5, %v1073_v62 }
0x11d4   : > { %v1706_v14 = vadd.f32 %v1705_v7, %v1080_v10 }
0x1252   : > { %v2312_v44 = vpop.xlane.xlu0 %2311 }
0x1253   : > { %v2313_v47 = vmul.f32 0.03125, %v2312_v44 }
0x1255   : > { %v2314_v4 = vadd.f32 1e-05, %v2313_v47 }
0x1257   : > { %3777 = vrsqrt.f32 %v2314_v4 }
0x125a   : > { %v2931_v38 = vpop.xlane.xlu1 %2930 }
0x125b   : > { %v2932_v39 = vmul.f32 0.03125, %v2931_v38 }
0x125d   : > { %v2933_v40 = vsub.f32 %v2928_v36, %v2932_v39 }
0x125f   : > { %v2934_v41 = vmul.f32 %v2933_v40, %v2933_v40 }
0x1261   : > { %v2935_v42 = vsel %vm478_vm1, %v2934_v41, 0.0  ;;  %v3778_v55 = vpop.eup %3777 }
0x1262   : > { %2936 = vadd.xlane.f32.xlu0 %v2935_v42  ;;  %v2316_v0 = vmul.f32 %v3778_v55, %v2308_v24 }
0x1264   : > { %v2323_v63 = vmul.f32 %v3193_v60, %v2316_v0 }
0x1266   : > { %v2330_v11 = vadd.f32 %v3194_v6, %v2323_v63 }
0x1268   : > { %v2331_v16 = vadd.f32 %v2330_v11, %v1706_v14 }
0x12ef   : > { %v2937_v50 = vpop.xlane.xlu0 %2936 }
0x12f0   : > { %v2938_v51 = vmul.f32 0.03125, %v2937_v50 }
0x12f2   : > { %v2939_v53 = vadd.f32 1e-05, %v2938_v51 }
0x12f4   : > { %3779 = vrsqrt.f32 %v2939_v53 }
0x12fe   : > { %v3780_v8 = vpop.eup %3779 }
0x12ff   : > { %v2941_v23 = vmul.f32 %v3780_v8, %v2933_v40 }
0x1301   : > { %v2948_v13 = vmul.f32 %v3211_v9, %v2941_v23 }
0x1303   : > { %v2955_v15 = vadd.f32 %v3212_v12, %v2948_v13 }
0x1305   : > { %v2956_v17 = vadd.f32 %v2955_v15, %v2331_v16 }
0x1307   : > { %v2957_v18 = vmul.f32 0.25, %v2956_v17 }
0x1309   : > { %2958 = vst.msk [vmem:[%s441_s16] sm:$0xff] %vm478_vm1, %v2957_v18 }
0x130a   : > { %4023 = shalt.err (!%p4020_p8)
}
0x130b   : > { %s4024_s3 = scalar_lea.hbm %s4912_s9, 128  ;;  %s4028_s15 = scalar_lea.hbm %s4965_s8, 256 }
0x130c   : > { %p4025_p5 = scmp.ne.s32.totalorder %s4912_s9, %s4024_s3  ;;  %p4029_p11 = scmp.lt.u32.totalorder %s4912_s9, %s4965_s8 }
0x130d   : > { %p4030_p12 = scmp.lt.u32.totalorder %s4028_s15, %s4024_s3  ;;  %p4032_p7 = scmp.lt.u32.totalorder %s4024_s3, %s4912_s9 }
0x130e   : > { %p4026_p10 = pnand %p4025_p5, %p5002_p9 }
0x130f   : > { %p4031_p13 = por %p4030_p12, %p4029_p11 }
0x1310   : > { %p4027_p1 = pneg %p4026_p10 }
0x1311   : > { %p4033_p0 = por %p4032_p7, %p4031_p13 }
0x1313   : > { %p4034_p2 = pnand %p4033_p0, %p4027_p1 }
0x1315   : > { %4037 = shalt.err (!%p4034_p2)
}
0x1316   : > { %3589 = dma.vmem_to_hbm [thread:$0]  (%p5002_p9), %s4914_s19, 128, %s4912_s9, %s2960_s14  }
0x1317 PF: > { %s2985_s21 = sand.u32 1, %s4084_s27   ;;  %p5003_p3 = scmp.ne.s32.totalorder %s4987_s26, 0 }
0x1318   : > { %p5004_p6 = scmp.ge.s32.totalorder %s4096_s30, 2  ;;  %s2986_s16 = scalar_lea.sflag [#allocation4], %s2985_s21 }
0x131a   : > { %p3618_p4 = pnand %p5004_p6, %p5003_p3 }
0x131c   : > { %4079 = dma.done.wait (!%p3618_p4), %s2986_s16, 128  }
0x131d   : > { %4081 = vsyncadd (!%p3618_p4), %s2986_s16, 4294967168  ;;  %p27_p8 = scmp.ge.s32.totalorder %s4362_s23, 4   ;;  %s5005_s27 = smov %s4088_s28 }
0x131e   : > { %s5006_s28 = smov %s4092_s29  ;;  %s5007_s29 = smov %s4373_s22 }
0x131f   : > { %s5008_s30 = smov %s4362_s23  ;;  %29 = sbr.rel (!%p27_p8) target bundleno = 14 (0xe), region = 152 }
0x1326   :  { %2991 = vsyncpa [#allocation3], 1 }
0x1327   :  { %2993 = vsyncpa [#allocation3 + $0x1], 1 }
0x1328   :  { %2994 = vsyncpa [#allocation6], 1 }
0x1329   :  { %2996 = vsyncpa [#allocation6 + $0x1], 1 }
0x132a   :  { %2997 = vsyncpa [#allocation9], 1 }
0x132b   :  { %2998 = vsyncpa [#allocation12], 1 }
0x132c   :  { %2999 = vsyncpa [#allocation15], 1 }
0x132d   :  { %3000 = vsyncpa [#allocation4], 1 }
0x132e   :  { %3002 = vsyncpa [#allocation4 + $0x1], 1 }

</bundles_post_ra>
